<compile_context>
chip_gen: v7x
topology: tpu7x:2x2x1
jax: 0.10.0
libtpu: 0.0.40
codegen_flags: <defaults>
</compile_context>

<pallas_src>
import functools

import jax
import jax.numpy as jnp
from jax import lax
from jax.experimental import pallas as pl
from jax.experimental.pallas import tpu as pltpu

_H = 32              # LeNet5 geometry: 32x32 input so conv3 sees a 5x5 map
_W = 32
_LANES = _H * _W     # flattened spatial grid -> the lane axis inside the kernel
_K = 5               # conv kernel size
_CONV3_IN = 25 * 8   # 25 taps x 8 conv2 output channels


def _lshift(x, d):
    """y[:, p] = x[:, (p + d) mod L] via an XLU lane rotation.

    The wrapped tail only lands on padded grid positions that no valid downstream
    output ever reads (same argument as the original slice+concat version)."""
    if d == 0:
        return x
    size = x.shape[-1]
    return pltpu.roll(x, shift=size - d, axis=1)


def _lenet5half_kernel(x_ref, w1_ref, b1_ref, w2_ref, b2_ref, w3_ref, b3_ref,
                       wf1_ref, bf1_ref, wf2_ref, bf2_ref, *out_refs, with_acts):
    """Whole LeNet5Half forward for ONE batch tile of B images.

    Per-image activations live on a padded 32x32 grid flattened into 1024 lanes:
      conv1 output valid at (oh, ow),  oh, ow < 28   (stride-1 grid positions)
      pool1 output valid at (2a, 2b),  a, b < 14     (stride-2 positions)
      conv2 output valid at (2a, 2b),  a, b < 10     (stride-2 positions)
      pool2 output valid at (4i, 4j),  i, j < 5      (stride-4 positions)
    The dense tail (conv3/fc1/fc2) is batched with the B images on the lane axis.
    """
    batch_tile = x_ref.shape[0]

    if with_acts:
        logits_ref, feat_ref, a1_ref, a2_ref, a3_ref = out_refs
    else:
        logits_ref, feat_ref = out_refs

    # Hoist the tiny weight/bias loads out of the per-image loop.
    w1_rows = [w1_ref[kh] for kh in range(_K)]    # each [3, 5*C_in]
    w2_rows = [w2_ref[kh] for kh in range(_K)]    # each [8, 15]
    b1 = b1_ref[...]                              # [3, 1]
    b2 = b2_ref[...]                              # [8, 1]

    lane_ids = lax.broadcasted_iota(jnp.int32, (1, batch_tile), 1)

    def conv_rows(x, w_rows, bias, stride):
        """Valid conv as 5 accumulated row-group matmuls on the flattened lane grid."""
        acc = None
        for kh in range(_K):
            taps = jnp.concatenate(
                [_lshift(x, stride * (kh * _W + kw)) for kw in range(_K)],
                axis=0)                                           # [5*C, 1024]
            part = jnp.dot(w_rows[kh], taps, preferred_element_type=jnp.float32)
            acc = part if acc is None else acc + part
        return acc + bias

    def pool2x2(x, stride):
        """2x2 max-pool on the (stride-spaced) lane grid: max of 4 rolled copies."""
        return jnp.maximum(
            jnp.maximum(x, _lshift(x, stride)),
            jnp.maximum(_lshift(x, stride * _W), _lshift(x, stride * (_W + 1))))

    def per_image(b, x2):
        xb = x_ref[b]                                     # [C_in, 1024]
        a1 = conv_rows(xb, w1_rows, b1, stride=1)         # [3, 1024]  (pre-ReLU conv1)
        m1 = pool2x2(jnp.maximum(a1, 0.0), stride=1)
        a2 = conv_rows(m1, w2_rows, b2, stride=2)         # [8, 1024]  (pre-ReLU conv2)
        m2 = pool2x2(jnp.maximum(a2, 0.0), stride=2)
        # conv3 input column for this image: 25 taps x 8 channels -> [200, 1]
        col = jnp.concatenate(
            [m2[:, 4 * (i * _W + j): 4 * (i * _W + j) + 1]
             for i in range(_K) for j in range(_K)],
            axis=0)
        if with_acts:
            a1_ref[b] = a1
            a2_ref[b] = a2
        # Insert the column into lane b of the [200, B] conv3 input (batch on lanes).
        return jnp.where(lane_ids == b, col, x2)

    x2 = lax.fori_loop(0, batch_tile, per_image,
                       jnp.zeros((_CONV3_IN, batch_tile), jnp.float32))

    # ---- dense tail, batched across the lane axis -----------------------------------
    a3 = jnp.dot(w3_ref[...], x2, preferred_element_type=jnp.float32) + b3_ref[...]
    feat = jnp.maximum(a3, 0.0)                                               # [60, B]
    h1 = jnp.maximum(
        jnp.dot(wf1_ref[...], feat, preferred_element_type=jnp.float32) + bf1_ref[...],
        0.0)                                                                  # [42, B]
    logits = jnp.dot(wf2_ref[...], h1, preferred_element_type=jnp.float32) + bf2_ref[...]

    logits_ref[...] = logits                                                  # [10, B]
    feat_ref[...] = feat                                                      # [60, B]
    if with_acts:
        a3_ref[...] = a3


_PARAM_ORDER = ("w1", "b1", "w2", "b2", "w3", "b3", "wf1", "bf1", "wf2", "bf2")


@functools.partial(jax.jit, static_argnames=("with_acts", "tile_b"))
def _fused_forward(packed, x, with_acts, tile_b):
    n, c_in, lanes = x.shape
    steps = (n + tile_b - 1) // tile_b
    n_pad = steps * tile_b
    if n_pad != n:
        x = jnp.concatenate(
            [x, jnp.zeros((n_pad - n, c_in, lanes), x.dtype)], axis=0)

    # logits / feature (and pre-ReLU conv3) with batch on the LANE axis; the per-step
    # block covers the full last two dims so any tile_b is a legal block shape.
    out_shape = [jax.ShapeDtypeStruct((steps, 10, tile_b), jnp.float32),
                 jax.ShapeDtypeStruct((steps, 60, tile_b), jnp.float32)]
    out_specs = [pl.BlockSpec((None, 10, tile_b), lambda i: (i, 0, 0)),
                 pl.BlockSpec((None, 60, tile_b), lambda i: (i, 0, 0))]
    if with_acts:
        out_shape += [jax.ShapeDtypeStruct((n_pad, 3, lanes), jnp.float32),
                      jax.ShapeDtypeStruct((n_pad, 8, lanes), jnp.float32),
                      jax.ShapeDtypeStruct((steps, 60, tile_b), jnp.float32)]
        out_specs += [pl.BlockSpec((tile_b, 3, lanes), lambda i: (i, 0, 0)),
                      pl.BlockSpec((tile_b, 8, lanes), lambda i: (i, 0, 0)),
                      pl.BlockSpec((None, 60, tile_b), lambda i: (i, 0, 0))]

    weights = [packed[k] for k in _PARAM_ORDER]
    in_specs = [pl.BlockSpec((tile_b, c_in, lanes), lambda i: (i, 0, 0))]
    for wgt in weights:
        in_specs.append(pl.BlockSpec(wgt.shape, lambda i, _nd=wgt.ndim: (0,) * _nd))

    return pl.pallas_call(
        functools.partial(_lenet5half_kernel, with_acts=with_acts),
        out_shape=tuple(out_shape),
        grid=(steps,),
        in_specs=in_specs,
        out_specs=tuple(out_specs),
        compiler_params=pltpu.CompilerParams(
            dimension_semantics=("parallel",)),
    )(x, *weights)


# ----------------------------------------------------------------------------
# Parameters
# ----------------------------------------------------------------------------
def init_params(in_channels, key):
    keys = jax.random.split(key, 10)

    def u(k, shape, fan_in):
        bound = 1.0 / jnp.sqrt(fan_in)
        return jax.random.uniform(k, shape, jnp.float32, -bound, bound)

    p = {}
    p["conv1_w"] = u(keys[0], (3, in_channels, 5, 5), in_channels * 25)
    p["conv1_b"] = u(keys[1], (3,), in_channels * 25)
    p["conv2_w"] = u(keys[2], (8, 3, 5, 5), 3 * 25)
    p["conv2_b"] = u(keys[3], (8,), 3 * 25)
    p["conv3_w"] = u(keys[4], (60, 8, 5, 5), 8 * 25)
    p["conv3_b"] = u(keys[5], (60,), 8 * 25)
    p["fc1_w"] = u(keys[6], (42, 60), 60)   # PyTorch Linear: [out, in]
    p["fc1_b"] = u(keys[7], (42,), 60)
    p["fc2_w"] = u(keys[8], (10, 42), 42)
    p["fc2_b"] = u(keys[9], (10,), 42)
    return p


def pack_params(params):
    """One-time re-layout of PyTorch-style parameters into the kernel's layouts."""
    c_in = params["conv1_w"].shape[1]
    return {
        # conv1/conv2: one slab per kernel row kh, columns ordered (kw, c) to match the
        # in-kernel concat of lane-rolled copies:  w[kh, oc, kw*C + c] = W[oc, c, kh, kw]
        "w1": params["conv1_w"].transpose(2, 0, 3, 1).reshape(_K, 3, _K * c_in),
        "b1": params["conv1_b"].reshape(3, 1),
        "w2": params["conv2_w"].transpose(2, 0, 3, 1).reshape(_K, 8, _K * 3),
        "b2": params["conv2_b"].reshape(8, 1),
        # conv3: rows ordered (tap(i,j) major, channel minor) to match the column build.
        "w3": params["conv3_w"].transpose(0, 2, 3, 1).reshape(60, 200),
        "b3": params["conv3_b"].reshape(60, 1),
        "wf1": params["fc1_w"],                # [42, 60] native [out, in]
        "bf1": params["fc1_b"].reshape(42, 1),
        "wf2": params["fc2_w"],                # [10, 42]
        "bf2": params["fc2_b"].reshape(10, 1),
    }


# ----------------------------------------------------------------------------
# Forward (PyTorch LeNet5Half semantics)
# ----------------------------------------------------------------------------
def lenet5half_forward(packed_params, img, out_feature=False, out_activation=False,
                       images_per_step=8):
    n, c_in, h, w = img.shape
    assert h == _H and w == _W, "LeNet5 geometry requires 32x32 spatial input"
    x = img.reshape(n, c_in, h * w).astype(jnp.float32)

    need_acts = bool(out_feature) and bool(out_activation)
    outs = _fused_forward(packed_params, x, with_acts=need_acts,
                          tile_b=int(images_per_step))

    def _cols_to_rows(o):                      # [steps, K, B] -> [n, K]
        s, k, b = o.shape
        return jnp.transpose(o, (0, 2, 1)).reshape(s * b, k)[:n]

    logits = _cols_to_rows(outs[0])
    if out_feature is False:
        return logits
    feature = _cols_to_rows(outs[1])
    if out_activation is True:
        activation1 = outs[2][:n].reshape(n, 3, _H, _W)[:, :, :28, :28]
        activation2 = outs[3][:n].reshape(n, 8, _H, _W)[:, :, 0:20:2, 0:20:2]
        activation3 = _cols_to_rows(outs[4]).reshape(n, 60, 1, 1)
        return (logits, feature, activation1, activation2, activation3)
    return (logits, feature)


# ----------------------------------------------------------------------------
# Plain-XLA reference (numerical self-check only)
# ----------------------------------------------------------------------------
def _reference_forward(params, img):
    def conv(x, w, b):
        y = jax.lax.conv_general_dilated(
            x, w, window_strides=(1, 1), padding="VALID",
            dimension_numbers=("NCHW", "OIHW", "NCHW"))
        return y + b.reshape(1, -1, 1, 1)

    def pool(x):
        n, c, h, w = x.shape
        return x.reshape(n, c, h // 2, 2, w // 2, 2).max(axis=(3, 5))

    a1 = conv(img, params["conv1_w"], params["conv1_b"])
    o = pool(jnp.maximum(a1, 0.0))
    a2 = conv(o, params["conv2_w"], params["conv2_b"])
    o = pool(jnp.maximum(a2, 0.0))
    a3 = conv(o, params["conv3_w"], params["conv3_b"])
    feat = jnp.maximum(a3, 0.0).reshape(-1, 60)
    h1 = jnp.maximum(feat @ params["fc1_w"].T + params["fc1_b"], 0.0)
    logits = h1 @ params["fc2_w"].T + params["fc2_b"]
    return logits, feat, a1, a2, a3


if __name__ == "__main__":
    key = jax.random.PRNGKey(0)
    k_param, k_input, k_input2 = jax.random.split(key, 3)

    in_channels = 1
    batch = 2
    img = jax.random.normal(k_input, (batch, in_channels, _H, _W), dtype=jnp.float32)

    params = init_params(in_channels, k_param)
    packed = pack_params(params)            # one-time weight re-layout

    # Default inference path: one fused pallas_call, no XLA glue around it.
    predict = jax.jit(lenet5half_forward)
    logits = jax.block_until_ready(predict(packed, img))
    assert logits.shape == (batch, 10), logits.shape

    # (output, feature) path.
    logits2, feature = lenet5half_forward(packed, img, out_feature=True)
    jax.block_until_ready(feature)
    assert feature.shape == (batch, 60), feature.shape

    # Full path with pre-ReLU activations.
    logits3, feat3, act1, act2, act3 = lenet5half_forward(
        packed, img, out_feature=True, out_activation=True)
    jax.block_until_ready(act3)
    assert act1.shape == (batch, 3, 28, 28), act1.shape
    assert act2.shape == (batch, 8, 10, 10), act2.shape
    assert act3.shape == (batch, 60, 1, 1), act3.shape

    # Numerical self-check against the plain-XLA reference.
    ref_logits, ref_feat, ref_a1, ref_a2, ref_a3 = _reference_forward(params, img)

    def _close(a, b):
        return bool(jnp.allclose(a, b, atol=1e-3, rtol=1e-3))

    assert _close(logits, ref_logits)
    assert _close(logits2, ref_logits) and _close(feature, ref_feat)
    assert _close(logits3, ref_logits) and _close(feat3, ref_feat)
    assert _close(act1, ref_a1) and _close(act2, ref_a2) and _close(act3, ref_a3)

    # Multi-step grid path (batch > images_per_step) + batch padding.
    batch2 = 10
    img2 = jax.random.normal(k_input2, (batch2, in_channels, _H, _W), dtype=jnp.float32)
    logits_big = jax.block_until_ready(lenet5half_forward(packed, img2))
    ref_big, *_ = _reference_forward(params, img2)
    assert logits_big.shape == (batch2, 10), logits_big.shape
    assert _close(logits_big, ref_big)

    print("KERNEL_OK")
</pallas_src>

<mosaic_0001>
module attributes {stable_mosaic.version = 11 : i64} {
  func.func @_lenet5half_kernel(%arg0: i32, %arg1: memref<8x1x1024xf32, #tpu.memory_space<vmem>>, %arg2: memref<5x3x5xf32, #tpu.memory_space<vmem>>, %arg3: memref<3x1xf32, #tpu.memory_space<vmem>>, %arg4: memref<5x8x15xf32, #tpu.memory_space<vmem>>, %arg5: memref<8x1xf32, #tpu.memory_space<vmem>>, %arg6: memref<60x200xf32, #tpu.memory_space<vmem>>, %arg7: memref<60x1xf32, #tpu.memory_space<vmem>>, %arg8: memref<42x60xf32, #tpu.memory_space<vmem>>, %arg9: memref<42x1xf32, #tpu.memory_space<vmem>>, %arg10: memref<10x42xf32, #tpu.memory_space<vmem>>, %arg11: memref<10x1xf32, #tpu.memory_space<vmem>>, %arg12: memref<1x10x8xf32, #tpu.memory_space<vmem>>, %arg13: memref<1x60x8xf32, #tpu.memory_space<vmem>>) attributes {dimension_semantics = [#tpu.dimension_semantics<parallel>], iteration_bounds = array<i64: 1>, scalar_prefetch = 0 : i64, scratch_operands = 0 : i64, tpu.core_type = #tpu.core_type<tc>, window_params = [{transform_indices = @transform_0, window_bounds = array<i64: 8, 1, 1024>}, {pipeline_mode = #tpu.pipeline_mode<synchronous>, transform_indices = @transform_1, window_bounds = array<i64: 5, 3, 5>}, {pipeline_mode = #tpu.pipeline_mode<synchronous>, transform_indices = @transform_2, window_bounds = array<i64: 3, 1>}, {pipeline_mode = #tpu.pipeline_mode<synchronous>, transform_indices = @transform_3, window_bounds = array<i64: 5, 8, 15>}, {pipeline_mode = #tpu.pipeline_mode<synchronous>, transform_indices = @transform_4, window_bounds = array<i64: 8, 1>}, {pipeline_mode = #tpu.pipeline_mode<synchronous>, transform_indices = @transform_5, window_bounds = array<i64: 60, 200>}, {pipeline_mode = #tpu.pipeline_mode<synchronous>, transform_indices = @transform_6, window_bounds = array<i64: 60, 1>}, {pipeline_mode = #tpu.pipeline_mode<synchronous>, transform_indices = @transform_7, window_bounds = array<i64: 42, 60>}, {pipeline_mode = #tpu.pipeline_mode<synchronous>, transform_indices = @transform_8, window_bounds = array<i64: 42, 1>}, {pipeline_mode = #tpu.pipeline_mode<synchronous>, transform_indices = @transform_9, window_bounds = array<i64: 10, 42>}, {pipeline_mode = #tpu.pipeline_mode<synchronous>, transform_indices = @transform_10, window_bounds = array<i64: 10, 1>}, {transform_indices = @transform_11, window_bounds = array<i64: 1, 10, 8>}, {transform_indices = @transform_12, window_bounds = array<i64: 1, 60, 8>}]} {
    %c0 = arith.constant 0 : index
    %c0_0 = arith.constant 0 : index
    %c0_1 = arith.constant 0 : index
    %0 = vector.load %arg2[%c0, %c0_0, %c0_1] : memref<5x3x5xf32, #tpu.memory_space<vmem>>, vector<1x3x5xf32>
    %1 = vector.shape_cast %0 : vector<1x3x5xf32> to vector<3x5xf32>
    %c1 = arith.constant 1 : index
    %c0_2 = arith.constant 0 : index
    %c0_3 = arith.constant 0 : index
    %2 = vector.load %arg2[%c1, %c0_2, %c0_3] : memref<5x3x5xf32, #tpu.memory_space<vmem>>, vector<1x3x5xf32>
    %3 = vector.shape_cast %2 : vector<1x3x5xf32> to vector<3x5xf32>
    %c2 = arith.constant 2 : index
    %c0_4 = arith.constant 0 : index
    %c0_5 = arith.constant 0 : index
    %4 = vector.load %arg2[%c2, %c0_4, %c0_5] : memref<5x3x5xf32, #tpu.memory_space<vmem>>, vector<1x3x5xf32>
    %5 = vector.shape_cast %4 : vector<1x3x5xf32> to vector<3x5xf32>
    %c3 = arith.constant 3 : index
    %c0_6 = arith.constant 0 : index
    %c0_7 = arith.constant 0 : index
    %6 = vector.load %arg2[%c3, %c0_6, %c0_7] : memref<5x3x5xf32, #tpu.memory_space<vmem>>, vector<1x3x5xf32>
    %7 = vector.shape_cast %6 : vector<1x3x5xf32> to vector<3x5xf32>
    %c4 = arith.constant 4 : index
    %c0_8 = arith.constant 0 : index
    %c0_9 = arith.constant 0 : index
    %8 = vector.load %arg2[%c4, %c0_8, %c0_9] : memref<5x3x5xf32, #tpu.memory_space<vmem>>, vector<1x3x5xf32>
    %9 = vector.shape_cast %8 : vector<1x3x5xf32> to vector<3x5xf32>
    %c0_10 = arith.constant 0 : index
    %c0_11 = arith.constant 0 : index
    %c0_12 = arith.constant 0 : index
    %10 = vector.load %arg4[%c0_10, %c0_11, %c0_12] : memref<5x8x15xf32, #tpu.memory_space<vmem>>, vector<1x8x15xf32>
    %11 = vector.shape_cast %10 : vector<1x8x15xf32> to vector<8x15xf32>
    %c1_13 = arith.constant 1 : index
    %c0_14 = arith.constant 0 : index
    %c0_15 = arith.constant 0 : index
    %12 = vector.load %arg4[%c1_13, %c0_14, %c0_15] : memref<5x8x15xf32, #tpu.memory_space<vmem>>, vector<1x8x15xf32>
    %13 = vector.shape_cast %12 : vector<1x8x15xf32> to vector<8x15xf32>
    %c2_16 = arith.constant 2 : index
    %c0_17 = arith.constant 0 : index
    %c0_18 = arith.constant 0 : index
    %14 = vector.load %arg4[%c2_16, %c0_17, %c0_18] : memref<5x8x15xf32, #tpu.memory_space<vmem>>, vector<1x8x15xf32>
    %15 = vector.shape_cast %14 : vector<1x8x15xf32> to vector<8x15xf32>
    %c3_19 = arith.constant 3 : index
    %c0_20 = arith.constant 0 : index
    %c0_21 = arith.constant 0 : index
    %16 = vector.load %arg4[%c3_19, %c0_20, %c0_21] : memref<5x8x15xf32, #tpu.memory_space<vmem>>, vector<1x8x15xf32>
    %17 = vector.shape_cast %16 : vector<1x8x15xf32> to vector<8x15xf32>
    %c4_22 = arith.constant 4 : index
    %c0_23 = arith.constant 0 : index
    %c0_24 = arith.constant 0 : index
    %18 = vector.load %arg4[%c4_22, %c0_23, %c0_24] : memref<5x8x15xf32, #tpu.memory_space<vmem>>, vector<1x8x15xf32>
    %19 = vector.shape_cast %18 : vector<1x8x15xf32> to vector<8x15xf32>
    %c0_25 = arith.constant 0 : index
    %c0_26 = arith.constant 0 : index
    %20 = vector.load %arg3[%c0_25, %c0_26] : memref<3x1xf32, #tpu.memory_space<vmem>>, vector<3x1xf32>
    %c0_27 = arith.constant 0 : index
    %c0_28 = arith.constant 0 : index
    %21 = vector.load %arg5[%c0_27, %c0_28] : memref<8x1xf32, #tpu.memory_space<vmem>>, vector<8x1xf32>
    %22 = tpu.iota {dimensions = array<i32: 1>} : vector<1x8xi32>
    %cst = arith.constant 0.000000e+00 : f32
    %23 = vector.broadcast %cst : f32 to vector<200x8xf32>
    %c0_i32 = arith.constant 0 : i32
    %c8_i32 = arith.constant 8 : i32
    %24 = arith.addi %c0_i32, %c8_i32 : i32
    %c1_i32 = arith.constant 1 : i32
    %25 = scf.for %arg14 = %c0_i32 to %24 step %c1_i32 iter_args(%arg15 = %23) -> (vector<200x8xf32>)  : i32 {
      %51 = arith.index_cast %arg14 : i32 to index
      %c0_53 = arith.constant 0 : index
      %c0_54 = arith.constant 0 : index
      %52 = vector.load %arg1[%51, %c0_53, %c0_54] : memref<8x1x1024xf32, #tpu.memory_space<vmem>>, vector<1x1x1024xf32>
      %53 = vector.shape_cast %52 : vector<1x1x1024xf32> to vector<1x1024xf32>
      %c1023_i32 = arith.constant 1023 : i32
      %54 = tpu.dynamic_rotate %53 by %c1023_i32 dim 1 : vector<1x1024xf32>, i32 -> vector<1x1024xf32>
      %c1022_i32 = arith.constant 1022 : i32
      %55 = tpu.dynamic_rotate %53 by %c1022_i32 dim 1 : vector<1x1024xf32>, i32 -> vector<1x1024xf32>
      %c1021_i32 = arith.constant 1021 : i32
      %56 = tpu.dynamic_rotate %53 by %c1021_i32 dim 1 : vector<1x1024xf32>, i32 -> vector<1x1024xf32>
      %c1020_i32 = arith.constant 1020 : i32
      %57 = tpu.dynamic_rotate %53 by %c1020_i32 dim 1 : vector<1x1024xf32>, i32 -> vector<1x1024xf32>
      %58 = tpu.concatenate %53, %54, %55, %56, %57 in 0 : vector<1x1024xf32>, vector<1x1024xf32>, vector<1x1024xf32>, vector<1x1024xf32>, vector<1x1024xf32> -> vector<5x1024xf32>
      %cst_55 = arith.constant dense<0.000000e+00> : vector<3x1024xf32>
      %59 = tpu.matmul %1, %58, %cst_55 {dimension_numbers = #tpu.dot_dimension_numbers<[1], [0], [0], [1], [0, 0, 1, 1], [], []>} : vector<3x5xf32>, vector<5x1024xf32>, vector<3x1024xf32> -> vector<3x1024xf32>
      %c992_i32 = arith.constant 992 : i32
      %60 = tpu.dynamic_rotate %53 by %c992_i32 dim 1 : vector<1x1024xf32>, i32 -> vector<1x1024xf32>
      %c991_i32 = arith.constant 991 : i32
      %61 = tpu.dynamic_rotate %53 by %c991_i32 dim 1 : vector<1x1024xf32>, i32 -> vector<1x1024xf32>
      %c990_i32 = arith.constant 990 : i32
      %62 = tpu.dynamic_rotate %53 by %c990_i32 dim 1 : vector<1x1024xf32>, i32 -> vector<1x1024xf32>
      %c989_i32 = arith.constant 989 : i32
      %63 = tpu.dynamic_rotate %53 by %c989_i32 dim 1 : vector<1x1024xf32>, i32 -> vector<1x1024xf32>
      %c988_i32 = arith.constant 988 : i32
      %64 = tpu.dynamic_rotate %53 by %c988_i32 dim 1 : vector<1x1024xf32>, i32 -> vector<1x1024xf32>
      %65 = tpu.concatenate %60, %61, %62, %63, %64 in 0 : vector<1x1024xf32>, vector<1x1024xf32>, vector<1x1024xf32>, vector<1x1024xf32>, vector<1x1024xf32> -> vector<5x1024xf32>
      %cst_56 = arith.constant dense<0.000000e+00> : vector<3x1024xf32>
      %66 = tpu.matmul %3, %65, %cst_56 {dimension_numbers = #tpu.dot_dimension_numbers<[1], [0], [0], [1], [0, 0, 1, 1], [], []>} : vector<3x5xf32>, vector<5x1024xf32>, vector<3x1024xf32> -> vector<3x1024xf32>
      %67 = arith.addf %59, %66 : vector<3x1024xf32>
      %c960_i32 = arith.constant 960 : i32
      %68 = tpu.dynamic_rotate %53 by %c960_i32 dim 1 : vector<1x1024xf32>, i32 -> vector<1x1024xf32>
      %c959_i32 = arith.constant 959 : i32
      %69 = tpu.dynamic_rotate %53 by %c959_i32 dim 1 : vector<1x1024xf32>, i32 -> vector<1x1024xf32>
      %c958_i32 = arith.constant 958 : i32
      %70 = tpu.dynamic_rotate %53 by %c958_i32 dim 1 : vector<1x1024xf32>, i32 -> vector<1x1024xf32>
      %c957_i32 = arith.constant 957 : i32
      %71 = tpu.dynamic_rotate %53 by %c957_i32 dim 1 : vector<1x1024xf32>, i32 -> vector<1x1024xf32>
      %c956_i32 = arith.constant 956 : i32
      %72 = tpu.dynamic_rotate %53 by %c956_i32 dim 1 : vector<1x1024xf32>, i32 -> vector<1x1024xf32>
      %73 = tpu.concatenate %68, %69, %70, %71, %72 in 0 : vector<1x1024xf32>, vector<1x1024xf32>, vector<1x1024xf32>, vector<1x1024xf32>, vector<1x1024xf32> -> vector<5x1024xf32>
      %cst_57 = arith.constant dense<0.000000e+00> : vector<3x1024xf32>
      %74 = tpu.matmul %5, %73, %cst_57 {dimension_numbers = #tpu.dot_dimension_numbers<[1], [0], [0], [1], [0, 0, 1, 1], [], []>} : vector<3x5xf32>, vector<5x1024xf32>, vector<3x1024xf32> -> vector<3x1024xf32>
      %75 = arith.addf %67, %74 : vector<3x1024xf32>
      %c928_i32 = arith.constant 928 : i32
      %76 = tpu.dynamic_rotate %53 by %c928_i32 dim 1 : vector<1x1024xf32>, i32 -> vector<1x1024xf32>
      %c927_i32 = arith.constant 927 : i32
      %77 = tpu.dynamic_rotate %53 by %c927_i32 dim 1 : vector<1x1024xf32>, i32 -> vector<1x1024xf32>
      %c926_i32 = arith.constant 926 : i32
      %78 = tpu.dynamic_rotate %53 by %c926_i32 dim 1 : vector<1x1024xf32>, i32 -> vector<1x1024xf32>
      %c925_i32 = arith.constant 925 : i32
      %79 = tpu.dynamic_rotate %53 by %c925_i32 dim 1 : vector<1x1024xf32>, i32 -> vector<1x1024xf32>
      %c924_i32 = arith.constant 924 : i32
      %80 = tpu.dynamic_rotate %53 by %c924_i32 dim 1 : vector<1x1024xf32>, i32 -> vector<1x1024xf32>
      %81 = tpu.concatenate %76, %77, %78, %79, %80 in 0 : vector<1x1024xf32>, vector<1x1024xf32>, vector<1x1024xf32>, vector<1x1024xf32>, vector<1x1024xf32> -> vector<5x1024xf32>
      %cst_58 = arith.constant dense<0.000000e+00> : vector<3x1024xf32>
      %82 = tpu.matmul %7, %81, %cst_58 {dimension_numbers = #tpu.dot_dimension_numbers<[1], [0], [0], [1], [0, 0, 1, 1], [], []>} : vector<3x5xf32>, vector<5x1024xf32>, vector<3x1024xf32> -> vector<3x1024xf32>
      %83 = arith.addf %75, %82 : vector<3x1024xf32>
      %c896_i32 = arith.constant 896 : i32
      %84 = tpu.dynamic_rotate %53 by %c896_i32 dim 1 : vector<1x1024xf32>, i32 -> vector<1x1024xf32>
      %c895_i32 = arith.constant 895 : i32
      %85 = tpu.dynamic_rotate %53 by %c895_i32 dim 1 : vector<1x1024xf32>, i32 -> vector<1x1024xf32>
      %c894_i32 = arith.constant 894 : i32
      %86 = tpu.dynamic_rotate %53 by %c894_i32 dim 1 : vector<1x1024xf32>, i32 -> vector<1x1024xf32>
      %c893_i32 = arith.constant 893 : i32
      %87 = tpu.dynamic_rotate %53 by %c893_i32 dim 1 : vector<1x1024xf32>, i32 -> vector<1x1024xf32>
      %c892_i32 = arith.constant 892 : i32
      %88 = tpu.dynamic_rotate %53 by %c892_i32 dim 1 : vector<1x1024xf32>, i32 -> vector<1x1024xf32>
      %89 = tpu.concatenate %84, %85, %86, %87, %88 in 0 : vector<1x1024xf32>, vector<1x1024xf32>, vector<1x1024xf32>, vector<1x1024xf32>, vector<1x1024xf32> -> vector<5x1024xf32>
      %cst_59 = arith.constant dense<0.000000e+00> : vector<3x1024xf32>
      %90 = tpu.matmul %9, %89, %cst_59 {dimension_numbers = #tpu.dot_dimension_numbers<[1], [0], [0], [1], [0, 0, 1, 1], [], []>} : vector<3x5xf32>, vector<5x1024xf32>, vector<3x1024xf32> -> vector<3x1024xf32>
      %91 = arith.addf %83, %90 : vector<3x1024xf32>
      %92 = vector.broadcast %20 : vector<3x1xf32> to vector<3x1024xf32>
      %93 = arith.addf %91, %92 : vector<3x1024xf32>
      %cst_60 = arith.constant 0.000000e+00 : f32
      %94 = vector.broadcast %cst_60 : f32 to vector<3x1024xf32>
      %95 = arith.maximumf %93, %94 : vector<3x1024xf32>
      %c1023_i32_61 = arith.constant 1023 : i32
      %96 = tpu.dynamic_rotate %95 by %c1023_i32_61 dim 1 : vector<3x1024xf32>, i32 -> vector<3x1024xf32>
      %97 = arith.maximumf %95, %96 : vector<3x1024xf32>
      %c992_i32_62 = arith.constant 992 : i32
      %98 = tpu.dynamic_rotate %95 by %c992_i32_62 dim 1 : vector<3x1024xf32>, i32 -> vector<3x1024xf32>
      %c991_i32_63 = arith.constant 991 : i32
      %99 = tpu.dynamic_rotate %95 by %c991_i32_63 dim 1 : vector<3x1024xf32>, i32 -> vector<3x1024xf32>
      %100 = arith.maximumf %98, %99 : vector<3x1024xf32>
      %101 = arith.maximumf %97, %100 : vector<3x1024xf32>
      %c1022_i32_64 = arith.constant 1022 : i32
      %102 = tpu.dynamic_rotate %101 by %c1022_i32_64 dim 1 : vector<3x1024xf32>, i32 -> vector<3x1024xf32>
      %c1020_i32_65 = arith.constant 1020 : i32
      %103 = tpu.dynamic_rotate %101 by %c1020_i32_65 dim 1 : vector<3x1024xf32>, i32 -> vector<3x1024xf32>
      %c1018_i32 = arith.constant 1018 : i32
      %104 = tpu.dynamic_rotate %101 by %c1018_i32 dim 1 : vector<3x1024xf32>, i32 -> vector<3x1024xf32>
      %c1016_i32 = arith.constant 1016 : i32
      %105 = tpu.dynamic_rotate %101 by %c1016_i32 dim 1 : vector<3x1024xf32>, i32 -> vector<3x1024xf32>
      %106 = tpu.concatenate %101, %102, %103, %104, %105 in 0 : vector<3x1024xf32>, vector<3x1024xf32>, vector<3x1024xf32>, vector<3x1024xf32>, vector<3x1024xf32> -> vector<15x1024xf32>
      %cst_66 = arith.constant dense<0.000000e+00> : vector<8x1024xf32>
      %107 = tpu.matmul %11, %106, %cst_66 {dimension_numbers = #tpu.dot_dimension_numbers<[1], [0], [0], [1], [0, 0, 1, 1], [], []>} : vector<8x15xf32>, vector<15x1024xf32>, vector<8x1024xf32> -> vector<8x1024xf32>
      %c960_i32_67 = arith.constant 960 : i32
      %108 = tpu.dynamic_rotate %101 by %c960_i32_67 dim 1 : vector<3x1024xf32>, i32 -> vector<3x1024xf32>
      %c958_i32_68 = arith.constant 958 : i32
      %109 = tpu.dynamic_rotate %101 by %c958_i32_68 dim 1 : vector<3x1024xf32>, i32 -> vector<3x1024xf32>
      %c956_i32_69 = arith.constant 956 : i32
      %110 = tpu.dynamic_rotate %101 by %c956_i32_69 dim 1 : vector<3x1024xf32>, i32 -> vector<3x1024xf32>
      %c954_i32 = arith.constant 954 : i32
      %111 = tpu.dynamic_rotate %101 by %c954_i32 dim 1 : vector<3x1024xf32>, i32 -> vector<3x1024xf32>
      %c952_i32 = arith.constant 952 : i32
      %112 = tpu.dynamic_rotate %101 by %c952_i32 dim 1 : vector<3x1024xf32>, i32 -> vector<3x1024xf32>
      %113 = tpu.concatenate %108, %109, %110, %111, %112 in 0 : vector<3x1024xf32>, vector<3x1024xf32>, vector<3x1024xf32>, vector<3x1024xf32>, vector<3x1024xf32> -> vector<15x1024xf32>
      %cst_70 = arith.constant dense<0.000000e+00> : vector<8x1024xf32>
      %114 = tpu.matmul %13, %113, %cst_70 {dimension_numbers = #tpu.dot_dimension_numbers<[1], [0], [0], [1], [0, 0, 1, 1], [], []>} : vector<8x15xf32>, vector<15x1024xf32>, vector<8x1024xf32> -> vector<8x1024xf32>
      %115 = arith.addf %107, %114 : vector<8x1024xf32>
      %c896_i32_71 = arith.constant 896 : i32
      %116 = tpu.dynamic_rotate %101 by %c896_i32_71 dim 1 : vector<3x1024xf32>, i32 -> vector<3x1024xf32>
      %c894_i32_72 = arith.constant 894 : i32
      %117 = tpu.dynamic_rotate %101 by %c894_i32_72 dim 1 : vector<3x1024xf32>, i32 -> vector<3x1024xf32>
      %c892_i32_73 = arith.constant 892 : i32
      %118 = tpu.dynamic_rotate %101 by %c892_i32_73 dim 1 : vector<3x1024xf32>, i32 -> vector<3x1024xf32>
      %c890_i32 = arith.constant 890 : i32
      %119 = tpu.dynamic_rotate %101 by %c890_i32 dim 1 : vector<3x1024xf32>, i32 -> vector<3x1024xf32>
      %c888_i32 = arith.constant 888 : i32
      %120 = tpu.dynamic_rotate %101 by %c888_i32 dim 1 : vector<3x1024xf32>, i32 -> vector<3x1024xf32>
      %121 = tpu.concatenate %116, %117, %118, %119, %120 in 0 : vector<3x1024xf32>, vector<3x1024xf32>, vector<3x1024xf32>, vector<3x1024xf32>, vector<3x1024xf32> -> vector<15x1024xf32>
      %cst_74 = arith.constant dense<0.000000e+00> : vector<8x1024xf32>
      %122 = tpu.matmul %15, %121, %cst_74 {dimension_numbers = #tpu.dot_dimension_numbers<[1], [0], [0], [1], [0, 0, 1, 1], [], []>} : vector<8x15xf32>, vector<15x1024xf32>, vector<8x1024xf32> -> vector<8x1024xf32>
      %123 = arith.addf %115, %122 : vector<8x1024xf32>
      %c832_i32 = arith.constant 832 : i32
      %124 = tpu.dynamic_rotate %101 by %c832_i32 dim 1 : vector<3x1024xf32>, i32 -> vector<3x1024xf32>
      %c830_i32 = arith.constant 830 : i32
      %125 = tpu.dynamic_rotate %101 by %c830_i32 dim 1 : vector<3x1024xf32>, i32 -> vector<3x1024xf32>
      %c828_i32 = arith.constant 828 : i32
      %126 = tpu.dynamic_rotate %101 by %c828_i32 dim 1 : vector<3x1024xf32>, i32 -> vector<3x1024xf32>
      %c826_i32 = arith.constant 826 : i32
      %127 = tpu.dynamic_rotate %101 by %c826_i32 dim 1 : vector<3x1024xf32>, i32 -> vector<3x1024xf32>
      %c824_i32 = arith.constant 824 : i32
      %128 = tpu.dynamic_rotate %101 by %c824_i32 dim 1 : vector<3x1024xf32>, i32 -> vector<3x1024xf32>
      %129 = tpu.concatenate %124, %125, %126, %127, %128 in 0 : vector<3x1024xf32>, vector<3x1024xf32>, vector<3x1024xf32>, vector<3x1024xf32>, vector<3x1024xf32> -> vector<15x1024xf32>
      %cst_75 = arith.constant dense<0.000000e+00> : vector<8x1024xf32>
      %130 = tpu.matmul %17, %129, %cst_75 {dimension_numbers = #tpu.dot_dimension_numbers<[1], [0], [0], [1], [0, 0, 1, 1], [], []>} : vector<8x15xf32>, vector<15x1024xf32>, vector<8x1024xf32> -> vector<8x1024xf32>
      %131 = arith.addf %123, %130 : vector<8x1024xf32>
      %c768_i32 = arith.constant 768 : i32
      %132 = tpu.dynamic_rotate %101 by %c768_i32 dim 1 : vector<3x1024xf32>, i32 -> vector<3x1024xf32>
      %c766_i32 = arith.constant 766 : i32
      %133 = tpu.dynamic_rotate %101 by %c766_i32 dim 1 : vector<3x1024xf32>, i32 -> vector<3x1024xf32>
      %c764_i32 = arith.constant 764 : i32
      %134 = tpu.dynamic_rotate %101 by %c764_i32 dim 1 : vector<3x1024xf32>, i32 -> vector<3x1024xf32>
      %c762_i32 = arith.constant 762 : i32
      %135 = tpu.dynamic_rotate %101 by %c762_i32 dim 1 : vector<3x1024xf32>, i32 -> vector<3x1024xf32>
      %c760_i32 = arith.constant 760 : i32
      %136 = tpu.dynamic_rotate %101 by %c760_i32 dim 1 : vector<3x1024xf32>, i32 -> vector<3x1024xf32>
      %137 = tpu.concatenate %132, %133, %134, %135, %136 in 0 : vector<3x1024xf32>, vector<3x1024xf32>, vector<3x1024xf32>, vector<3x1024xf32>, vector<3x1024xf32> -> vector<15x1024xf32>
      %cst_76 = arith.constant dense<0.000000e+00> : vector<8x1024xf32>
      %138 = tpu.matmul %19, %137, %cst_76 {dimension_numbers = #tpu.dot_dimension_numbers<[1], [0], [0], [1], [0, 0, 1, 1], [], []>} : vector<8x15xf32>, vector<15x1024xf32>, vector<8x1024xf32> -> vector<8x1024xf32>
      %139 = arith.addf %131, %138 : vector<8x1024xf32>
      %140 = vector.broadcast %21 : vector<8x1xf32> to vector<8x1024xf32>
      %141 = arith.addf %139, %140 : vector<8x1024xf32>
      %cst_77 = arith.constant 0.000000e+00 : f32
      %142 = vector.broadcast %cst_77 : f32 to vector<8x1024xf32>
      %143 = arith.maximumf %141, %142 : vector<8x1024xf32>
      %c1022_i32_78 = arith.constant 1022 : i32
      %144 = tpu.dynamic_rotate %143 by %c1022_i32_78 dim 1 : vector<8x1024xf32>, i32 -> vector<8x1024xf32>
      %145 = arith.maximumf %143, %144 : vector<8x1024xf32>
      %c960_i32_79 = arith.constant 960 : i32
      %146 = tpu.dynamic_rotate %143 by %c960_i32_79 dim 1 : vector<8x1024xf32>, i32 -> vector<8x1024xf32>
      %c958_i32_80 = arith.constant 958 : i32
      %147 = tpu.dynamic_rotate %143 by %c958_i32_80 dim 1 : vector<8x1024xf32>, i32 -> vector<8x1024xf32>
      %148 = arith.maximumf %146, %147 : vector<8x1024xf32>
      %149 = arith.maximumf %145, %148 : vector<8x1024xf32>
      %150 = vector.extract_strided_slice %149 {offsets = [0, 0], sizes = [8, 1], strides = [1, 1]} : vector<8x1024xf32> to vector<8x1xf32>
      %151 = vector.extract_strided_slice %149 {offsets = [0, 4], sizes = [8, 1], strides = [1, 1]} : vector<8x1024xf32> to vector<8x1xf32>
      %152 = vector.extract_strided_slice %149 {offsets = [0, 8], sizes = [8, 1], strides = [1, 1]} : vector<8x1024xf32> to vector<8x1xf32>
      %153 = vector.extract_strided_slice %149 {offsets = [0, 12], sizes = [8, 1], strides = [1, 1]} : vector<8x1024xf32> to vector<8x1xf32>
      %154 = vector.extract_strided_slice %149 {offsets = [0, 16], sizes = [8, 1], strides = [1, 1]} : vector<8x1024xf32> to vector<8x1xf32>
      %155 = vector.extract_strided_slice %149 {offsets = [0, 128], sizes = [8, 1], strides = [1, 1]} : vector<8x1024xf32> to vector<8x1xf32>
      %156 = vector.extract_strided_slice %149 {offsets = [0, 132], sizes = [8, 1], strides = [1, 1]} : vector<8x1024xf32> to vector<8x1xf32>
      %157 = vector.extract_strided_slice %149 {offsets = [0, 136], sizes = [8, 1], strides = [1, 1]} : vector<8x1024xf32> to vector<8x1xf32>
      %158 = vector.extract_strided_slice %149 {offsets = [0, 140], sizes = [8, 1], strides = [1, 1]} : vector<8x1024xf32> to vector<8x1xf32>
      %159 = vector.extract_strided_slice %149 {offsets = [0, 144], sizes = [8, 1], strides = [1, 1]} : vector<8x1024xf32> to vector<8x1xf32>
      %160 = vector.extract_strided_slice %149 {offsets = [0, 256], sizes = [8, 1], strides = [1, 1]} : vector<8x1024xf32> to vector<8x1xf32>
      %161 = vector.extract_strided_slice %149 {offsets = [0, 260], sizes = [8, 1], strides = [1, 1]} : vector<8x1024xf32> to vector<8x1xf32>
      %162 = vector.extract_strided_slice %149 {offsets = [0, 264], sizes = [8, 1], strides = [1, 1]} : vector<8x1024xf32> to vector<8x1xf32>
      %163 = vector.extract_strided_slice %149 {offsets = [0, 268], sizes = [8, 1], strides = [1, 1]} : vector<8x1024xf32> to vector<8x1xf32>
      %164 = vector.extract_strided_slice %149 {offsets = [0, 272], sizes = [8, 1], strides = [1, 1]} : vector<8x1024xf32> to vector<8x1xf32>
      %165 = vector.extract_strided_slice %149 {offsets = [0, 384], sizes = [8, 1], strides = [1, 1]} : vector<8x1024xf32> to vector<8x1xf32>
      %166 = vector.extract_strided_slice %149 {offsets = [0, 388], sizes = [8, 1], strides = [1, 1]} : vector<8x1024xf32> to vector<8x1xf32>
      %167 = vector.extract_strided_slice %149 {offsets = [0, 392], sizes = [8, 1], strides = [1, 1]} : vector<8x1024xf32> to vector<8x1xf32>
      %168 = vector.extract_strided_slice %149 {offsets = [0, 396], sizes = [8, 1], strides = [1, 1]} : vector<8x1024xf32> to vector<8x1xf32>
      %169 = vector.extract_strided_slice %149 {offsets = [0, 400], sizes = [8, 1], strides = [1, 1]} : vector<8x1024xf32> to vector<8x1xf32>
      %170 = vector.extract_strided_slice %149 {offsets = [0, 512], sizes = [8, 1], strides = [1, 1]} : vector<8x1024xf32> to vector<8x1xf32>
      %171 = vector.extract_strided_slice %149 {offsets = [0, 516], sizes = [8, 1], strides = [1, 1]} : vector<8x1024xf32> to vector<8x1xf32>
      %172 = vector.extract_strided_slice %149 {offsets = [0, 520], sizes = [8, 1], strides = [1, 1]} : vector<8x1024xf32> to vector<8x1xf32>
      %173 = vector.extract_strided_slice %149 {offsets = [0, 524], sizes = [8, 1], strides = [1, 1]} : vector<8x1024xf32> to vector<8x1xf32>
      %174 = vector.extract_strided_slice %149 {offsets = [0, 528], sizes = [8, 1], strides = [1, 1]} : vector<8x1024xf32> to vector<8x1xf32>
      %175 = tpu.concatenate %150, %151, %152, %153, %154, %155, %156, %157, %158, %159, %160, %161, %162, %163, %164, %165 in 0 : vector<8x1xf32>, vector<8x1xf32>, vector<8x1xf32>, vector<8x1xf32>, vector<8x1xf32>, vector<8x1xf32>, vector<8x1xf32>, vector<8x1xf32>, vector<8x1xf32>, vector<8x1xf32>, vector<8x1xf32>, vector<8x1xf32>, vector<8x1xf32>, vector<8x1xf32>, vector<8x1xf32>, vector<8x1xf32> -> vector<128x1xf32>
      %176 = tpu.concatenate %166, %167, %168, %169, %170, %171, %172, %173, %174 in 0 : vector<8x1xf32>, vector<8x1xf32>, vector<8x1xf32>, vector<8x1xf32>, vector<8x1xf32>, vector<8x1xf32>, vector<8x1xf32>, vector<8x1xf32>, vector<8x1xf32> -> vector<72x1xf32>
      %177 = tpu.concatenate %175, %176 in 0 : vector<128x1xf32>, vector<72x1xf32> -> vector<200x1xf32>
      %178 = vector.broadcast %arg14 : i32 to vector<1x8xi32>
      %179 = arith.cmpi eq, %22, %178 : vector<1x8xi32>
      %180 = vector.shape_cast %179 : vector<1x8xi1> to vector<1x8xi1>
      %181 = vector.broadcast %180 : vector<1x8xi1> to vector<200x8xi1>
      %182 = vector.shape_cast %177 : vector<200x1xf32> to vector<200x1xf32>
      %183 = vector.broadcast %182 : vector<200x1xf32> to vector<200x8xf32>
      %184 = arith.select %181, %183, %arg15 : vector<200x8xi1>, vector<200x8xf32>
      scf.yield %184 : vector<200x8xf32>
    }
    %c8_i32_29 = arith.constant 8 : i32
    %c0_30 = arith.constant 0 : index
    %c0_31 = arith.constant 0 : index
    %26 = vector.load %arg6[%c0_30, %c0_31] : memref<60x200xf32, #tpu.memory_space<vmem>>, vector<60x200xf32>
    %cst_32 = arith.constant dense<0.000000e+00> : vector<60x8xf32>
    %27 = tpu.matmul %26, %25, %cst_32 {dimension_numbers = #tpu.dot_dimension_numbers<[1], [0], [0], [1], [0, 0, 1, 1], [], []>} : vector<60x200xf32>, vector<200x8xf32>, vector<60x8xf32> -> vector<60x8xf32>
    %c0_33 = arith.constant 0 : index
    %c0_34 = arith.constant 0 : index
    %28 = vector.load %arg7[%c0_33, %c0_34] : memref<60x1xf32, #tpu.memory_space<vmem>>, vector<60x1xf32>
    %29 = vector.broadcast %28 : vector<60x1xf32> to vector<60x8xf32>
    %30 = arith.addf %27, %29 : vector<60x8xf32>
    %cst_35 = arith.constant 0.000000e+00 : f32
    %31 = vector.broadcast %cst_35 : f32 to vector<60x8xf32>
    %32 = arith.maximumf %30, %31 : vector<60x8xf32>
    %c0_36 = arith.constant 0 : index
    %c0_37 = arith.constant 0 : index
    %33 = vector.load %arg8[%c0_36, %c0_37] : memref<42x60xf32, #tpu.memory_space<vmem>>, vector<42x60xf32>
    %cst_38 = arith.constant dense<0.000000e+00> : vector<42x8xf32>
    %34 = tpu.matmul %33, %32, %cst_38 {dimension_numbers = #tpu.dot_dimension_numbers<[1], [0], [0], [1], [0, 0, 1, 1], [], []>} : vector<42x60xf32>, vector<60x8xf32>, vector<42x8xf32> -> vector<42x8xf32>
    %c0_39 = arith.constant 0 : index
    %c0_40 = arith.constant 0 : index
    %35 = vector.load %arg9[%c0_39, %c0_40] : memref<42x1xf32, #tpu.memory_space<vmem>>, vector<42x1xf32>
    %36 = vector.broadcast %35 : vector<42x1xf32> to vector<42x8xf32>
    %37 = arith.addf %34, %36 : vector<42x8xf32>
    %cst_41 = arith.constant 0.000000e+00 : f32
    %38 = vector.broadcast %cst_41 : f32 to vector<42x8xf32>
    %39 = arith.maximumf %37, %38 : vector<42x8xf32>
    %c0_42 = arith.constant 0 : index
    %c0_43 = arith.constant 0 : index
    %40 = vector.load %arg10[%c0_42, %c0_43] : memref<10x42xf32, #tpu.memory_space<vmem>>, vector<10x42xf32>
    %cst_44 = arith.constant dense<0.000000e+00> : vector<10x8xf32>
    %41 = tpu.matmul %40, %39, %cst_44 {dimension_numbers = #tpu.dot_dimension_numbers<[1], [0], [0], [1], [0, 0, 1, 1], [], []>} : vector<10x42xf32>, vector<42x8xf32>, vector<10x8xf32> -> vector<10x8xf32>
    %c0_45 = arith.constant 0 : index
    %c0_46 = arith.constant 0 : index
    %42 = vector.load %arg11[%c0_45, %c0_46] : memref<10x1xf32, #tpu.memory_space<vmem>>, vector<10x1xf32>
    %43 = vector.broadcast %42 : vector<10x1xf32> to vector<10x8xf32>
    %44 = arith.addf %41, %43 : vector<10x8xf32>
    %c0_47 = arith.constant 0 : index
    %c0_48 = arith.constant 0 : index
    %c0_49 = arith.constant 0 : index
    %45 = vector.load %arg12[%c0_47, %c0_48, %c0_49] : memref<1x10x8xf32, #tpu.memory_space<vmem>>, vector<1x10x8xf32>
    %46 = vector.shape_cast %45 : vector<1x10x8xf32> to vector<10x8xf32>
    %47 = vector.shape_cast %44 : vector<10x8xf32> to vector<1x10x8xf32>
    tpu.vector_store %arg12[%c0_47, %c0_48, %c0_49], %47 {strides = array<i32>} : memref<1x10x8xf32, #tpu.memory_space<vmem>>, vector<1x10x8xf32>,
    %c0_50 = arith.constant 0 : index
    %c0_51 = arith.constant 0 : index
    %c0_52 = arith.constant 0 : index
    %48 = vector.load %arg13[%c0_50, %c0_51, %c0_52] : memref<1x60x8xf32, #tpu.memory_space<vmem>>, vector<1x60x8xf32>
    %49 = vector.shape_cast %48 : vector<1x60x8xf32> to vector<60x8xf32>
    %50 = vector.shape_cast %32 : vector<60x8xf32> to vector<1x60x8xf32>
    tpu.vector_store %arg13[%c0_50, %c0_51, %c0_52], %50 {strides = array<i32>} : memref<1x60x8xf32, #tpu.memory_space<vmem>>, vector<1x60x8xf32>,
    return
  }
  func.func @transform_0(%arg0: i32) -> (i32, i32, i32) {
    %c0_i32 = arith.constant 0 : i32
    %c0_i32_0 = arith.constant 0 : i32
    %c0_i32_1 = arith.constant 0 : i32
    return %arg0, %c0_i32, %c0_i32_0 : i32, i32, i32
  }
  func.func @transform_1(%arg0: i32) -> (i32, i32, i32) {
    %c0_i32 = arith.constant 0 : i32
    %c0_i32_0 = arith.constant 0 : i32
    %c0_i32_1 = arith.constant 0 : i32
    %c0_i32_2 = arith.constant 0 : i32
    return %c0_i32, %c0_i32_0, %c0_i32_1 : i32, i32, i32
  }
  func.func @transform_2(%arg0: i32) -> (i32, i32) {
    %c0_i32 = arith.constant 0 : i32
    %c0_i32_0 = arith.constant 0 : i32
    %c0_i32_1 = arith.constant 0 : i32
    return %c0_i32, %c0_i32_0 : i32, i32
  }
  func.func @transform_3(%arg0: i32) -> (i32, i32, i32) {
    %c0_i32 = arith.constant 0 : i32
    %c0_i32_0 = arith.constant 0 : i32
    %c0_i32_1 = arith.constant 0 : i32
    %c0_i32_2 = arith.constant 0 : i32
    return %c0_i32, %c0_i32_0, %c0_i32_1 : i32, i32, i32
  }
  func.func @transform_4(%arg0: i32) -> (i32, i32) {
    %c0_i32 = arith.constant 0 : i32
    %c0_i32_0 = arith.constant 0 : i32
    %c0_i32_1 = arith.constant 0 : i32
    return %c0_i32, %c0_i32_0 : i32, i32
  }
  func.func @transform_5(%arg0: i32) -> (i32, i32) {
    %c0_i32 = arith.constant 0 : i32
    %c0_i32_0 = arith.constant 0 : i32
    %c0_i32_1 = arith.constant 0 : i32
    return %c0_i32, %c0_i32_0 : i32, i32
  }
  func.func @transform_6(%arg0: i32) -> (i32, i32) {
    %c0_i32 = arith.constant 0 : i32
    %c0_i32_0 = arith.constant 0 : i32
    %c0_i32_1 = arith.constant 0 : i32
    return %c0_i32, %c0_i32_0 : i32, i32
  }
  func.func @transform_7(%arg0: i32) -> (i32, i32) {
    %c0_i32 = arith.constant 0 : i32
    %c0_i32_0 = arith.constant 0 : i32
    %c0_i32_1 = arith.constant 0 : i32
    return %c0_i32, %c0_i32_0 : i32, i32
  }
  func.func @transform_8(%arg0: i32) -> (i32, i32) {
    %c0_i32 = arith.constant 0 : i32
    %c0_i32_0 = arith.constant 0 : i32
    %c0_i32_1 = arith.constant 0 : i32
    return %c0_i32, %c0_i32_0 : i32, i32
  }
  func.func @transform_9(%arg0: i32) -> (i32, i32) {
    %c0_i32 = arith.constant 0 : i32
    %c0_i32_0 = arith.constant 0 : i32
    %c0_i32_1 = arith.constant 0 : i32
    return %c0_i32, %c0_i32_0 : i32, i32
  }
  func.func @transform_10(%arg0: i32) -> (i32, i32) {
    %c0_i32 = arith.constant 0 : i32
    %c0_i32_0 = arith.constant 0 : i32
    %c0_i32_1 = arith.constant 0 : i32
    return %c0_i32, %c0_i32_0 : i32, i32
  }
  func.func @transform_11(%arg0: i32) -> (i32, i32, i32) {
    %c0_i32 = arith.constant 0 : i32
    %c0_i32_0 = arith.constant 0 : i32
    %c0_i32_1 = arith.constant 0 : i32
    return %arg0, %c0_i32, %c0_i32_0 : i32, i32, i32
  }
  func.func @transform_12(%arg0: i32) -> (i32, i32, i32) {
    %c0_i32 = arith.constant 0 : i32
    %c0_i32_0 = arith.constant 0 : i32
    %c0_i32_1 = arith.constant 0 : i32
    return %arg0, %c0_i32, %c0_i32_0 : i32, i32, i32
  }
}

</mosaic_0001>

<bundles_post_ra>
// kernel: _fused_forward.1
= control target key start
LH: loop header
LB: loop body
LE: loop exit
PB: predicated region body
PF: predicated region fallthrough
CT: control target
= control target key end

     0   :  { %v9069_v0 = vlaneseq  ;;  %v6460_v14 = vmov 0.0   ;;  %v6462_v15 = vmov 0.0   ;;  %v6464_v16 = vmov 0.0   ;;  %s9056_s0 = inlined_call_operand.vmem [shape: f32[8,1,1024], index: 0, kind: input, shape index: {}]   ;;  %s9057_s1 = inlined_call_operand.vmem [shape: f32[5,3,5], index: 1, kind: input, shape index: {}]   ;;  %s9058_s3 = inlined_call_operand.vmem [shape: f32[5,8,15], index: 3, kind: input, shape index: {}]   ;;  %s9059_s5 = inlined_call_operand.vmem [shape: f32[60,200], index: 5, kind: input, shape index: {}]   ;;  %s9060_s6 = inlined_call_operand.vmem [shape: f32[60,1], index: 6, kind: input, shape index: {}]   ;;  %s9061_s7 = inlined_call_operand.vmem [shape: f32[42,60], index: 7, kind: input, shape index: {}]   ;;  %s9062_s8 = inlined_call_operand.vmem [shape: f32[42,1], index: 8, kind: input, shape index: {}]   ;;  %s9063_s9 = inlined_call_operand.vmem [shape: f32[10,42], index: 9, kind: input, shape index: {}]   ;;  %s9064_s10 = inlined_call_operand.vmem [shape: f32[10,1], index: 10, kind: input, shape index: {}]   ;;  %s9065_s11 = inlined_call_operand.vmem [shape: f32[1,10,8], index: 11, kind: output, shape index: {0}]   ;;  %s9066_s12 = inlined_call_operand.vmem [shape: f32[1,60,8], index: 12, kind: output, shape index: {1}]   ;;  %s9067_s2 = inlined_call_operand.vmem [shape: f32[3,1], index: 2, kind: input, shape index: {}]   ;;  %s9068_s4 = inlined_call_operand.vmem [shape: f32[8,1], index: 4, kind: input, shape index: {}]  }
   0x1   :  { %v6400_v1 = vld [vmem:[%s9057_s1] sm:$0x7]  ;;  %v6405_v2 = vld [vmem:[%s9057_s1 + $0x4] sm:$0x7]  ;;  %v6410_v3 = vld [vmem:[%s9057_s1 + $0x8] sm:$0x7] }
   0x2   :  { %9090 = vst [vmem:[#allocation2_spill] sm:$0xff] %v6400_v1  ;;  %9091 = vst [vmem:[#allocation3_spill] sm:$0xff] %v6405_v2  ;;  %v6415_v4 = vld [vmem:[%s9057_s1 + $0xc] sm:$0x7]  ;;  %v6420_v5 = vld [vmem:[%s9057_s1 + $0x10] sm:$0x7] }
   0x3   :  { %9092 = vst [vmem:[#allocation4_spill] sm:$0xff] %v6410_v3  ;;  %9093 = vst [vmem:[#allocation5_spill] sm:$0xff] %v6415_v4  ;;  %v6425_v6 = vld [vmem:[%s9058_s3] sm:$0xff]  ;;  %v6428_v7 = vand.u32 127, %v9069_v0  ;;  %v6433_v8 = vld [vmem:[%s9058_s3 + $0x8] sm:$0xff]  ;;  %v6466_v17 = vmov 0.0  }
   0x4   :  { %9094 = vst [vmem:[#allocation6_spill] sm:$0xff] %v6420_v5  ;;  %v6438_v9 = vld [vmem:[%s9058_s3 + $0x10] sm:$0xff]  ;;  %v6443_v10 = vld [vmem:[%s9058_s3 + $0x18] sm:$0xff]  ;;  %v6448_v11 = vld [vmem:[%s9058_s3 + $0x20] sm:$0xff]  ;;  %v6468_v18 = vmov 0.0   ;;  %v6470_v19 = vmov 0.0  }
   0x5   :  { %9095 = vst [vmem:[#allocation7_spill] sm:$0xff] %v6448_v11  ;;  %v6453_v12 = vld [vmem:[%s9067_s2] sm:$0x7]  ;;  %v6472_v20 = vmov 0.0   ;;  %v6474_v21 = vmov 0.0   ;;  %v6476_v22 = vmov 0.0  }
   0x6   :  { %9096 = vst [vmem:[#allocation8_spill] sm:$0xff] %v6453_v12  ;;  %v6458_v13 = vld [vmem:[%s9068_s4] sm:$0xff]  ;;  %v6478_v23 = vmov 0.0   ;;  %v6480_v24 = vmov 0.0   ;;  %v6482_v25 = vmov 0.0   ;;  %v6484_v26 = vmov 0.0  }
   0x7   :  { %9097 = vst [vmem:[#allocation9_spill] sm:$0xff] %v6458_v13  ;;  %v6486_v27 = vmov 0.0   ;;  %v6488_v28 = vmov 0.0   ;;  %v6490_v29 = vmov 0.0   ;;  %v6492_v30 = vmov 0.0   ;;  %s6510_s2 = smov 0  }
   0x8   :  { %v6494_v31 = vmov 0.0   ;;  %v6496_v32 = vmov 0.0   ;;  %v6498_v33 = vmov 0.0   ;;  %v6500_v34 = vmov 0.0  }
   0x9   :  { %v6502_v35 = vmov 0.0   ;;  %v6504_v36 = vmov 0.0   ;;  %v6506_v37 = vmov 0.0   ;;  %v6508_v38 = vmov 0.0  }
   0xa LB: > { %v9099_v4 = vld [vmem:[#allocation5_spill] sm:$0xff]  ;;  %v9100_v3 = vld [vmem:[#allocation4_spill] sm:$0xff]  ;;  %v9101_v2 = vld [vmem:[#allocation3_spill] sm:$0xff]  ;;  %9103 = vst [vmem:[#allocation10_spill] sm:$0xff] %v6197_v14  ;;  %v9128_v0 = vlaneseq  ;;  %s5251_s3 = sshll.u32 %s6297_s2, 3  ;;  %s6299_s28 = smov 95   ;;  %v6213_v18 = vphi %v6468_v18, %v9245_v18   ;;  %v6209_v17 = vphi %v6466_v17, %v9244_v17   ;;  %v6205_v16 = vphi %v6464_v16, %v9243_v16   ;;  %v6201_v15 = vphi %v6462_v15, %v9242_v15   ;;  %v6197_v14 = vphi %v6460_v14, %v9241_v14   ;;  %s6297_s2 = sphi %s6510_s2, %s67_s2   ;;  %v6293_v38 = vphi %v6508_v38, %v9265_v38   ;;  %v6289_v37 = vphi %v6506_v37, %v9264_v37   ;;  %v6285_v36 = vphi %v6504_v36, %v9263_v36   ;;  %v6281_v35 = vphi %v6502_v35, %v9262_v35   ;;  %v6277_v34 = vphi %v6500_v34, %v9261_v34   ;;  %v6273_v33 = vphi %v6498_v33, %v9260_v33   ;;  %v6269_v32 = vphi %v6496_v32, %v9259_v32   ;;  %v6265_v31 = vphi %v6494_v31, %v9258_v31   ;;  %v6261_v30 = vphi %v6492_v30, %v9257_v30   ;;  %v6257_v29 = vphi %v6490_v29, %v9256_v29   ;;  %v6253_v28 = vphi %v6488_v28, %v9255_v28   ;;  %v6249_v27 = vphi %v6486_v27, %v9254_v27   ;;  %v6245_v26 = vphi %v6484_v26, %v9253_v26   ;;  %v6241_v25 = vphi %v6482_v25, %v9252_v25   ;;  %v6237_v24 = vphi %v6480_v24, %v9251_v24   ;;  %v6233_v23 = vphi %v6478_v23, %v9250_v23   ;;  %v6229_v22 = vphi %v6476_v22, %v9249_v22   ;;  %v6225_v21 = vphi %v6474_v21, %v9248_v21   ;;  %v6221_v20 = vphi %v6472_v20, %v9247_v20   ;;  %v6217_v19 = vphi %v6470_v19, %v9246_v19  }
   0xb   : > { %v9098_v5 = vld [vmem:[#allocation6_spill] sm:$0xff]  ;;  %9104 = vst [vmem:[#allocation11_spill] sm:$0xff] %v6201_v15  ;;  %9105 = vst [vmem:[#allocation12_spill] sm:$0xff] %v6205_v16  ;;  %s94_s27 = scalar_lea.vmem %s9056_s0, %s5251_s3  ;;  %s6300_s29 = smov 94   ;;  %v9070_v53 = vmov 0.0   ;;  %vm410_vm0 = vcmp.lt.s32.totalorder %v6428_v7, 95 }
   0xc   : > { %v9102_v1 = vld [vmem:[#allocation2_spill] sm:$0xff]  ;;  %9106 = vst [vmem:[#allocation13_spill] sm:$0xff] %v6209_v17  ;;  %9107 = vst [vmem:[#allocation14_spill] sm:$0xff] %v6213_v18  ;;  %v98_v39 = vshrl.u32 %v9128_v0, 7  ;;  %s6301_s30 = smov 96   ;;  %s6302_s13 = smov 93   ;;  %715 = vmatprep.mubr.f32.mxu1 %v9070_v53  ;;  %1026 = vmatprep.mubr.f32.mxu0 %v9070_v53 }
   0xd   : > { %9108 = vst [vmem:[#allocation15_spill] sm:$0xff] %v6217_v19  ;;  %9109 = vst [vmem:[#allocation16_spill] sm:$0xff] %v6221_v20  ;;  %v95_v44 = vld [vmem:[%s94_s27] sm:$0xff]  ;;  %s6303_s14 = smov 92   ;;  %s6305_s15 = smov 127   ;;  %vm385_vm1 = vcmp.lt.s32.totalorder %v6428_v7, 96 }
   0xe   : > { %9110 = vst [vmem:[#allocation17_spill] sm:$0xff] %v6225_v21  ;;  %9111 = vst [vmem:[#allocation18_spill] sm:$0xff] %v6229_v22  ;;  %v103_v40 = vsub.s32 1, %v98_v39  ;;  %v99_v41 = vsub.s32 0, %v98_v39  ;;  %v107_v42 = vsub.s32 2, %v98_v39  ;;  %v127_v43 = vsub.s32 7, %v98_v39 }
   0xf   : > { %9112 = vst [vmem:[#allocation19_spill] sm:$0xff] %v6233_v23  ;;  %9113 = vst [vmem:[#allocation20_spill] sm:$0xff] %v6237_v24  ;;  %v111_v49 = vsub.s32 3, %v98_v39  ;;  %v115_v50 = vsub.s32 4, %v98_v39  ;;  %v119_v54 = vsub.s32 5, %v98_v39  ;;  %v123_v56 = vsub.s32 6, %v98_v39 }
  0x10   : > { %9114 = vst [vmem:[#allocation21_spill] sm:$0xff] %v6241_v25  ;;  %9115 = vst [vmem:[#allocation22_spill] sm:$0xff] %v6245_v26  ;;  %v6595_v45 = vrot.slane %v95_v44, %v103_v40  ;;  %v6597_v46 = vrot.slane %v95_v44, %v99_v41  ;;  %v6599_v47 = vrot.slane %v95_v44, %v127_v43  ;;  %s6306_s16 = smov 126   ;;  %s6307_s17 = smov 125   ;;  %vm460_vm2 = vcmp.lt.s32.totalorder %v6428_v7, 93  ;;  %v9130_v12 = vld [vmem:[#allocation8_spill] sm:$0xff] }
  0x11   : > { %9116 = vst [vmem:[#allocation23_spill] sm:$0xff] %v6249_v27  ;;  %9117 = vst [vmem:[#allocation24_spill] sm:$0xff] %v6253_v28  ;;  %v6605_v48 = vrot.slane %v95_v44, %v107_v42  ;;  %v6631_v51 = vrot.slane %v95_v44, %v111_v49  ;;  %v6633_v52 = vrot.slane %v95_v44, %v115_v50  ;;  %s6308_s18 = smov 124   ;;  %vm435_vm3 = vcmp.lt.s32.totalorder %v6428_v7, 94  ;;  %s6309_s1 = smov 63   ;;  %v9131_v13 = vld [vmem:[#allocation9_spill] sm:$0xff] }
  0x12   : > { %9118 = vst [vmem:[#allocation25_spill] sm:$0xff] %v6257_v29  ;;  %9119 = vst [vmem:[#allocation26_spill] sm:$0xff] %v6261_v30  ;;  %396 = vrot.lane.b32.xlu0 %v6595_v45, %s6299_s28  ;;  %394 = vrot.lane.b32.xlu1 %v6597_v46, %s6299_s28  ;;  %v6657_v55 = vrot.slane %v95_v44, %v119_v54  ;;  %v6663_v57 = vrot.slane %v95_v44, %v123_v56  ;;  %vm333_vm4 = vcmask 1040384   ;;  %vm485_vm5 = vcmp.lt.s32.totalorder %v6428_v7, 92  ;;  %s6310_s19 = smov 62   ;;  %s6311_s20 = smov 64  }
  0x13   : > { %9120 = vst [vmem:[#allocation27_spill] sm:$0xff] %v6265_v31  ;;  %9121 = vst [vmem:[#allocation28_spill] sm:$0xff] %v6269_v32  ;;  %vm342_vm6 = vcmask 1041408   ;;  %vm351_vm7 = vcmask 1042432   ;;  %vm360_vm8 = vcmask 1043456   ;;  %vm626_vm9 = vcmask 1044480  }
  0x14   : > { %9122 = vst [vmem:[#allocation29_spill] sm:$0xff] %v6273_v33  ;;  %9123 = vst [vmem:[#allocation30_spill] sm:$0xff] %v6277_v34  ;;  %vm622_vm10 = vcmask 39936   ;;  %s6312_s21 = smov 61   ;;  %s6313_s22 = smov 60   ;;  %vm153_vm11 = vcmp.lt.s32.totalorder %v6428_v7, 127 }
  0x15   : > { %9124 = vst [vmem:[#allocation31_spill] sm:$0xff] %v6281_v35  ;;  %9125 = vst [vmem:[#allocation32_spill] sm:$0xff] %v6285_v36  ;;  %vm9075_vm12 = vcmp.lt.s32.totalorder %v6428_v7, 126  ;;  %vm203_vm13 = vcmp.lt.s32.totalorder %v6428_v7, 125  ;;  %s6314_s23 = smov 31   ;;  %vm9074_vm14 = vcmp.lt.s32.totalorder %v6428_v7, 124 }
  0x16   : > { %9126 = vst [vmem:[#allocation33_spill] sm:$0xff] %v6289_v37  ;;  %9127 = vst [vmem:[#allocation34_spill] sm:$0xff] %v6293_v38  ;;  %398 = vrot.lane.b32.xlu0 %v6605_v48, %s6299_s28  ;;  %421 = vrot.lane.b32.xlu1 %v6595_v45, %s6300_s29  ;;  %s6315_s24 = smov 30   ;;  %s6316_s25 = smov 32   ;;  %vm1287_vm15 = vcmp.lt.s32.totalorder %v6428_v7, 63 }
  0x17   : > { %s6317_s3 = smov 29   ;;  %s6318_s4 = smov 28  }
  0x18   : > { %s6320_s26 = smov 58   ;;  %s6321_s27 = smov 56  }
  0x1a   : > { %423 = vrot.lane.b32.xlu0 %v6605_v48, %s6300_s29  ;;  %371 = vrot.lane.b32.xlu1 %v6595_v45, %s6301_s30 }
  0x1e   : > { %373 = vrot.lane.b32.xlu0 %v6605_v48, %s6301_s30  ;;  %419 = vrot.lane.b32.xlu1 %v6597_v46, %s6300_s29 }
  0x22   : > { %446 = vrot.lane.b32.xlu0 %v6595_v45, %s6302_s13  ;;  %448 = vrot.lane.b32.xlu1 %v6605_v48, %s6302_s13 }
  0x26   : > { %369 = vrot.lane.b32.xlu0 %v6597_v46, %s6301_s30  ;;  %444 = vrot.lane.b32.xlu1 %v6597_v46, %s6302_s13 }
  0x2a   : > { %471 = vrot.lane.b32.xlu0 %v6595_v45, %s6303_s14  ;;  %473 = vrot.lane.b32.xlu1 %v6605_v48, %s6303_s14 }
  0x2e   : > { %400 = vrot.lane.b32.xlu0 %v6631_v51, %s6299_s28  ;;  %402 = vrot.lane.b32.xlu1 %v6633_v52, %s6299_s28 }
  0x32   : > { %469 = vrot.lane.b32.xlu0 %v6597_v46, %s6303_s14  ;;  %425 = vrot.lane.b32.xlu1 %v6631_v51, %s6300_s29 }
  0x36   : > { %427 = vrot.lane.b32.xlu0 %v6633_v52, %s6300_s29  ;;  %375 = vrot.lane.b32.xlu1 %v6631_v51, %s6301_s30 }
  0x3a   : > { %377 = vrot.lane.b32.xlu0 %v6633_v52, %s6301_s30  ;;  %450 = vrot.lane.b32.xlu1 %v6631_v51, %s6302_s13 }
  0x3e   : > { %452 = vrot.lane.b32.xlu0 %v6633_v52, %s6302_s13  ;;  %475 = vrot.lane.b32.xlu1 %v6631_v51, %s6303_s14 }
  0x42   : > { %477 = vrot.lane.b32.xlu0 %v6633_v52, %s6303_s14  ;;  %404 = vrot.lane.b32.xlu1 %v6657_v55, %s6299_s28 }
  0x46   : > { %406 = vrot.lane.b32.xlu0 %v6663_v57, %s6299_s28  ;;  %429 = vrot.lane.b32.xlu1 %v6657_v55, %s6300_s29 }
  0x4a   : > { %431 = vrot.lane.b32.xlu0 %v6663_v57, %s6300_s29  ;;  %379 = vrot.lane.b32.xlu1 %v6657_v55, %s6301_s30 }
  0x4e   : > { %381 = vrot.lane.b32.xlu0 %v6663_v57, %s6301_s30  ;;  %454 = vrot.lane.b32.xlu1 %v6657_v55, %s6302_s13 }
  0x52   : > { %456 = vrot.lane.b32.xlu0 %v6663_v57, %s6302_s13  ;;  %479 = vrot.lane.b32.xlu1 %v6657_v55, %s6303_s14 }
  0x56   : > { %481 = vrot.lane.b32.xlu0 %v6663_v57, %s6303_s14  ;;  %408 = vrot.lane.b32.xlu1 %v6599_v47, %s6299_s28 }
  0x5a   : > { %433 = vrot.lane.b32.xlu0 %v6599_v47, %s6300_s29  ;;  %139 = vrot.lane.b32.xlu1 %v6595_v45, %s6305_s15  ;;  %s6323_s29 = smov 120  }
  0x5e   : > { %141 = vrot.lane.b32.xlu0 %v6605_v48, %s6305_s15  ;;  %383 = vrot.lane.b32.xlu1 %v6599_v47, %s6301_s30 }
  0x62   : > { %458 = vrot.lane.b32.xlu0 %v6599_v47, %s6302_s13  ;;  %137 = vrot.lane.b32.xlu1 %v6597_v46, %s6305_s15  ;;  %s6326_s13 = smov 4  }
  0x66   : > { %164 = vrot.lane.b32.xlu0 %v6595_v45, %s6306_s16  ;;  %166 = vrot.lane.b32.xlu1 %v6605_v48, %s6306_s16 }
  0x6a   : > { %483 = vrot.lane.b32.xlu0 %v6599_v47, %s6303_s14  ;;  %143 = vrot.lane.b32.xlu1 %v6631_v51, %s6305_s15  ;;  %s6327_s14 = smov 112  }
  0x6e   : > { %145 = vrot.lane.b32.xlu0 %v6633_v52, %s6305_s15  ;;  %162 = vrot.lane.b32.xlu1 %v6597_v46, %s6306_s16 }
  0x72   : > { %189 = vrot.lane.b32.xlu0 %v6595_v45, %s6307_s17  ;;  %191 = vrot.lane.b32.xlu1 %v6605_v48, %s6307_s17 }
  0x76   : > { %168 = vrot.lane.b32.xlu0 %v6631_v51, %s6306_s16  ;;  %170 = vrot.lane.b32.xlu1 %v6633_v52, %s6306_s16 }
  0x7a   : > { %187 = vrot.lane.b32.xlu0 %v6597_v46, %s6307_s17  ;;  %214 = vrot.lane.b32.xlu1 %v6595_v45, %s6308_s18 }
  0x7e   : > { %216 = vrot.lane.b32.xlu0 %v6605_v48, %s6308_s18  ;;  %147 = vrot.lane.b32.xlu1 %v6657_v55, %s6305_s15 }
  0x82   : > { %149 = vrot.lane.b32.xlu0 %v6663_v57, %s6305_s15  ;;  %193 = vrot.lane.b32.xlu1 %v6631_v51, %s6307_s17 }
  0x84   : > { %v397_v58 = vpop.permute.xlu0 %396  ;;  %v6729_v59 = vpop.permute.xlu1 %394 }
  0x86   : > { %195 = vrot.lane.b32.xlu0 %v6633_v52, %s6307_s17  ;;  %212 = vrot.lane.b32.xlu1 %v6597_v46, %s6308_s18 }
  0x88   : > { %v6735_v60 = vpop.permute.xlu0 %398  ;;  %v422_v61 = vpop.permute.xlu1 %421 }
  0x89   : > { %v416_v43 = vsel %vm410_vm0, %v397_v58, %v6735_v60 }
  0x8a   : > { %172 = vrot.lane.b32.xlu0 %v6657_v55, %s6306_s16  ;;  %174 = vrot.lane.b32.xlu1 %v6663_v57, %s6306_s16  ;;  %v503_v56 = vrot.slane %v416_v43, 7  ;;  %v417_v43 = vsel %vm410_vm0, %v6729_v59, %v397_v58 }
  0x8b   : > { %v502_v58 = vrot.slane %v417_v43, 7 }
  0x8c   : > { %v6741_v62 = vpop.permute.xlu0 %423  ;;  %v372_v63 = vpop.permute.xlu1 %371 }
  0x8d   : > { %v441_v0 = vsel %vm435_vm3, %v422_v61, %v6741_v62 }
  0x8e   : > { %218 = vrot.lane.b32.xlu0 %v6631_v51, %s6308_s18  ;;  %220 = vrot.lane.b32.xlu1 %v6633_v52, %s6308_s18  ;;  %v527_v15 = vrot.slane %v441_v0, 6 }
  0x90   : > { %v6747_v39 = vpop.permute.xlu0 %373  ;;  %v6749_v40 = vpop.permute.xlu1 %419 }
  0x91   : > { %v391_v44 = vsel %vm385_vm1, %v372_v63, %v6747_v39 }
  0x92   : > { %151 = vrot.lane.b32.xlu0 %v6599_v47, %s6305_s15  ;;  %197 = vrot.lane.b32.xlu1 %v6657_v55, %s6307_s17  ;;  %v591_v53 = vsel %vm333_vm4, %v391_v44, %v503_v56  ;;  %v442_v56 = vsel %vm435_vm3, %v6749_v40, %v422_v61 }
  0x93   : > { %v599_v0 = vsel %vm342_vm6, %v591_v53, %v527_v15  ;;  %v526_v15 = vrot.slane %v442_v56, 6 }
  0x94   : > { %v447_v41 = vpop.permute.xlu0 %446  ;;  %v6755_v42 = vpop.permute.xlu1 %448 }
  0x95   : > { %v466_v49 = vsel %vm460_vm2, %v447_v41, %v6755_v42 }
  0x96   : > { %199 = vrot.lane.b32.xlu0 %v6663_v57, %s6307_s17  ;;  %176 = vrot.lane.b32.xlu1 %v6599_v47, %s6306_s16  ;;  %v551_v14 = vrot.slane %v466_v49, 5 }
  0x98   : > { %v6774_v50 = vpop.permute.xlu0 %369  ;;  %v6776_v54 = vpop.permute.xlu1 %444  ;;  %v607_v21 = vsel %vm351_vm7, %v599_v0, %v551_v14 }
  0x99   : > { %v392_v44 = vsel %vm385_vm1, %v6774_v50, %v372_v63 }
  0x9a   : > { %222 = vrot.lane.b32.xlu0 %v6657_v55, %s6308_s18  ;;  %224 = vrot.lane.b32.xlu1 %v6663_v57, %s6308_s18  ;;  %v590_v23 = vsel %vm333_vm4, %v392_v44, %v502_v58  ;;  %v9129_v58 = vmov 0.0  }
  0x9c   : > { %v472_v16 = vpop.permute.xlu0 %471  ;;  %v6790_v19 = vpop.permute.xlu1 %473 }
  0x9d   : > { %v491_v18 = vsel %vm485_vm5, %v472_v16, %v6790_v19 }
  0x9e   : > { %v575_v49 = vrot.slane %v491_v18, 4  ;;  %201 = vrot.lane.b32.xlu0 %v6599_v47, %s6307_s17  ;;  %1273 = vrot.lane.b32.xlu1 %v6595_v45, %s6309_s1  ;;  %v467_v18 = vsel %vm460_vm2, %v6776_v54, %v447_v41  ;;  %v598_v41 = vsel %vm342_vm6, %v590_v23, %v526_v15 }
  0x9f   : > { %v550_v14 = vrot.slane %v467_v18, 5 }
  0xa0   : > { %v401_v63 = vpop.permute.xlu0 %400  ;;  %v6810_v20 = vpop.permute.xlu1 %402  ;;  %v615_v17 = vsel %vm360_vm8, %v607_v21, %v575_v49 }
  0xa1   : > { %5252 = vmatprep.subr.msk.mxu1 %vm626_vm9, %v615_v17  ;;  %v606_v17 = vsel %vm351_vm7, %v598_v41, %v550_v14  ;;  %v414_v56 = vsel %vm410_vm0, %v401_v63, %v6810_v20  ;;  %v415_v18 = vsel %vm410_vm0, %v6735_v60, %v401_v63 }
  0xa2   : > { %1275 = vrot.lane.b32.xlu0 %v6605_v48, %s6309_s1  ;;  %226 = vrot.lane.b32.xlu1 %v6599_v47, %s6308_s18 }
  0xa4   : > { %v6819_v53 = vpop.permute.xlu0 %469  ;;  %v426_v61 = vpop.permute.xlu1 %425 }
  0xa5   : > { %v492_v21 = vsel %vm485_vm5, %v6819_v53, %v472_v16  ;;  %v440_v63 = vsel %vm435_vm3, %v6741_v62, %v426_v61 }
  0xa6   : > { %v574_v43 = vrot.slane %v492_v21, 4  ;;  %1271 = vrot.lane.b32.xlu0 %v6597_v46, %s6309_s1  ;;  %1298 = vrot.lane.b32.xlu1 %v6595_v45, %s6310_s19  ;;  %v505_v21 = vrot.slane %v414_v56, 7  ;;  %v528_v26 = vrot.slane %v440_v63, 6 }
  0xa8   : > { %v6830_v44 = vpop.permute.xlu0 %427  ;;  %v376_v49 = vpop.permute.xlu1 %375  ;;  %v614_v0 = vsel %vm360_vm8, %v606_v17, %v574_v43 }
  0xa9   : > { %5253 = vmatpush1.msk.msra.mxu1 %vm626_vm9, %v614_v0  ;;  %v439_v43 = vsel %vm435_vm3, %v426_v61, %v6830_v44  ;;  %v504_v0 = vrot.slane %v415_v18, 7  ;;  %v390_v22 = vsel %vm385_vm1, %v6747_v39, %v376_v49 }
  0xaa   : > { %1300 = vrot.lane.b32.xlu0 %v6605_v48, %s6310_s19  ;;  %1248 = vrot.lane.b32.xlu1 %v6595_v45, %s6311_s20 }
  0xab   : > { %5254 = vmatmul.mubr.msk.f32.vlgmr.msra.gmra.mrb[0].mxu1 %vm622_vm10, %v9101_v2 }
  0xac   : > { %v6840_v16 = vpop.permute.xlu0 %377  ;;  %v451_v23 = vpop.permute.xlu1 %450  ;;  %786 = vmatprep.mubr.f32.mxu1 %v9129_v58 }
  0xad   : > { %v389_v15 = vsel %vm385_vm1, %v376_v49, %v6840_v16  ;;  %v465_v60 = vsel %vm460_vm2, %v6755_v42, %v451_v23  ;;  %v529_v49 = vrot.slane %v439_v43, 6 }
  0xae   : > { %1250 = vrot.lane.b32.xlu0 %v6605_v48, %s6311_s20  ;;  %1277 = vrot.lane.b32.xlu1 %v6631_v51, %s6309_s1  ;;  %v593_v56 = vsel %vm333_vm4, %v389_v15, %v505_v21  ;;  %v552_v24 = vrot.slane %v465_v60, 5 }
  0xb0   : > { %v453_v14 = vpop.permute.xlu0 %452  ;;  %v476_v41 = vpop.permute.xlu1 %475 }
  0xb1   : > { %v464_v17 = vsel %vm460_vm2, %v451_v23, %v453_v14  ;;  %v490_v39 = vsel %vm485_vm5, %v6790_v19, %v476_v41  ;;  %v592_v23 = vsel %vm333_vm4, %v390_v22, %v504_v0  ;;  %v601_v19 = vsel %vm342_vm6, %v593_v56, %v529_v49 }
  0xb2   : > { %1279 = vrot.lane.b32.xlu0 %v6633_v52, %s6309_s1  ;;  %1296 = vrot.lane.b32.xlu1 %v6597_v46, %s6310_s19  ;;  %v553_v18 = vrot.slane %v464_v17, 5  ;;  %v576_v29 = vrot.slane %v490_v39, 4  ;;  %v600_v22 = vsel %vm342_vm6, %v592_v23, %v528_v26 }
  0xb4   : > { %v478_v25 = vpop.permute.xlu0 %477  ;;  %v405_v42 = vpop.permute.xlu1 %404  ;;  %v609_v62 = vsel %vm351_vm7, %v601_v19, %v553_v18 }
  0xb5   : > { %v489_v27 = vsel %vm485_vm5, %v476_v41, %v478_v25  ;;  %v413_v17 = vsel %vm410_vm0, %v6810_v20, %v405_v42 }
  0xb6   : > { %v577_v28 = vrot.slane %v489_v27, 4  ;;  %1323 = vrot.lane.b32.xlu0 %v6595_v45, %s6312_s21  ;;  %1325 = vrot.lane.b32.xlu1 %v6605_v48, %s6312_s21  ;;  %v608_v27 = vsel %vm351_vm7, %v600_v22, %v552_v24  ;;  %v506_v49 = vrot.slane %v413_v17, 7 }
  0xb7   : > { %v616_v21 = vsel %vm360_vm8, %v608_v27, %v576_v29 }
  0xb8   : > { %v407_v61 = vpop.permute.xlu0 %406  ;;  %v430_v15 = vpop.permute.xlu1 %429  ;;  %v617_v41 = vsel %vm360_vm8, %v609_v62, %v577_v28 }
  0xb9   : > { %5255 = vmatprep.subr.msk.mxu1 %vm626_vm9, %v617_v41  ;;  %v412_v29 = vsel %vm410_vm0, %v405_v42, %v407_v61  ;;  %v438_v42 = vsel %vm435_vm3, %v6830_v44, %v430_v15 }
  0xba   : > { %1246 = vrot.lane.b32.xlu0 %v6597_v46, %s6311_s20  ;;  %1302 = vrot.lane.b32.xlu1 %v6631_v51, %s6310_s19  ;;  %v507_v56 = vrot.slane %v412_v29, 7 }
  0xbb   : > { %5256 = vmatpush1.msk.msra.mxu1 %vm626_vm9, %v616_v21 }
  0xbc   : > { %v432_v43 = vpop.permute.xlu0 %431  ;;  %v380_v26 = vpop.permute.xlu1 %379  ;;  %5257 = vmatmul.mubr.msk.f32.vlgmr.msra.gmra.mrb[2].mxu1 %vm622_vm10, %v9101_v2 }
  0xbd   : > { %857 = vmatprep.mubr.f32.mxu1 %v9129_v58  ;;  %v437_v18 = vsel %vm435_vm3, %v430_v15, %v432_v43  ;;  %v388_v23 = vsel %vm385_vm1, %v6840_v16, %v380_v26 }
  0xbe   : > { %1304 = vrot.lane.b32.xlu0 %v6633_v52, %s6310_s19  ;;  %1321 = vrot.lane.b32.xlu1 %v6597_v46, %s6312_s21  ;;  %v531_v16 = vrot.slane %v437_v18, 6 }
  0xc0   : > { %v382_v24 = vpop.permute.xlu0 %381  ;;  %v455_v28 = vpop.permute.xlu1 %454 }
  0xc1   : > { %v387_v0 = vsel %vm385_vm1, %v380_v26, %v382_v24  ;;  %v463_v20 = vsel %vm460_vm2, %v453_v14, %v455_v28  ;;  %v594_v14 = vsel %vm333_vm4, %v388_v23, %v506_v49 }
  0xc2   : > { %1348 = vrot.lane.b32.xlu0 %v6595_v45, %s6313_s22  ;;  %1350 = vrot.lane.b32.xlu1 %v6605_v48, %s6313_s22  ;;  %v595_v19 = vsel %vm333_vm4, %v387_v0, %v507_v56  ;;  %v554_v21 = vrot.slane %v463_v20, 5 }
  0xc4   : > { %v457_v60 = vpop.permute.xlu0 %456  ;;  %v480_v63 = vpop.permute.xlu1 %479 }
  0xc5   : > { %v462_v39 = vsel %vm460_vm2, %v455_v28, %v457_v60  ;;  %v488_v22 = vsel %vm485_vm5, %v478_v25, %v480_v63  ;;  %v530_v28 = vrot.slane %v438_v42, 6  ;;  %v603_v25 = vsel %vm342_vm6, %v595_v19, %v531_v16 }
  0xc6   : > { %1252 = vrot.lane.b32.xlu0 %v6631_v51, %s6311_s20  ;;  %1254 = vrot.lane.b32.xlu1 %v6633_v52, %s6311_s20  ;;  %v555_v62 = vrot.slane %v462_v39, 5  ;;  %v578_v29 = vrot.slane %v488_v22, 4 }
  0xc7   : > { %v602_v15 = vsel %vm342_vm6, %v594_v14, %v530_v28 }
  0xc8   : > { %v482_v41 = vpop.permute.xlu0 %481  ;;  %v409_v27 = vpop.permute.xlu1 %408  ;;  %v611_v44 = vsel %vm351_vm7, %v603_v25, %v555_v62  ;;  %v610_v18 = vsel %vm351_vm7, %v602_v15, %v554_v21 }
  0xc9   : > { %v487_v26 = vsel %vm485_vm5, %v480_v63, %v482_v41  ;;  %v618_v39 = vsel %vm360_vm8, %v610_v18, %v578_v29  ;;  %v411_v49 = vsel %vm410_vm0, %v407_v61, %v409_v27  ;;  %v418_v23 = vsel %vm410_vm0, %v409_v27, %v6729_v59 }
  0xca   : > { %v579_v17 = vrot.slane %v487_v26, 4  ;;  %1281 = vrot.lane.b32.xlu0 %v6657_v55, %s6309_s1  ;;  %1283 = vrot.lane.b32.xlu1 %v6663_v57, %s6309_s1  ;;  %v508_v61 = vrot.slane %v411_v49, 7  ;;  %v509_v22 = vrot.slane %v418_v23, 7 }
  0xcc   : > { %v434_v0 = vpop.permute.xlu0 %433  ;;  %v6944_v56 = vpop.permute.xlu1 %139  ;;  %v619_v63 = vsel %vm360_vm8, %v611_v44, %v579_v17 }
  0xcd   : > { %5258 = vmatprep.subr.msk.mxu1 %vm626_vm9, %v619_v63  ;;  %v436_v59 = vsel %vm435_vm3, %v432_v43, %v434_v0  ;;  %v443_v16 = vsel %vm435_vm3, %v434_v0, %v6749_v40  ;;  %vm1337_vm3 = vcmp.lt.s32.totalorder %v6428_v7, 61 }
  0xce   : > { %1327 = vrot.lane.b32.xlu0 %v6631_v51, %s6312_s21  ;;  %1329 = vrot.lane.b32.xlu1 %v6633_v52, %s6312_s21  ;;  %v532_v21 = vrot.slane %v436_v59, 6  ;;  %v533_v26 = vrot.slane %v443_v16, 6 }
  0xcf   : > { %5259 = vmatpush1.msk.msra.mxu1 %vm626_vm9, %v618_v39 }
  0xd0   : > { %v6960_v20 = vpop.permute.xlu0 %141  ;;  %v384_v42 = vpop.permute.xlu1 %383  ;;  %5260 = vmatmul.mubr.msk.f32.vlgmr.msra.gmra.mrb[4].mxu1 %vm622_vm10, %v9101_v2 }
  0xd1   : > { %v386_v19 = vsel %vm385_vm1, %v382_v24, %v384_v42  ;;  %v393_v62 = vsel %vm385_vm1, %v384_v42, %v6774_v50  ;;  %928 = vmatprep.mubr.f32.mxu1 %v9129_v58  ;;  %v159_v16 = vsel %vm153_vm11, %v6944_v56, %v6960_v20 }
  0xd2   : > { %1346 = vrot.lane.b32.xlu0 %v6597_v46, %s6313_s22  ;;  %1306 = vrot.lane.b32.xlu1 %v6657_v55, %s6310_s19  ;;  %v596_v24 = vsel %vm333_vm4, %v386_v19, %v508_v61  ;;  %v597_v50 = vsel %vm333_vm4, %v393_v62, %v509_v22 }
  0xd3   : > { %v604_v17 = vsel %vm342_vm6, %v596_v24, %v532_v21  ;;  %v605_v25 = vsel %vm342_vm6, %v597_v50, %v533_v26  ;;  %v246_v26 = vrot.slane %v159_v16, 7 }
  0xd4   : > { %v459_v27 = vpop.permute.xlu0 %458  ;;  %v6981_v14 = vpop.permute.xlu1 %137 }
  0xd5   : > { %v461_v43 = vsel %vm460_vm2, %v457_v60, %v459_v27  ;;  %v468_v40 = vsel %vm460_vm2, %v459_v27, %v6776_v54  ;;  %vm9076_vm2 = vcmp.lt.s32.totalorder %v6428_v7, 64 }
  0xd6   : > { %v556_v28 = vrot.slane %v461_v43, 5  ;;  %v557_v29 = vrot.slane %v468_v40, 5  ;;  %1308 = vrot.lane.b32.xlu0 %v6663_v57, %s6310_s19  ;;  %1352 = vrot.lane.b32.xlu1 %v6631_v51, %s6313_s22 }
  0xd8   : > { %v165_v44 = vpop.permute.xlu0 %164  ;;  %v6994_v15 = vpop.permute.xlu1 %166  ;;  %v613_v60 = vsel %vm351_vm7, %v605_v25, %v557_v29  ;;  %v612_v0 = vsel %vm351_vm7, %v604_v17, %v556_v28  ;;  %v335_v25 = vsel %vm333_vm4, %v6595_v45, %v246_v26 }
  0xd9   : > { %v184_v24 = vsel %vm9075_vm12, %v165_v44, %v6994_v15 }
  0xda   : > { %1354 = vrot.lane.b32.xlu0 %v6633_v52, %s6313_s22  ;;  %1256 = vrot.lane.b32.xlu1 %v6657_v55, %s6311_s20  ;;  %v270_v43 = vrot.slane %v184_v24, 6 }
  0xdc   : > { %v484_v54 = vpop.permute.xlu0 %483  ;;  %v7002_v63 = vpop.permute.xlu1 %143 }
  0xdd   : > { %v486_v18 = vsel %vm485_vm5, %v482_v41, %v484_v54  ;;  %v493_v39 = vsel %vm485_vm5, %v484_v54, %v6819_v53  ;;  %v344_v54 = vsel %vm342_vm6, %v335_v25, %v270_v43  ;;  %v158_v43 = vsel %vm153_vm11, %v6960_v20, %v7002_v63 }
  0xde   : > { %v580_v49 = vrot.slane %v486_v18, 4  ;;  %v581_v23 = vrot.slane %v493_v39, 4  ;;  %1258 = vrot.lane.b32.xlu0 %v6663_v57, %s6311_s20  ;;  %1285 = vrot.lane.b32.xlu1 %v6599_v47, %s6309_s1  ;;  %vm1312_vm5 = vcmp.lt.s32.totalorder %v6428_v7, 62 }
  0xe0   : > { %v7013_v42 = vpop.permute.xlu0 %145  ;;  %v7015_v19 = vpop.permute.xlu1 %162  ;;  %v621_v62 = vsel %vm360_vm8, %v613_v60, %v581_v23  ;;  %v620_v41 = vsel %vm360_vm8, %v612_v0, %v580_v49  ;;  %v160_v60 = vsel %vm153_vm11, %v6981_v14, %v6944_v56 }
  0xe1   : > { %5261 = vmatprep.subr.msk.mxu1 %vm626_vm9, %v621_v62  ;;  %v185_v18 = vsel %vm9075_vm12, %v7015_v19, %v165_v44 }
  0xe2   : > { %1331 = vrot.lane.b32.xlu0 %v6657_v55, %s6312_s21  ;;  %1333 = vrot.lane.b32.xlu1 %v6663_v57, %s6312_s21  ;;  %v269_v16 = vrot.slane %v185_v18, 6 }
  0xe3   : > { %5262 = vmatpush1.msk.msra.mxu1 %vm626_vm9, %v620_v41  ;;  %v245_v41 = vrot.slane %v160_v60, 7 }
  0xe4   : > { %v190_v53 = vpop.permute.xlu0 %189  ;;  %v192_v61 = vpop.permute.xlu1 %191  ;;  %5263 = vmatmul.mubr.msk.f32.vlgmr.msra.gmra.mrb[6].mxu1 %vm622_vm10, %v9101_v2 }
  0xe5   : > { %1097 = vmatprep.mubr.f32.mxu1 %v9129_v58  ;;  %v209_v50 = vsel %vm203_vm13, %v190_v53, %v192_v61 }
  0xe6   : > { %1310 = vrot.lane.b32.xlu0 %v6599_v47, %s6310_s19  ;;  %1356 = vrot.lane.b32.xlu1 %v6657_v55, %s6313_s22  ;;  %v294_v40 = vrot.slane %v209_v50, 5  ;;  %v334_v50 = vsel %vm333_vm4, %v6597_v46, %v245_v41 }
  0xe8   : > { %v169_v22 = vpop.permute.xlu0 %168  ;;  %v7034_v59 = vpop.permute.xlu1 %170  ;;  %v353_v39 = vsel %vm351_vm7, %v344_v54, %v294_v40  ;;  %v157_v40 = vsel %vm153_vm11, %v7002_v63, %v7013_v42 }
  0xe9   : > { %v183_v25 = vsel %vm9075_vm12, %v6994_v15, %v169_v22  ;;  %v182_v20 = vsel %vm9075_vm12, %v169_v22, %v7034_v59  ;;  %v248_v15 = vrot.slane %v157_v40, 7 }
  0xea   : > { %1358 = vrot.lane.b32.xlu0 %v6663_v57, %s6313_s22  ;;  %1260 = vrot.lane.b32.xlu1 %v6599_v47, %s6311_s20  ;;  %v271_v22 = vrot.slane %v183_v25, 6  ;;  %v272_v41 = vrot.slane %v182_v20, 6 }
  0xec   : > { %v7050_v27 = vpop.permute.xlu0 %187  ;;  %v215_v21 = vpop.permute.xlu1 %214 }
  0xed   : > { %v210_v49 = vsel %vm203_vm13, %v7050_v27, %v190_v53 }
  0xee   : > { %1335 = vrot.lane.b32.xlu0 %v6599_v47, %s6312_s21  ;;  %1845 = vrot.lane.b32.xlu1 %v6595_v45, %s6314_s23  ;;  %v293_v44 = vrot.slane %v210_v49, 5  ;;  %v247_v49 = vrot.slane %v158_v43, 7 }
  0xf0   : > { %v217_v28 = vpop.permute.xlu0 %216  ;;  %v7057_v29 = vpop.permute.xlu1 %147 }
  0xf1   : > { %v234_v17 = vsel %vm9074_vm14, %v215_v21, %v217_v28 }
  0xf2   : > { %v318_v0 = vrot.slane %v234_v17, 4  ;;  %1847 = vrot.lane.b32.xlu0 %v6605_v48, %s6314_s23  ;;  %1360 = vrot.lane.b32.xlu1 %v6599_v47, %s6313_s22 }
  0xf4   : > { %v7079_v56 = vpop.permute.xlu0 %149  ;;  %v194_v23 = vpop.permute.xlu1 %193  ;;  %v7082_v62 = vsel %vm360_vm8, %v353_v39, %v318_v0 }
  0xf5   : > { %5264 = vmatprep.subr.msk.mxu0 %vm626_vm9, %v7082_v62  ;;  %v208_v60 = vsel %vm203_vm13, %v192_v61, %v194_v23 }
  0xf6   : > { %1843 = vrot.lane.b32.xlu0 %v6597_v46, %s6314_s23  ;;  %1870 = vrot.lane.b32.xlu1 %v6595_v45, %s6315_s24  ;;  %v295_v61 = vrot.slane %v208_v60, 5 }
  0xf8   : > { %v196_v53 = vpop.permute.xlu0 %195  ;;  %v7090_v24 = vpop.permute.xlu1 %212 }
  0xf9   : > { %v235_v26 = vsel %vm9074_vm14, %v7090_v24, %v215_v21  ;;  %v343_v21 = vsel %vm342_vm6, %v334_v50, %v269_v16  ;;  %v207_v0 = vsel %vm203_vm13, %v194_v23, %v196_v53  ;;  %v336_v50 = vsel %vm333_vm4, %v6605_v48, %v247_v49 }
  0xfa   : > { %v317_v17 = vrot.slane %v235_v26, 4  ;;  %1872 = vrot.lane.b32.xlu0 %v6605_v48, %s6315_s24  ;;  %1820 = vrot.lane.b32.xlu1 %v6595_v45, %s6316_s25  ;;  %v352_v63 = vsel %vm351_vm7, %v343_v21, %v293_v44  ;;  %v296_v23 = vrot.slane %v207_v0, 5  ;;  %v337_v26 = vsel %vm333_vm4, %v6631_v51, %v248_v15 }
  0xfb   : > { %v346_v20 = vsel %vm342_vm6, %v337_v26, %v272_v41  ;;  %v155_v41 = vsel %vm153_vm11, %v7057_v29, %v7079_v56 }
  0xfc   : > { %v173_v54 = vpop.permute.xlu0 %172  ;;  %v7121_v18 = vpop.permute.xlu1 %174  ;;  %v7124_v39 = vsel %vm360_vm8, %v352_v63, %v317_v17  ;;  %v345_v17 = vsel %vm342_vm6, %v336_v50, %v271_v22  ;;  %v355_v63 = vsel %vm351_vm7, %v346_v20, %v296_v23  ;;  %v156_v22 = vsel %vm153_vm11, %v7013_v42, %v7057_v29 }
  0xfd   : > { %5265 = vmatpush1.msk.msra.mxu0 %vm626_vm9, %v7124_v39  ;;  %v354_v60 = vsel %vm351_vm7, %v345_v17, %v295_v61  ;;  %v181_v61 = vsel %vm9075_vm12, %v7034_v59, %v173_v54  ;;  %v180_v23 = vsel %vm9075_vm12, %v173_v54, %v7121_v18  ;;  %v249_v42 = vrot.slane %v156_v22, 7 }
  0xfe   : > { %1822 = vrot.lane.b32.xlu0 %v6605_v48, %s6316_s25  ;;  %1849 = vrot.lane.b32.xlu1 %v6631_v51, %s6314_s23  ;;  %v250_v29 = vrot.slane %v155_v41, 7  ;;  %v273_v54 = vrot.slane %v181_v61, 6  ;;  %v274_v26 = vrot.slane %v180_v23, 6 }
  0xff   : > { %5266 = vmatmul.mubr.msk.f32.vlgmr.msra.gmra.mrb[0].mxu0 %vm622_vm10, %v9102_v1  ;;  %v338_v17 = vsel %vm333_vm4, %v6633_v52, %v249_v42 }
 0x100   : > { %v219_v16 = vpop.permute.xlu0 %218  ;;  %v221_v44 = vpop.permute.xlu1 %220  ;;  %1168 = vmatprep.mubr.f32.mxu0 %v9129_v58 }
 0x101   : > { %v233_v43 = vsel %vm9074_vm14, %v217_v28, %v219_v16  ;;  %v232_v40 = vsel %vm9074_vm14, %v219_v16, %v221_v44 }
 0x102   : > { %v319_v21 = vrot.slane %v233_v43, 4  ;;  %v320_v25 = vrot.slane %v232_v40, 4  ;;  %1851 = vrot.lane.b32.xlu0 %v6633_v52, %s6314_s23  ;;  %1868 = vrot.lane.b32.xlu1 %v6597_v46, %s6315_s24 }
 0x104   : > { %v152_v28 = vpop.permute.xlu0 %151  ;;  %v198_v0 = vpop.permute.xlu1 %197  ;;  %v7152_v49 = vsel %vm360_vm8, %v355_v63, %v320_v25  ;;  %v7155_v15 = vsel %vm360_vm8, %v354_v60, %v319_v21  ;;  %v339_v21 = vsel %vm333_vm4, %v6657_v55, %v250_v29  ;;  %v347_v63 = vsel %vm342_vm6, %v338_v17, %v273_v54 }
 0x105   : > { %5267 = vmatprep.subr.msk.mxu1 %vm626_vm9, %v7152_v49  ;;  %v206_v16 = vsel %vm203_vm13, %v196_v53, %v198_v0  ;;  %v348_v22 = vsel %vm342_vm6, %v339_v21, %v274_v26  ;;  %v154_v41 = vsel %vm153_vm11, %v7079_v56, %v152_v28  ;;  %v161_v61 = vsel %vm153_vm11, %v152_v28, %v6981_v14 }
 0x106   : > { %1895 = vrot.lane.b32.xlu0 %v6595_v45, %s6317_s3  ;;  %1897 = vrot.lane.b32.xlu1 %v6605_v48, %s6317_s3  ;;  %v297_v40 = vrot.slane %v206_v16, 5  ;;  %v252_v17 = vrot.slane %v161_v61, 7 }
 0x107   : > { %5268 = vmatpush1.msk.msra.mxu1 %vm626_vm9, %v7155_v15 }
 0x108   : > { %v200_v59 = vpop.permute.xlu0 %199  ;;  %v177_v50 = vpop.permute.xlu1 %176  ;;  %5269 = vmatmul.mubr.msk.f32.vlgmr.msra.gmra.mrb[2].mxu1 %vm622_vm10, %v9102_v1  ;;  %v356_v14 = vsel %vm351_vm7, %v347_v63, %v297_v40 }
 0x109   : > { %v205_v43 = vsel %vm203_vm13, %v198_v0, %v200_v59  ;;  %1239 = vmatprep.mubr.f32.mxu1 %v9129_v58  ;;  %v186_v56 = vsel %vm9075_vm12, %v177_v50, %v7015_v19 }
 0x10a   : > { %1818 = vrot.lane.b32.xlu0 %v6597_v46, %s6316_s25  ;;  %1874 = vrot.lane.b32.xlu1 %v6631_v51, %s6315_s24  ;;  %v298_v53 = vrot.slane %v205_v43, 5  ;;  %v251_v43 = vrot.slane %v154_v41, 7  ;;  %v276_v40 = vrot.slane %v186_v56, 6 }
 0x10c   : > { %v223_v25 = vpop.permute.xlu0 %222  ;;  %v225_v20 = vpop.permute.xlu1 %224  ;;  %v357_v29 = vsel %vm351_vm7, %v348_v22, %v298_v53 }
 0x10d   : > { %v231_v60 = vsel %vm9074_vm14, %v221_v44, %v223_v25  ;;  %v230_v0 = vsel %vm9074_vm14, %v223_v25, %v225_v20  ;;  %v179_v44 = vsel %vm9075_vm12, %v7121_v18, %v177_v50  ;;  %v340_v25 = vsel %vm333_vm4, %v6663_v57, %v251_v43 }
 0x10e   : > { %v321_v23 = vrot.slane %v231_v60, 4  ;;  %v322_v42 = vrot.slane %v230_v0, 4  ;;  %1876 = vrot.lane.b32.xlu0 %v6633_v52, %s6315_s24  ;;  %1893 = vrot.lane.b32.xlu1 %v6597_v46, %s6317_s3  ;;  %v275_v50 = vrot.slane %v179_v44, 6  ;;  %vm1884_vm12 = vcmp.lt.s32.totalorder %v6428_v7, 30 }
 0x110   : > { %v202_v28 = vpop.permute.xlu0 %201  ;;  %v7218_v16 = vpop.permute.xlu1 %1273  ;;  %v7221_v54 = vsel %vm360_vm8, %v357_v29, %v322_v42  ;;  %v7224_v26 = vsel %vm360_vm8, %v356_v14, %v321_v23  ;;  %v349_v60 = vsel %vm342_vm6, %v340_v25, %v275_v50 }
 0x111   : > { %v204_v18 = vsel %vm203_vm13, %v200_v59, %v202_v28  ;;  %v211_v19 = vsel %vm203_vm13, %v202_v28, %v7050_v27  ;;  %5270 = vmatprep.subr.msk.mxu0 %vm626_vm9, %v7221_v54  ;;  %vm1362_vm13 = vcmp.lt.s32.totalorder %v6428_v7, 60 }
 0x112   : > { %1920 = vrot.lane.b32.xlu0 %v6595_v45, %s6318_s4  ;;  %1922 = vrot.lane.b32.xlu1 %v6605_v48, %s6318_s4  ;;  %v299_v53 = vrot.slane %v204_v18, 5  ;;  %v300_v21 = vrot.slane %v211_v19, 5  ;;  %v341_v45 = vsel %vm333_vm4, %v6599_v47, %v252_v17 }
 0x113   : > { %5271 = vmatpush1.msk.msra.mxu0 %vm626_vm9, %v7224_v26  ;;  %v350_v41 = vsel %vm342_vm6, %v341_v45, %v276_v40 }
 0x114   : > { %v7239_v59 = vpop.permute.xlu0 %1275  ;;  %v227_v27 = vpop.permute.xlu1 %226  ;;  %5272 = vmatmul.mubr.msk.f32.vlgmr.msra.gmra.mrb[2].mxu0 %vm622_vm10, %v9102_v1  ;;  %v358_v61 = vsel %vm351_vm7, %v349_v60, %v299_v53 }
 0x115   : > { %v229_v48 = vsel %vm9074_vm14, %v225_v20, %v227_v27  ;;  %v236_v63 = vsel %vm9074_vm14, %v227_v27, %v7090_v24  ;;  %1590 = vmatprep.mubr.f32.mxu0 %v9129_v58  ;;  %v359_v20 = vsel %vm351_vm7, %v350_v41, %v300_v21  ;;  %vm1909_vm14 = vcmp.lt.s32.totalorder %v6428_v7, 29 }
 0x116   : > { %v323_v0 = vrot.slane %v229_v48, 4  ;;  %v324_v22 = vrot.slane %v236_v63, 4  ;;  %1824 = vrot.lane.b32.xlu0 %v6631_v51, %s6316_s25  ;;  %1826 = vrot.lane.b32.xlu1 %v6633_v52, %s6316_s25 }
 0x118   : > { %v7261_v23 = vpop.permute.xlu0 %1271  ;;  %v7263_v24 = vpop.permute.xlu1 %1298  ;;  %v7266_v42 = vsel %vm360_vm8, %v359_v20, %v324_v22  ;;  %v7269_v44 = vsel %vm360_vm8, %v358_v61, %v323_v0 }
 0x119   : > { %5273 = vmatprep.subr.msk.mxu1 %vm626_vm9, %v7266_v42 }
 0x11a   : > { %1853 = vrot.lane.b32.xlu0 %v6657_v55, %s6314_s23  ;;  %1855 = vrot.lane.b32.xlu1 %v6663_v57, %s6314_s23 }
 0x11b   : > { %5274 = vmatpush1.msk.msra.mxu1 %vm626_vm9, %v7269_v44 }
 0x11c   : > { %v7279_v56 = vpop.permute.xlu0 %1300  ;;  %v1249_v29 = vpop.permute.xlu1 %1248  ;;  %5275 = vmatmul.mubr.msk.f32.vlgmr.msra.gmra.mrb[6].mxu1 %vm622_vm10, %v9102_v1 }
 0x11d   : > { %1661 = vmatprep.mubr.f32.mxu1 %v9129_v58  ;;  %v1318_v25 = vsel %vm1312_vm5, %v7263_v24, %v7279_v56 }
 0x11e   : > { %1899 = vrot.lane.b32.xlu0 %v6631_v51, %s6317_s3  ;;  %1901 = vrot.lane.b32.xlu1 %v6633_v52, %s6317_s3  ;;  %v1404_v63 = vrot.slane %v1318_v25, 6  ;;  %v1294_v25 = vsel %vm1287_vm15, %v7261_v23, %v7218_v16 }
 0x120   : > { %v7288_v14 = vpop.permute.xlu0 %1250  ;;  %v7290_v28 = vpop.permute.xlu1 %1277 }
 0x122   : > { %1918 = vrot.lane.b32.xlu0 %v6597_v46, %s6318_s4  ;;  %1878 = vrot.lane.b32.xlu1 %v6657_v55, %s6315_s24 }
 0x124   : > { %v7296_v43 = vpop.permute.xlu0 %1279  ;;  %v7298_v17 = vpop.permute.xlu1 %1296 }
 0x126   : > { %1880 = vrot.lane.b32.xlu0 %v6663_v57, %s6315_s24  ;;  %1924 = vrot.lane.b32.xlu1 %v6631_v51, %s6318_s4  ;;  %v1293_v51 = vsel %vm1287_vm15, %v7218_v16, %v7239_v59  ;;  %v1319_v16 = vsel %vm1312_vm5, %v7298_v17, %v7263_v24  ;;  %v1291_v24 = vsel %vm1287_vm15, %v7290_v28, %v7296_v43 }
 0x127   : > { %v1380_v27 = vrot.slane %v1293_v51, 7 }
 0x128   : > { %v1324_v18 = vpop.permute.xlu0 %1323  ;;  %v7304_v19 = vpop.permute.xlu1 %1325 }
 0x129   : > { %v1343_v40 = vsel %vm1337_vm3, %v1324_v18, %v7304_v19 }
 0x12a   : > { %1926 = vrot.lane.b32.xlu0 %v6633_v52, %s6318_s4  ;;  %1828 = vrot.lane.b32.xlu1 %v6657_v55, %s6316_s25  ;;  %v1268_v52 = vsel %vm9076_vm2, %v1249_v29, %v7288_v14  ;;  %v1428_v48 = vrot.slane %v1343_v40, 5 }
 0x12b   : > { %v1468_v45 = vsel %vm333_vm4, %v1268_v52, %v1380_v27 }
 0x12c   : > { %v7311_v46 = vpop.permute.xlu0 %1246  ;;  %v7313_v50 = vpop.permute.xlu1 %1302  ;;  %v1476_v20 = vsel %vm342_vm6, %v1468_v45, %v1404_v63 }
 0x12d   : > { %v1484_v61 = vsel %vm351_vm7, %v1476_v20, %v1428_v48  ;;  %v1403_v20 = vrot.slane %v1319_v16, 6 }
 0x12e   : > { %1830 = vrot.lane.b32.xlu0 %v6663_v57, %s6316_s25  ;;  %1857 = vrot.lane.b32.xlu1 %v6599_v47, %s6314_s23 }
 0x130   : > { %v7332_v53 = vpop.permute.xlu0 %1304  ;;  %v7334_v21 = vpop.permute.xlu1 %1321 }
 0x131   : > { %v1344_v45 = vsel %vm1337_vm3, %v7334_v21, %v1324_v18 }
 0x132   : > { %1903 = vrot.lane.b32.xlu0 %v6657_v55, %s6317_s3  ;;  %1905 = vrot.lane.b32.xlu1 %v6663_v57, %s6317_s3 }
 0x134   : > { %v1349_v60 = vpop.permute.xlu0 %1348  ;;  %v1351_v0 = vpop.permute.xlu1 %1350 }
 0x135   : > { %v1368_v22 = vsel %vm1362_vm13, %v1349_v60, %v1351_v0 }
 0x136   : > { %v1452_v41 = vrot.slane %v1368_v22, 4  ;;  %1882 = vrot.lane.b32.xlu0 %v6599_v47, %s6315_s24  ;;  %1928 = vrot.lane.b32.xlu1 %v6657_v55, %s6318_s4  ;;  %v1379_v22 = vrot.slane %v1294_v25, 7 }
 0x138   : > { %v1253_v51 = vpop.permute.xlu0 %1252  ;;  %v7354_v52 = vpop.permute.xlu1 %1254  ;;  %v1492_v40 = vsel %vm360_vm8, %v1484_v61, %v1452_v41  ;;  %v6319_v41 = vmov 0  }
 0x139   : > { %5276 = vmatprep.subr.msk.mxu0 %vm626_vm9, %v1492_v40  ;;  %5892 = vset.pattern.permute.xlu0 %v6319_v41 }
 0x13a   : > { %1930 = vrot.lane.b32.xlu0 %v6663_v57, %s6318_s4  ;;  %1832 = vrot.lane.b32.xlu1 %v6599_v47, %s6316_s25  ;;  %v1269_v57 = vsel %vm9076_vm2, %v7311_v46, %v1249_v29  ;;  %v1427_v29 = vrot.slane %v1344_v45, 5 }
 0x13b   : > { %6088 = vset.pattern.permute.xlu1 %v6319_v41 }
 0x13c   : > { %v7362_v27 = vpop.permute.xlu0 %1281  ;;  %v7364_v55 = vpop.permute.xlu1 %1283 }
 0x13e   : > { %1907 = vrot.lane.b32.xlu0 %v6599_v47, %s6317_s3  ;;  %1932 = vrot.lane.b32.xlu1 %v6599_v47, %s6318_s4  ;;  %v1467_v47 = vsel %vm333_vm4, %v1269_v57, %v1379_v22  ;;  %v1292_v57 = vsel %vm1287_vm15, %v7239_v59, %v7290_v28  ;;  %v1266_v22 = vsel %vm9076_vm2, %v1253_v51, %v7354_v52 }
 0x13f   : > { %v1475_v25 = vsel %vm342_vm6, %v1467_v47, %v1403_v20  ;;  %v1382_v20 = vrot.slane %v1291_v24, 7  ;;  %v1316_v59 = vsel %vm1312_vm5, %v7313_v50, %v7332_v53  ;;  %v1267_v28 = vsel %vm9076_vm2, %v7288_v14, %v1253_v51 }
 0x140   : > { %v1328_v48 = vpop.permute.xlu0 %1327  ;;  %v7380_v63 = vpop.permute.xlu1 %1329  ;;  %v1483_v45 = vsel %vm351_vm7, %v1475_v25, %v1427_v29  ;;  %v1317_v24 = vsel %vm1312_vm5, %v7279_v56, %v7313_v50 }
 0x141   : > { %v1342_v29 = vsel %vm1337_vm3, %v7304_v19, %v1328_v48  ;;  %v1470_v14 = vsel %vm333_vm4, %v1266_v22, %v1382_v20  ;;  %v1406_v19 = vrot.slane %v1316_v59, 6 }
 0x142   : > { %2687 = vperm.xlu0 %5892, %v9130_v12  }
 0x144   : > { %v7388_v61 = vpop.permute.xlu0 %1346  ;;  %v1307_v18 = vpop.permute.xlu1 %1306 }
 0x145   : > { %v1369_v40 = vsel %vm1362_vm13, %v7388_v61, %v1349_v60  ;;  %v1341_v60 = vsel %vm1337_vm3, %v1328_v48, %v7380_v63 }
 0x146   : > { %v1451_v41 = vrot.slane %v1369_v40, 4  ;;  %v1381_v40 = vrot.slane %v1292_v57, 7  ;;  %v1430_v51 = vrot.slane %v1341_v60, 5 }
 0x148   : > { %v7409_v16 = vpop.permute.xlu0 %1308  ;;  %v1353_v1 = vpop.permute.xlu1 %1352  ;;  %v1491_v47 = vsel %vm360_vm8, %v1483_v45, %v1451_v41  ;;  %v1469_v48 = vsel %vm333_vm4, %v1267_v28, %v1381_v40  ;;  %v1429_v41 = vrot.slane %v1342_v29, 5 }
 0x149   : > { %5277 = vmatpush1.msk.msra.mxu0 %vm626_vm9, %v1491_v47  ;;  %v1367_v25 = vsel %vm1362_vm13, %v1351_v0, %v1353_v1  ;;  %v1405_v47 = vrot.slane %v1317_v24, 6  ;;  %v1478_v0 = vsel %vm342_vm6, %v1470_v14, %v1406_v19  ;;  %v1290_v24 = vsel %vm1287_vm15, %v7296_v43, %v7362_v27 }
 0x14a   : > { %5278 = vmatmul.mubr.msk.f32.vlgmr.msra.gmra.mrb[0].mxu0 %vm622_vm10, %v9100_v3  ;;  %v1453_v2 = vrot.slane %v1367_v25, 4  ;;  %v1486_v22 = vsel %vm351_vm7, %v1478_v0, %v1430_v51 }
 0x14b   : > { %1732 = vmatprep.mubr.f32.mxu0 %v9129_v58  ;;  %v1477_v12 = vsel %vm342_vm6, %v1469_v48, %v1405_v47  ;;  %v1383_v48 = vrot.slane %v1290_v24, 7 }
 0x14c   : > { %v1355_v57 = vpop.permute.xlu0 %1354  ;;  %v1257_v45 = vpop.permute.xlu1 %1256  ;;  %v1485_v28 = vsel %vm351_vm7, %v1477_v12, %v1429_v41  ;;  %v1289_v12 = vsel %vm1287_vm15, %v7362_v27, %v7364_v55  ;;  %v1315_v27 = vsel %vm1312_vm5, %v7332_v53, %v1307_v18 }
 0x14d   : > { %v1366_v56 = vsel %vm1362_vm13, %v1353_v1, %v1355_v57  ;;  %v1493_v29 = vsel %vm360_vm8, %v1485_v28, %v1453_v2  ;;  %v1265_v2 = vsel %vm9076_vm2, %v7354_v52, %v1257_v45  ;;  %v1384_v41 = vrot.slane %v1289_v12, 7 }
 0x14e   : > { %v1454_v50 = vrot.slane %v1366_v56, 4  ;;  %v1314_v52 = vsel %vm1312_vm5, %v1307_v18, %v7409_v16  ;;  %v1407_v0 = vrot.slane %v1315_v27, 6 }
 0x150   : > { %v1259_v60 = vpop.permute.xlu0 %1258  ;;  %v1286_v20 = vpop.permute.xlu1 %1285  ;;  %v1494_v59 = vsel %vm360_vm8, %v1486_v22, %v1454_v50  ;;  %v1408_v22 = vrot.slane %v1314_v52, 6 }
 0x151   : > { %5279 = vmatprep.subr.msk.mxu1 %vm626_vm9, %v1494_v59  ;;  %v1264_v25 = vsel %vm9076_vm2, %v1257_v45, %v1259_v60  ;;  %v1288_v59 = vsel %vm1287_vm15, %v7364_v55, %v1286_v20  ;;  %v1295_v53 = vsel %vm1287_vm15, %v1286_v20, %v7261_v23  ;;  %vm1859_vm15 = vcmp.lt.s32.totalorder %v6428_v7, 31 }
 0x152   : > { %5280 = vmatpush1.msk.msra.mxu1 %vm626_vm9, %v1493_v29  ;;  %v1472_v47 = vsel %vm333_vm4, %v1264_v25, %v1384_v41  ;;  %v1386_v25 = vrot.slane %v1295_v53, 7 }
 0x153   : > { %5281 = vmatmul.mubr.msk.f32.vlgmr.msra.gmra.mrb[2].mxu1 %vm622_vm10, %v9100_v3  ;;  %v1480_v12 = vsel %vm342_vm6, %v1472_v47, %v1408_v22 }
 0x154   : > { %v1332_v1 = vpop.permute.xlu0 %1331  ;;  %v1334_v40 = vpop.permute.xlu1 %1333  ;;  %1803 = vmatprep.mubr.f32.mxu1 %v9129_v58 }
 0x155   : > { %v1340_v14 = vsel %vm1337_vm3, %v7380_v63, %v1332_v1  ;;  %v1339_v51 = vsel %vm1337_vm3, %v1332_v1, %v1334_v40  ;;  %v1471_v63 = vsel %vm333_vm4, %v1265_v2, %v1383_v48  ;;  %v1385_v2 = vrot.slane %v1288_v59, 7 }
 0x156   : > { %v1431_v56 = vrot.slane %v1340_v14, 5  ;;  %v1432_v50 = vrot.slane %v1339_v51, 5  ;;  %v1479_v1 = vsel %vm342_vm6, %v1471_v63, %v1407_v0 }
 0x158   : > { %v1311_v43 = vpop.permute.xlu0 %1310  ;;  %v1357_v19 = vpop.permute.xlu1 %1356  ;;  %v1488_v14 = vsel %vm351_vm7, %v1480_v12, %v1432_v50  ;;  %v1487_v55 = vsel %vm351_vm7, %v1479_v1, %v1431_v56 }
 0x159   : > { %v1365_v45 = vsel %vm1362_vm13, %v1355_v57, %v1357_v19  ;;  %v1313_v23 = vsel %vm1312_vm5, %v7409_v16, %v1311_v43  ;;  %v1320_v27 = vsel %vm1312_vm5, %v1311_v43, %v7298_v17 }
 0x15a   : > { %v1455_v29 = vrot.slane %v1365_v45, 4  ;;  %v1409_v17 = vrot.slane %v1313_v23, 6 }
 0x15c   : > { %v1359_v18 = vpop.permute.xlu0 %1358  ;;  %v1261_v28 = vpop.permute.xlu1 %1260 }
 0x15d   : > { %v1364_v57 = vsel %vm1362_vm13, %v1357_v19, %v1359_v18  ;;  %v1263_v20 = vsel %vm9076_vm2, %v1259_v60, %v1261_v28  ;;  %v1270_v51 = vsel %vm9076_vm2, %v1261_v28, %v7311_v46  ;;  %v1495_v46 = vsel %vm360_vm8, %v1487_v55, %v1455_v29 }
 0x15e   : > { %v1456_v24 = vrot.slane %v1364_v57, 4  ;;  %v1473_v60 = vsel %vm333_vm4, %v1263_v20, %v1385_v2  ;;  %v1474_v45 = vsel %vm333_vm4, %v1270_v51, %v1386_v25  ;;  %vm1934_vm2 = vcmp.lt.s32.totalorder %v6428_v7, 28 }
 0x15f   : > { %v1481_v0 = vsel %vm342_vm6, %v1473_v60, %v1409_v17 }
 0x160   : > { %v1336_v19 = vpop.permute.xlu0 %1335  ;;  %v7495_v48 = vpop.permute.xlu1 %1845  ;;  %v1496_v41 = vsel %vm360_vm8, %v1488_v14, %v1456_v24 }
 0x161   : > { %v1338_v52 = vsel %vm1337_vm3, %v1334_v40, %v1336_v19  ;;  %v1345_v16 = vsel %vm1337_vm3, %v1336_v19, %v7334_v21  ;;  %5282 = vmatprep.subr.msk.mxu0 %vm626_vm9, %v1496_v41  ;;  %v1410_v40 = vrot.slane %v1320_v27, 6  ;;  %vm1834_vm3 = vcmp.lt.s32.totalorder %v6428_v7, 32 }
 0x162   : > { %5283 = vmatpush1.msk.msra.mxu0 %vm626_vm9, %v1495_v46  ;;  %v1433_v63 = vrot.slane %v1338_v52, 5  ;;  %v1434_v47 = vrot.slane %v1345_v16, 5 }
 0x163   : > { %5284 = vmatmul.mubr.msk.f32.vlgmr.msra.gmra.mrb[2].mxu0 %vm622_vm10, %v9100_v3  ;;  %v1482_v53 = vsel %vm342_vm6, %v1474_v45, %v1410_v40 }
 0x164   : > { %v7513_v43 = vpop.permute.xlu0 %1847  ;;  %v1361_v21 = vpop.permute.xlu1 %1360  ;;  %2162 = vmatprep.mubr.f32.mxu0 %v9129_v58  ;;  %v1490_v28 = vsel %vm351_vm7, %v1482_v53, %v1434_v47  ;;  %v1489_v29 = vsel %vm351_vm7, %v1481_v0, %v1433_v63 }
 0x165   : > { %v1363_v56 = vsel %vm1362_vm13, %v1359_v18, %v1361_v21  ;;  %v1370_v50 = vsel %vm1362_vm13, %v1361_v21, %v7388_v61  ;;  %v1865_v41 = vsel %vm1859_vm15, %v7495_v48, %v7513_v43 }
 0x166   : > { %v1457_v22 = vrot.slane %v1363_v56, 4  ;;  %v1458_v59 = vrot.slane %v1370_v50, 4  ;;  %v1952_v63 = vrot.slane %v1865_v41, 7 }
 0x168   : > { %v7525_v57 = vpop.permute.xlu0 %1843  ;;  %v1871_v1 = vpop.permute.xlu1 %1870  ;;  %v1498_v24 = vsel %vm360_vm8, %v1490_v28, %v1458_v59  ;;  %v1497_v18 = vsel %vm360_vm8, %v1489_v29, %v1457_v22 }
 0x169   : > { %5285 = vmatprep.subr.msk.mxu1 %vm626_vm9, %v1498_v24 }
 0x16a   : > { %5286 = vmatpush1.msk.msra.mxu1 %vm626_vm9, %v1497_v18 }
 0x16b   : > { %5287 = vmatmul.mubr.msk.f32.vlgmr.msra.gmra.mrb[6].mxu1 %vm622_vm10, %v9100_v3 }
 0x16c   : > { %v7533_v61 = vpop.permute.xlu0 %1872  ;;  %v1821_v12 = vpop.permute.xlu1 %1820  ;;  %2233 = vmatprep.mubr.f32.mxu1 %v9129_v58 }
 0x16d   : > { %v1890_v47 = vsel %vm1884_vm12, %v1871_v1, %v7533_v61 }
 0x16e   : > { %v1976_v21 = vrot.slane %v1890_v47, 6 }
 0x170   : > { %v7536_v2 = vpop.permute.xlu0 %1822  ;;  %v1850_v25 = vpop.permute.xlu1 %1849 }
 0x171   : > { %v1840_v16 = vsel %vm1834_vm3, %v1821_v12, %v7536_v2 }
 0x172   : > { %v2040_v17 = vsel %vm333_vm4, %v1840_v16, %v1952_v63  ;;  %v1866_v16 = vsel %vm1859_vm15, %v7525_v57, %v7495_v48 }
 0x173   : > { %v2048_v59 = vsel %vm342_vm6, %v2040_v17, %v1976_v21 }
 0x174   : > { %v7538_v14 = vpop.permute.xlu0 %1851  ;;  %v7540_v55 = vpop.permute.xlu1 %1868 }
 0x175   : > { %v1891_v21 = vsel %vm1884_vm12, %v7540_v55, %v1871_v1  ;;  %v1864_v1 = vsel %vm1859_vm15, %v7513_v43, %v1850_v25 }
 0x176   : > { %v1975_v48 = vrot.slane %v1891_v21, 6 }
 0x178   : > { %v1896_v23 = vpop.permute.xlu0 %1895  ;;  %v1898_v20 = vpop.permute.xlu1 %1897 }
 0x179   : > { %v1915_v46 = vsel %vm1909_vm14, %v1896_v23, %v1898_v20 }
 0x17a   : > { %v2000_v40 = vrot.slane %v1915_v46, 5 }
 0x17c   : > { %v7543_v51 = vpop.permute.xlu0 %1818  ;;  %v1875_v19 = vpop.permute.xlu1 %1874  ;;  %v2056_v53 = vsel %vm351_vm7, %v2048_v59, %v2000_v40  ;;  %v1951_v40 = vrot.slane %v1866_v16, 7 }
 0x17d   : > { %v1841_v46 = vsel %vm1834_vm3, %v7543_v51, %v1821_v12 }
 0x17e   : > { %v7552_v27 = vpop.f32.mrb[0].mxu1 }
 0x17f   : > { %v7554_v52 = vpop.f32.mrb[1].mxu1 }
 0x180   : > { %v7561_v60 = vpop.permute.xlu0 %1876  ;;  %v7563_v45 = vpop.permute.xlu1 %1893 }
 0x181   : > { %v1916_v63 = vsel %vm1909_vm14, %v7563_v45, %v1896_v23  ;;  %v1863_v23 = vsel %vm1859_vm15, %v1850_v25, %v7538_v14 }
 0x184   : > { %v1921_v56 = vpop.permute.xlu0 %1920  ;;  %v1923_v50 = vpop.permute.xlu1 %1922 }
 0x185   : > { %v1940_v0 = vsel %vm1934_vm2, %v1921_v56, %v1923_v50 }
 0x186   : > { %v2024_v22 = vrot.slane %v1940_v0, 4  ;;  %v2039_v0 = vsel %vm333_vm4, %v1841_v46, %v1951_v40 }
 0x188   : > { %v1825_v28 = vpop.permute.xlu0 %1824  ;;  %v7574_v29 = vpop.permute.xlu1 %1826  ;;  %v2064_v24 = vsel %vm360_vm8, %v2056_v53, %v2024_v22  ;;  %v1999_v22 = vrot.slane %v1916_v63, 5 }
 0x189   : > { %5288 = vmatprep.subr.msk.mxu0 %vm626_vm9, %v2064_v24  ;;  %v2047_v24 = vsel %vm342_vm6, %v2039_v0, %v1975_v48  ;;  %v1838_v63 = vsel %vm1834_vm3, %v1825_v28, %v7574_v29  ;;  %v1954_v0 = vrot.slane %v1863_v23, 7  ;;  %v1888_v48 = vsel %vm1884_vm12, %v1875_v19, %v7561_v60 }
 0x18a   : > { %v2055_v46 = vsel %vm351_vm7, %v2047_v24, %v1999_v22  ;;  %v1839_v43 = vsel %vm1834_vm3, %v7536_v2, %v1825_v28  ;;  %v1953_v22 = vrot.slane %v1864_v1, 7  ;;  %v1978_v2 = vrot.slane %v1888_v48, 6 }
 0x18b   : > { %v2042_v24 = vsel %vm333_vm4, %v1838_v63, %v1954_v0 }
 0x18c   : > { %v7578_v18 = vpop.permute.xlu0 %1853  ;;  %v7580_v41 = vpop.permute.xlu1 %1855 }
 0x190   : > { %v1900_v47 = vpop.permute.xlu0 %1899  ;;  %v7592_v17 = vpop.permute.xlu1 %1901 }
 0x191   : > { %v1914_v25 = vsel %vm1909_vm14, %v1898_v20, %v1900_v47  ;;  %v2041_v20 = vsel %vm333_vm4, %v1839_v43, %v1953_v22 }
 0x194   : > { %v7598_v59 = vpop.permute.xlu0 %1918  ;;  %v1879_v53 = vpop.permute.xlu1 %1878 }
 0x195   : > { %v1941_v12 = vsel %vm1934_vm2, %v7598_v59, %v1921_v56  ;;  %v1913_v56 = vsel %vm1909_vm14, %v1900_v47, %v7592_v17 }
 0x196   : > { %v2023_v16 = vrot.slane %v1941_v12, 4  ;;  %v1889_v12 = vsel %vm1884_vm12, %v7533_v61, %v1875_v19 }
 0x197   : > { %v1977_v1 = vrot.slane %v1889_v12, 6 }
 0x198   : > { %v1881_v40 = vpop.permute.xlu0 %1880  ;;  %v1925_v21 = vpop.permute.xlu1 %1924  ;;  %v2063_v3 = vsel %vm360_vm8, %v2055_v46, %v2023_v16  ;;  %v2002_v16 = vrot.slane %v1913_v56, 5 }
 0x199   : > { %5289 = vmatpush1.msk.msra.mxu0 %vm626_vm9, %v2063_v3  ;;  %v1939_v23 = vsel %vm1934_vm2, %v1923_v50, %v1925_v21  ;;  %v2001_v3 = vrot.slane %v1914_v25, 5  ;;  %v2050_v50 = vsel %vm342_vm6, %v2042_v24, %v1978_v2  ;;  %v2049_v31 = vsel %vm342_vm6, %v2041_v20, %v1977_v1 }
 0x19a   : > { %5290 = vmatmul.mubr.msk.f32.vlgmr.msra.gmra.mrb[0].mxu0 %vm622_vm10, %v9099_v4  ;;  %v2025_v46 = vrot.slane %v1939_v23, 4  ;;  %v2058_v63 = vsel %vm351_vm7, %v2050_v50, %v2002_v16  ;;  %v1861_v24 = vsel %vm1859_vm15, %v7578_v18, %v7580_v41  ;;  %v1887_v16 = vsel %vm1884_vm12, %v7561_v60, %v1879_v53 }
 0x19b   : > { %2304 = vmatprep.mubr.f32.mxu0 %v9129_v58  ;;  %v2057_v43 = vsel %vm351_vm7, %v2049_v31, %v2001_v3  ;;  %v1862_v31 = vsel %vm1859_vm15, %v7538_v14, %v7578_v18  ;;  %v1886_v60 = vsel %vm1884_vm12, %v1879_v53, %v1881_v40 }
 0x19c   : > { %v1927_v28 = vpop.permute.xlu0 %1926  ;;  %v1829_v47 = vpop.permute.xlu1 %1828  ;;  %v2065_v25 = vsel %vm360_vm8, %v2057_v43, %v2025_v46  ;;  %v1955_v20 = vrot.slane %v1862_v31, 7 }
 0x19d   : > { %v1938_v61 = vsel %vm1934_vm2, %v1925_v21, %v1927_v28  ;;  %v1837_v2 = vsel %vm1834_vm3, %v7574_v29, %v1829_v47 }
 0x19e   : > { %v2026_v19 = vrot.slane %v1938_v61, 4  ;;  %v1956_v61 = vrot.slane %v1861_v24, 7  ;;  %v2043_v50 = vsel %vm333_vm4, %v1837_v2, %v1955_v20 }
 0x1a0   : > { %v1831_v56 = vpop.permute.xlu0 %1830  ;;  %v1858_v0 = vpop.permute.xlu1 %1857  ;;  %v2066_v48 = vsel %vm360_vm8, %v2058_v63, %v2026_v19  ;;  %v1979_v19 = vrot.slane %v1887_v16, 6 }
 0x1a1   : > { %5291 = vmatprep.subr.msk.mxu1 %vm626_vm9, %v2066_v48  ;;  %v1836_v3 = vsel %vm1834_vm3, %v1829_v47, %v1831_v56  ;;  %v1860_v47 = vsel %vm1859_vm15, %v7580_v41, %v1858_v0  ;;  %v1867_v63 = vsel %vm1859_vm15, %v1858_v0, %v7525_v57  ;;  %vm3179_vm15 = vcmask 121856  }
 0x1a2   : > { %5292 = vmatpush1.msk.msra.mxu1 %vm626_vm9, %v2065_v25  ;;  %v1980_v25 = vrot.slane %v1886_v60, 6  ;;  %v2051_v41 = vsel %vm342_vm6, %v2043_v50, %v1979_v19  ;;  %v1958_v2 = vrot.slane %v1867_v63, 7 }
 0x1a3   : > { %5293 = vmatmul.mubr.msk.f32.vlgmr.msra.gmra.mrb[2].mxu1 %vm622_vm10, %v9099_v4  ;;  %v7649_v21 = vpop.f32.mrb[4].mxu1 }
 0x1a4   : > { %v1904_v22 = vpop.permute.xlu0 %1903  ;;  %v1906_v12 = vpop.permute.xlu1 %1905  ;;  %2375 = vmatprep.mubr.f32.mxu1 %v9129_v58 }
 0x1a5   : > { %v7656_v23 = vpop.f32.mrb[5].mxu1  ;;  %v1912_v14 = vsel %vm1909_vm14, %v7592_v17, %v1904_v22  ;;  %v1911_v1 = vsel %vm1909_vm14, %v1904_v22, %v1906_v12  ;;  %v2044_v17 = vsel %vm333_vm4, %v1836_v3, %v1956_v61 }
 0x1a6   : > { %v2003_v48 = vrot.slane %v1912_v14, 5  ;;  %v2004_v43 = vrot.slane %v1911_v1, 5 }
 0x1a8   : > { %v1883_v18 = vpop.permute.xlu0 %1882  ;;  %v1929_v46 = vpop.permute.xlu1 %1928 }
 0x1a9   : > { %v1937_v29 = vsel %vm1934_vm2, %v1927_v28, %v1929_v46  ;;  %v1885_v53 = vsel %vm1884_vm12, %v1881_v40, %v1883_v18  ;;  %v1892_v28 = vsel %vm1884_vm12, %v1883_v18, %v7540_v55  ;;  %v1957_v40 = vrot.slane %v1860_v47, 7 }
 0x1aa   : > { %v2027_v22 = vrot.slane %v1937_v29, 4  ;;  %v2052_v55 = vsel %vm342_vm6, %v2044_v17, %v1980_v25  ;;  %v1981_v3 = vrot.slane %v1885_v53, 6  ;;  %v1982_v14 = vrot.slane %v1892_v28, 6 }
 0x1ab   : > { %v2060_v1 = vsel %vm351_vm7, %v2052_v55, %v2004_v43  ;;  %v2059_v18 = vsel %vm351_vm7, %v2051_v41, %v2003_v48 }
 0x1ac   : > { %v1931_v31 = vpop.permute.xlu0 %1930  ;;  %v1833_v24 = vpop.permute.xlu1 %1832 }
 0x1ad   : > { %v1936_v16 = vsel %vm1934_vm2, %v1929_v46, %v1931_v31  ;;  %v1835_v57 = vsel %vm1834_vm3, %v1831_v56, %v1833_v24  ;;  %v1842_v0 = vsel %vm1834_vm3, %v1833_v24, %v7543_v51  ;;  %v2067_v51 = vsel %vm360_vm8, %v2059_v18, %v2027_v22 }
 0x1ae   : > { %v2028_v20 = vrot.slane %v1936_v16, 4  ;;  %v2045_v46 = vsel %vm333_vm4, %v1835_v57, %v1957_v40  ;;  %v2046_v61 = vsel %vm333_vm4, %v1842_v0, %v1958_v2 }
 0x1b0   : > { %v1908_v56 = vpop.permute.xlu0 %1907  ;;  %v1933_v60 = vpop.permute.xlu1 %1932  ;;  %v2068_v29 = vsel %vm360_vm8, %v2060_v1, %v2028_v20 }
 0x1b1   : > { %v1910_v19 = vsel %vm1909_vm14, %v1906_v12, %v1908_v56  ;;  %v1917_v50 = vsel %vm1909_vm14, %v1908_v56, %v7563_v45  ;;  %v1935_v47 = vsel %vm1934_vm2, %v1931_v31, %v1933_v60  ;;  %v1942_v17 = vsel %vm1934_vm2, %v1933_v60, %v7598_v59  ;;  %5294 = vmatprep.subr.msk.mxu0 %vm626_vm9, %v2068_v29 }
 0x1b2   : > { %v2005_v63 = vrot.slane %v1910_v19, 5  ;;  %v2006_v48 = vrot.slane %v1917_v50, 5  ;;  %v2029_v43 = vrot.slane %v1935_v47, 4  ;;  %v2030_v25 = vrot.slane %v1942_v17, 4  ;;  %5295 = vmatpush1.msk.msra.mxu0 %vm626_vm9, %v2067_v51 }
 0x1b3   : > { %v2053_v12 = vsel %vm342_vm6, %v2045_v46, %v1981_v3  ;;  %5296 = vmatmul.mubr.msk.f32.vlgmr.msra.gmra.mrb[2].mxu0 %vm622_vm10, %v9099_v4  ;;  %5300 = vmatprep.subr.msk.mxu0 %vm626_vm9, %v7155_v15  ;;  %v2054_v45 = vsel %vm342_vm6, %v2046_v61, %v1982_v14  ;;  %vm6324_vm14 = vmmov 1  }
 0x1b4   : > { %5301 = vmatpush1.msk.msra.mxu0 %vm626_vm9, %v7082_v62  ;;  %v2062_v59 = vsel %vm351_vm7, %v2054_v45, %v2006_v48  ;;  %2457 = vmatprep.mubr.f32.mxu0 %v9129_v58  ;;  %v2061_v53 = vsel %vm351_vm7, %v2053_v12, %v2005_v63 }
 0x1b5   : > { %5306 = vmatprep.subr.msk.mxu0 %vm626_vm9, %v7269_v44  ;;  %v2070_v28 = vsel %vm360_vm8, %v2062_v59, %v2030_v25  ;;  %v2069_v22 = vsel %vm360_vm8, %v2061_v53, %v2029_v43 }
 0x1b6   : > { %5297 = vmatprep.subr.msk.mxu1 %vm626_vm9, %v2070_v28 }
 0x1b7   : > { %5298 = vmatpush1.msk.msra.mxu1 %vm626_vm9, %v2069_v22  ;;  %5302 = vmatmul.mubr.msk.f32.vlgmr.msra.gmra.mrb[0].mxu0 %vm622_vm10, %v9098_v5 }
 0x1b8   : > { %5307 = vmatpush1.msk.msra.mxu0 %vm626_vm9, %v7221_v54  ;;  %5299 = vmatmul.mubr.msk.f32.vlgmr.msra.gmra.mrb[6].mxu1 %vm622_vm10, %v9099_v4 }
 0x1b9   : > { %5303 = vmatprep.subr.msk.mxu1 %vm626_vm9, %v7224_v26  ;;  %2599 = vmatprep.mubr.f32.mxu0 %v9129_v58 }
 0x1ba   : > { %5304 = vmatpush1.msk.msra.mxu1 %vm626_vm9, %v7152_v49  ;;  %2528 = vmatprep.mubr.f32.mxu1 %v9129_v58 }
 0x1bb   : > { %5309 = vmatprep.subr.msk.mxu1 %vm626_vm9, %v7124_v39  ;;  %5308 = vmatmul.mubr.msk.f32.vlgmr.msra.gmra.mrb[2].mxu0 %vm622_vm10, %v9098_v5 }
 0x1bc   : > { %5305 = vmatmul.mubr.msk.f32.vlgmr.msra.gmra.mrb[2].mxu1 %vm622_vm10, %v9098_v5  ;;  %3266 = vmatprep.mubr.f32.mxu0 %v9129_v58 }
 0x1bd   : > { %5310 = vmatpush1.msk.msra.mxu1 %vm626_vm9, %v7266_v42  ;;  %2670 = vmatprep.mubr.f32.mxu1 %v9129_v58  ;;  %vm9132_vm9 = vcmp.lt.s32.totalorder %v6428_v7, 64 }
 0x1be   : > { %vm9133_vm12 = vmmov %vm9132_vm9 }
 0x1bf   : > { %vm9136_vm3 = vmmov %vm9132_vm9 }
 0x1c0   : > { %5311 = vmatmul.mubr.msk.f32.vlgmr.msra.gmra.mrb[6].mxu1 %vm622_vm10, %v9098_v5  ;;  %vm2962_vm10 = vcmask 1045504  }
 0x1c1   : > { %3337 = vmatprep.mubr.f32.mxu1 %v9129_v58  ;;  %v2688_v15 = vpop.permute.xlu0 %2687 }
 0x28a   : > { %v2459_v62 = vpop.f32.mrb[0].mxu0 }
 0x28b   : > { %v5595_v39 = vadd.f32 %v2459_v62, %v7552_v27  ;;  %v2461_v49 = vpop.f32.mrb[1].mxu0 }
 0x28c   : > { %v5596_v54 = vadd.f32 %v2461_v49, %v7554_v52 }
 0x28d   : > { %v7774_v20 = vadd.f32 %v5595_v39, %v2688_v15 }
 0x28e   : > { %v2601_v26 = vpop.f32.mrb[2].mxu0  ;;  %v2691_v44 = vadd.f32 %v5596_v54, %v2688_v15 }
 0x28f   : > { %v5597_v31 = vadd.f32 %v2601_v26, %v7649_v21  ;;  %v2530_v24 = vpop.f32.mrb[2].mxu1  ;;  %v2603_v42 = vpop.f32.mrb[3].mxu0  ;;  %v2698_v46 = vmax.f32 %v7774_v20, 0.0 }
 0x290   : > { %v7764_v41 = vadd.f32 %v2688_v15, %v2530_v24  ;;  %v5598_v16 = vadd.f32 %v2603_v42, %v7656_v23  ;;  %v2532_v57 = vpop.f32.mrb[3].mxu1  ;;  %v2699_v52 = vmax.f32 %v2691_v44, 0.0 }
 0x291   : > { %v7767_v0 = vadd.f32 %v5597_v31, %v2688_v15  ;;  %v7769_v40 = vadd.f32 %v2688_v15, %v2532_v57 }
 0x292   : > { %v2700_v27 = vmax.f32 %v7764_v41, 0.0  ;;  %v7772_v2 = vadd.f32 %v5598_v16, %v2688_v15 }
 0x293   : > { %v2702_v21 = vmax.f32 %v7767_v0, 0.0  ;;  %v2672_v55 = vpop.f32.mrb[6].mxu1  ;;  %v2701_v14 = vmax.f32 %v7769_v40, 0.0 }
 0x294   : > { %v2703_v3 = vmax.f32 %v7772_v2, 0.0  ;;  %v2674_v23 = vpop.f32.mrb[7].mxu1  ;;  %v5903_v1 = vpack.i.bf16 %v2700_v27, %v2699_v52  ;;  %v7791_v56 = vadd.f32 %v2688_v15, %v2672_v55 }
 0x295   : > { %v5923_v61 = vpack.i.bf16 %v2698_v46, %v2701_v14  ;;  %v7793_v60 = vadd.f32 %v2688_v15, %v2674_v23 }
 0x296   : > { %5904 = vrot.lane.b32.xlu1 %v5903_v1, %s6305_s15  ;;  %v5893_v18 = vpack.i.bf16 %v2703_v3, %v2702_v21  ;;  %v2704_v29 = vmax.f32 %v7791_v56, 0.0 }
 0x297   : > { %v2705_v51 = vmax.f32 %v7793_v60, 0.0 }
 0x298   : > { %5894 = vrot.lane.b32.xlu0 %v5893_v18, %s6305_s15 }
 0x299   : > { %v5938_v19 = vpack.i.bf16 %v2705_v51, %v2704_v29 }
 0x29a   : > { %5924 = vrot.lane.b32.xlu1 %v5923_v61, %s6305_s15 }
 0x29c   : > { %5899 = vrot.lane.b32.xlu0 %v5893_v18, %s6301_s30 }
 0x29e   : > { %5929 = vrot.lane.b32.xlu1 %v5923_v61, %s6301_s30 }
 0x2a0   : > { %5909 = vrot.lane.b32.xlu0 %v5903_v1, %s6301_s30 }
 0x2a2   : > { %5934 = vrot.lane.b32.xlu1 %v5923_v61, %s6299_s28 }
 0x2a4   : > { %5914 = vrot.lane.b32.xlu0 %v5903_v1, %s6299_s28 }
 0x2a6   : > { %5939 = vrot.lane.b32.xlu1 %v5938_v19, %s6305_s15 }
 0x2a8   : > { %5919 = vrot.lane.b32.xlu0 %v5893_v18, %s6299_s28 }
 0x2aa   : > { %5944 = vrot.lane.b32.xlu1 %v5938_v19, %s6301_s30  ;;  %s6325_s30 = smov 116  }
 0x2ae   : > { %5949 = vrot.lane.b32.xlu1 %v5938_v19, %s6299_s28  ;;  %s6322_s28 = smov 122  }
 0x308   : > { %v5905_v50 = vpop.permute.xlu1 %5904 }
 0x309   : > { %v5907_v43 = vunpack.i.h.bf16 %v5905_v50  ;;  %v5906_v25 = vunpack.i.l.bf16 %v5905_v50 }
 0x30a   : > { %v7810_v47 = vpop.permute.xlu0 %5894 }
 0x30b   : > { %v2727_v28 = vsel %vm153_vm11, %v5906_v25, %v5907_v43  ;;  %v5896_v42 = vunpack.i.l.bf16 %v7810_v47 }
 0x30c   : > { %v5925_v17 = vpop.permute.xlu1 %5924  ;;  %v2731_v24 = vmax.f32 %v2699_v52, %v2727_v28 }
 0x30d   : > { %v5926_v12 = vunpack.i.l.bf16 %v5925_v17  ;;  %v5927_v62 = vunpack.i.h.bf16 %v5925_v17 }
 0x30e   : > { %v7812_v63 = vpop.permute.xlu0 %5899 }
 0x30f   : > { %v2726_v39 = vsel %vm153_vm11, %v5907_v43, %v5926_v12  ;;  %v2728_v18 = vsel %vm153_vm11, %v5927_v62, %v5906_v25  ;;  %v5901_v43 = vunpack.i.l.bf16 %v7812_v63 }
 0x310   : > { %v5930_v48 = vpop.permute.xlu1 %5929  ;;  %v2732_v61 = vmax.f32 %v2700_v27, %v2726_v39 }
 0x311   : > { %v5931_v49 = vunpack.i.l.bf16 %v5930_v48  ;;  %v5932_v41 = vunpack.i.h.bf16 %v5930_v48  ;;  %v2725_v48 = vsel %vm153_vm11, %v5926_v12, %v5896_v42 }
 0x312   : > { %v5910_v45 = vpop.permute.xlu0 %5909 }
 0x313   : > { %v5912_v59 = vunpack.i.h.bf16 %v5910_v45  ;;  %v5911_v22 = vunpack.i.l.bf16 %v5910_v45  ;;  %v2757_v25 = vsel %vm385_vm1, %v5931_v49, %v5901_v43 }
 0x314   : > { %v5935_v53 = vpop.permute.xlu1 %5934 }
 0x315   : > { %v5937_v54 = vunpack.i.h.bf16 %v5935_v53  ;;  %v5936_v26 = vunpack.i.l.bf16 %v5935_v53  ;;  %v2758_v16 = vsel %vm385_vm1, %v5912_v59, %v5931_v49  ;;  %v2759_v55 = vsel %vm385_vm1, %v5911_v22, %v5912_v59 }
 0x316   : > { %v5915_v15 = vpop.permute.xlu0 %5914  ;;  %v2760_v45 = vsel %vm385_vm1, %v5932_v41, %v5911_v22  ;;  %v2733_v22 = vmax.f32 %v2701_v14, %v2725_v48 }
 0x317   : > { %v5917_v44 = vunpack.i.h.bf16 %v5915_v15  ;;  %v5916_v31 = vunpack.i.l.bf16 %v5915_v15 }
 0x318   : > { %v7821_v57 = vpop.permute.xlu1 %5939 }
 0x319   : > { %v2782_v23 = vsel %vm410_vm0, %v5917_v44, %v5936_v26  ;;  %v2783_v1 = vsel %vm410_vm0, %v5916_v31, %v5917_v44  ;;  %v2784_v52 = vsel %vm410_vm0, %v5937_v54, %v5916_v31  ;;  %v5942_v39 = vunpack.i.h.bf16 %v7821_v57 }
 0x31a   : > { %v2787_v19 = vmax.f32 %v2759_v55, %v2783_v1  ;;  %v2788_v50 = vmax.f32 %v2758_v16, %v2782_v23  ;;  %v5920_v17 = vpop.permute.xlu0 %5919  ;;  %v2786_v53 = vmax.f32 %v2760_v45, %v2784_v52  ;;  %v2730_v44 = vmax.f32 %v2698_v46, %v2728_v18 }
 0x31b   : > { %v5921_v59 = vunpack.i.l.bf16 %v5920_v17  ;;  %v2729_v1 = vsel %vm153_vm11, %v5942_v39, %v5927_v62  ;;  %v5897_v18 = vunpack.i.h.bf16 %v7810_v47 }
 0x31c   : > { %v7840_v28 = vmax.f32 %v2731_v24, %v2787_v19  ;;  %v7842_v15 = vmax.f32 %v2732_v61, %v2788_v50  ;;  %v5945_v27 = vpop.permute.xlu1 %5944  ;;  %v7855_v55 = vmax.f32 %v2730_v44, %v2786_v53  ;;  %v5902_v61 = vunpack.i.h.bf16 %v7812_v63 }
 0x31d   : > { %v2781_v12 = vsel %vm410_vm0, %v5936_v26, %v5921_v59  ;;  %v5947_v24 = vunpack.i.h.bf16 %v5945_v27  ;;  %v2737_v26 = vmax.f32 %v2705_v51, %v2729_v1  ;;  %v5941_v51 = vunpack.i.l.bf16 %v7821_v57 }
 0x31e   : > { %v2789_v31 = vmax.f32 %v2757_v25, %v2781_v12  ;;  %v5953_v16 = vpack.i.bf16 %v7842_v15, %v7840_v28  ;;  %v2724_v63 = vsel %vm153_vm11, %v5896_v42, %v5897_v18  ;;  %v2756_v45 = vsel %vm385_vm1, %v5901_v43, %v5902_v61 }
 0x31f   : > { %v2761_v14 = vsel %vm385_vm1, %v5947_v24, %v5932_v41  ;;  %v5946_v41 = vunpack.i.l.bf16 %v5945_v27  ;;  %v2723_v50 = vsel %vm153_vm11, %v5897_v18, %v5941_v51  ;;  %v2734_v47 = vmax.f32 %v2702_v21, %v2724_v63 }
 0x320   : > { %v7857_v23 = vmax.f32 %v2733_v22, %v2789_v31  ;;  %v5950_v49 = vpop.permute.xlu1 %5949  ;;  %5954 = vrot.lane.b32.xlu0 %v5953_v16, %s6310_s19  ;;  %5959 = vrot.lane.b32.xlu1 %v5953_v16, %s6313_s22  ;;  %v2735_v27 = vmax.f32 %v2703_v3, %v2723_v50  ;;  %v2722_v42 = vsel %vm153_vm11, %v5941_v51, %v5942_v39  ;;  %vm3183_vm11 = vcmask 1046528  }
 0x321   : > { %v5952_v20 = vunpack.i.h.bf16 %v5950_v49  ;;  %v5951_v60 = vunpack.i.l.bf16 %v5950_v49  ;;  %v2754_v43 = vsel %vm385_vm1, %v5946_v41, %v5947_v24  ;;  %v2736_v2 = vmax.f32 %v2704_v29, %v2722_v42  ;;  %vm8045_vm2 = vmpackc.low %vm3183_vm11, %vm6324_vm14 }
 0x322   : > { %v5968_v40 = vpack.i.bf16 %v7857_v23, %v7855_v55  ;;  %vm9137_vm11 = vcmp.lt.s32.totalorder %v6428_v7, 126  ;;  %vm9138_vm14 = vcmp.lt.s32.totalorder %v6428_v7, 124 }
 0x323   : > { %v2785_v46 = vsel %vm410_vm0, %v5952_v20, %v5937_v54  ;;  %v5922_v54 = vunpack.i.h.bf16 %v5920_v17  ;;  %v2755_v17 = vsel %vm385_vm1, %v5902_v61, %v5946_v41  ;;  %v2778_v53 = vsel %vm410_vm0, %v5951_v60, %v5952_v20 }
 0x324   : > { %v2793_v52 = vmax.f32 %v2761_v14, %v2785_v46  ;;  %5964 = vrot.lane.b32.xlu0 %v5953_v16, %s6320_s26  ;;  %5969 = vrot.lane.b32.xlu1 %v5968_v40, %s6310_s19  ;;  %vm3076_vm1 = vcmp.lt.s32.totalorder %v6428_v7, 56 }
 0x325   : > { %v2779_v19 = vsel %vm410_vm0, %v5922_v54, %v5951_v60  ;;  %v2780_v57 = vsel %vm410_vm0, %v5921_v59, %v5922_v54  ;;  %v2792_v59 = vmax.f32 %v2754_v43, %v2778_v53  ;;  %vm3055_vm0 = vcmp.lt.s32.totalorder %v6428_v7, 58 }
 0x326   : > { %v7873_v62 = vmax.f32 %v2737_v26, %v2793_v52  ;;  %v2791_v48 = vmax.f32 %v2755_v17, %v2779_v19  ;;  %v2790_v25 = vmax.f32 %v2756_v45, %v2780_v57 }
 0x327   : > { %v7922_v0 = vmax.f32 %v2736_v2, %v2792_v59 }
 0x328   : > { %5974 = vrot.lane.b32.xlu0 %v5968_v40, %s6313_s22  ;;  %5979 = vrot.lane.b32.xlu1 %v5968_v40, %s6320_s26  ;;  %v7914_v12 = vmax.f32 %v2735_v27, %v2791_v48  ;;  %v7918_v3 = vmax.f32 %v2734_v47, %v2790_v25 }
 0x32a   : > { %v6043_v21 = vpack.i.bf16 %v7914_v12, %v7918_v3 }
 0x32c   : > { %5984 = vrot.lane.b32.xlu0 %v5953_v16, %s6321_s27  ;;  %5989 = vrot.lane.b32.xlu1 %v5953_v16, %s6311_s20 }
 0x330   : > { %5994 = vrot.lane.b32.xlu0 %v5968_v40, %s6321_s27  ;;  %5999 = vrot.lane.b32.xlu1 %v5968_v40, %s6311_s20 }
 0x334   : > { %6004 = vrot.lane.b32.xlu0 %v5953_v16, %s6306_s16  ;;  %6009 = vrot.lane.b32.xlu1 %v5953_v16, %s6308_s18 }
 0x338   : > { %6014 = vrot.lane.b32.xlu0 %v5953_v16, %s6322_s28  ;;  %6019 = vrot.lane.b32.xlu1 %v5968_v40, %s6306_s16 }
 0x33c   : > { %6024 = vrot.lane.b32.xlu0 %v5968_v40, %s6308_s18  ;;  %6029 = vrot.lane.b32.xlu1 %v5968_v40, %s6322_s28 }
 0x340   : > { %6034 = vrot.lane.b32.xlu0 %v5953_v16, %s6323_s29  ;;  %6039 = vrot.lane.b32.xlu1 %v5968_v40, %s6323_s29 }
 0x344   : > { %6044 = vrot.lane.b32.xlu0 %v6043_v21, %s6310_s19  ;;  %3013 = vrot.lane.b32.xlu1 %v7922_v0, %s6310_s19 }
 0x348   : > { %6049 = vrot.lane.b32.xlu0 %v6043_v21, %s6313_s22  ;;  %3033 = vrot.lane.b32.xlu1 %v7922_v0, %s6313_s22 }
 0x34c   : > { %6054 = vrot.lane.b32.xlu0 %v6043_v21, %s6320_s26  ;;  %3053 = vrot.lane.b32.xlu1 %v7922_v0, %s6320_s26 }
 0x350   : > { %6059 = vrot.lane.b32.xlu0 %v6043_v21, %s6321_s27  ;;  %3074 = vrot.lane.b32.xlu1 %v7922_v0, %s6321_s27 }
 0x354   : > { %6064 = vrot.lane.b32.xlu0 %v6043_v21, %s6311_s20  ;;  %2993 = vrot.lane.b32.xlu1 %v7922_v0, %s6311_s20 }
 0x358   : > { %6069 = vrot.lane.b32.xlu0 %v6043_v21, %s6306_s16  ;;  %2814 = vrot.lane.b32.xlu1 %v7922_v0, %s6306_s16 }
 0x35c   : > { %6074 = vrot.lane.b32.xlu0 %v6043_v21, %s6308_s18  ;;  %2834 = vrot.lane.b32.xlu1 %v7922_v0, %s6308_s18 }
 0x360   : > { %6079 = vrot.lane.b32.xlu0 %v6043_v21, %s6322_s28  ;;  %2854 = vrot.lane.b32.xlu1 %v7922_v0, %s6322_s28 }
 0x364   : > { %6084 = vrot.lane.b32.xlu0 %v6043_v21, %s6323_s29  ;;  %2875 = vrot.lane.b32.xlu1 %v7922_v0, %s6323_s29 }
 0x368   : > { %3649 = vrot.lane.b32.xlu0 %v7873_v62, %s6306_s16  ;;  %3652 = vrot.lane.b32.xlu1 %v7873_v62, %s6308_s18 }
 0x36c   : > { %3655 = vrot.lane.b32.xlu0 %v7873_v62, %s6322_s28  ;;  %3658 = vrot.lane.b32.xlu1 %v7873_v62, %s6323_s29 }
 0x370   : > { %3905 = vrot.lane.b32.xlu0 %v7873_v62, %s6310_s19  ;;  %3908 = vrot.lane.b32.xlu1 %v7873_v62, %s6313_s22 }
 0x374   : > { %3911 = vrot.lane.b32.xlu0 %v7873_v62, %s6320_s26  ;;  %3914 = vrot.lane.b32.xlu1 %v7873_v62, %s6321_s27 }
 0x378   : > { %3902 = vrot.lane.b32.xlu0 %v7873_v62, %s6311_s20  ;;  %4405 = vperm.xlu1 %6088, %v9131_v13  }
 0x392   : > { %v7972_v56 = vpop.permute.xlu0 %5954  ;;  %v7974_v29 = vpop.permute.xlu1 %5959 }
 0x393   : > { %v5957_v22 = vunpack.i.h.bf16 %v7972_v56  ;;  %v5956_v31 = vunpack.i.l.bf16 %v7972_v56  ;;  %v5962_v24 = vunpack.i.h.bf16 %v7974_v29  ;;  %v5961_v16 = vunpack.i.l.bf16 %v7974_v29 }
 0x395   : > { %v3019_v26 = vsel %vm1312_vm5, %v5956_v31, %v5957_v22  ;;  %v3039_v60 = vsel %vm1362_vm13, %v5961_v16, %v5962_v24 }
 0x396   : > { %v7976_v39 = vpop.permute.xlu0 %5964  ;;  %v7978_v44 = vpop.permute.xlu1 %5969  ;;  %v3090_v17 = vrot.slane %v3019_v26, 5  ;;  %v3108_v25 = vrot.slane %v3039_v60, 2 }
 0x397   : > { %v5967_v49 = vunpack.i.h.bf16 %v7976_v39  ;;  %v5966_v1 = vunpack.i.l.bf16 %v7976_v39  ;;  %v5971_v52 = vunpack.i.l.bf16 %v7978_v44  ;;  %v9146_v33 = vunpack.i.h.bf16 %v7978_v44 }
 0x399   : > { %v3060_v51 = vsel %vm3055_vm0, %v5966_v1, %v5967_v49  ;;  %v3020_v45 = vsel %vm1312_vm5, %v5971_v52, %v5956_v31 }
 0x39a   : > { %v7986_v20 = vpop.permute.xlu0 %5974  ;;  %v7988_v40 = vpop.permute.xlu1 %5979  ;;  %v3126_v48 = vrot.slane %v3060_v51, 7 }
 0x39b   : > { %v5976_v14 = vunpack.i.l.bf16 %v7986_v20  ;;  %v5981_v46 = vunpack.i.l.bf16 %v7988_v40  ;;  %v9148_v35 = vunpack.i.h.bf16 %v7986_v20 }
 0x39c   : > { %v3168_v26 = vsel %vm333_vm4, %v3108_v25, %v3126_v48 }
 0x39d   : > { %v3040_v54 = vsel %vm1362_vm13, %v5976_v14, %v5961_v16  ;;  %v3061_v63 = vsel %vm3055_vm0, %v5981_v46, %v5966_v1  ;;  %v3089_v1 = vrot.slane %v3020_v45, 5 }
 0x39e   : > { %v8009_v41 = vpop.permute.xlu0 %5984  ;;  %v5990_v18 = vpop.permute.xlu1 %5989  ;;  %v3107_v47 = vrot.slane %v3040_v54, 2  ;;  %v3125_v2 = vrot.slane %v3061_v63, 7 }
 0x39f   : > { %v5987_v61 = vunpack.i.h.bf16 %v8009_v41  ;;  %v5986_v19 = vunpack.i.l.bf16 %v8009_v41  ;;  %v5992_v50 = vunpack.i.h.bf16 %v5990_v18  ;;  %v5991_v57 = vunpack.i.l.bf16 %v5990_v18 }
 0x3a0   : > { %v3167_v63 = vsel %vm333_vm4, %v3107_v47, %v3125_v2 }
 0x3a1   : > { %v3081_v53 = vsel %vm3076_vm1, %v5986_v19, %v5987_v61  ;;  %v2999_v27 = vsel %vm9132_vm9, %v5991_v57, %v5992_v50  ;;  %vm2856_vm9 = vcmp.lt.s32.totalorder %v6428_v7, 122 }
 0x3a2   : > { %v3144_v42 = vrot.slane %v3081_v53, 4  ;;  %v8023_v43 = vpop.permute.xlu0 %5994  ;;  %v8025_v59 = vpop.permute.xlu1 %5999  ;;  %v3156_v21 = vsel %vm351_vm7, %v2999_v27, %v3090_v17 }
 0x3a3   : > { %v5996_v31 = vunpack.i.l.bf16 %v8023_v43  ;;  %v6001_v16 = vunpack.i.l.bf16 %v8025_v59  ;;  %v3162_v18 = vsel %vm2962_vm10, %v3156_v21, %v3108_v25  ;;  %v9082_v25 = vunpack.i.h.bf16 %v7978_v44 }
 0x3a4   : > { %v3174_v17 = vsel %vm360_vm8, %v3168_v26, %v3144_v42  ;;  %v9081_v42 = vunpack.i.h.bf16 %v7988_v40  ;;  %v9078_v2 = vunpack.i.h.bf16 %v8025_v59 }
 0x3a5   : > { %v3082_v14 = vsel %vm3076_vm1, %v5996_v31, %v5986_v19  ;;  %v3000_v46 = vsel %vm9133_vm12, %v6001_v16, %v5991_v57  ;;  %v8049_v48 = vpack.c.bf16 %v3174_v17, %v3162_v18  ;;  %vm2877_vm12 = vcmp.lt.s32.totalorder %v6428_v7, 120 }
 0x3a6   : > { %v3143_v52 = vrot.slane %v3082_v14, 4  ;;  %v3155_v60 = vsel %vm351_vm7, %v3000_v46, %v3089_v1  ;;  %v8036_v51 = vpop.permute.xlu0 %6004  ;;  %v8038_v54 = vpop.permute.xlu1 %6009  ;;  %v3018_v1 = vsel %vm1312_vm5, %v5957_v22, %v9082_v25  ;;  %v9079_v46 = vunpack.i.h.bf16 %v8023_v43 }
 0x3a7   : > { %v3161_v19 = vsel %vm2962_vm10, %v3155_v60, %v3107_v47  ;;  %5439 = vmatprep.subr.msk.bf16.mxu0 %vm8045_vm2, %v8049_v48  ;;  %v9080_v47 = vunpack.i.h.bf16 %v7986_v20  ;;  %v6007_v26 = vunpack.i.h.bf16 %v8036_v51  ;;  %v3059_v56 = vsel %vm3055_vm0, %v5967_v49, %v9081_v42 }
 0x3a8   : > { %v3173_v45 = vsel %vm360_vm8, %v3167_v63, %v3143_v52  ;;  %v6006_v52 = vunpack.i.l.bf16 %v8036_v51  ;;  %v2998_v29 = vsel %vm9136_vm3, %v5992_v50, %v9078_v2  ;;  %v3091_v60 = vrot.slane %v3018_v1, 5  ;;  %vm9139_vm3 = vmmov %vm9138_vm14 }
 0x3a9   : > { %v5440_v53 = vpack.c.bf16 %v3173_v45, %v3161_v19  ;;  %v3038_v14 = vsel %vm1362_vm13, %v5962_v24, %v9080_v47  ;;  %v3080_v39 = vsel %vm3076_vm1, %v5987_v61, %v9079_v46  ;;  %v6012_v50 = vunpack.i.h.bf16 %v8038_v54 }
 0x3aa   : > { %v8051_v27 = vpop.permute.xlu0 %6014  ;;  %v8053_v31 = vpop.permute.xlu1 %6019  ;;  %v3109_v51 = vrot.slane %v3038_v14, 2  ;;  %v2820_v49 = vsel %vm9137_vm11, %v6006_v52, %v6007_v26  ;;  %v6011_v18 = vunpack.i.l.bf16 %v8038_v54  ;;  %v3127_v17 = vrot.slane %v3059_v56, 7 }
 0x3ab   : > { %5442 = vmatpush1.bf16.msk.msra.mxu0 %vm8045_vm2, %v5440_v53  ;;  %v3157_v63 = vsel %vm351_vm7, %v2998_v29, %v3091_v60  ;;  %v6017_v19 = vunpack.i.h.bf16 %v8051_v27  ;;  %v6016_v45 = vunpack.i.l.bf16 %v8051_v27  ;;  %v3145_v46 = vrot.slane %v3080_v39, 4 }
 0x3ac   : > { %v2891_v54 = vrot.slane %v2820_v49, 5  ;;  %v9088_v56 = vunpack.i.h.bf16 %v8053_v31  ;;  %v2840_v27 = vsel %vm9138_vm14, %v6011_v18, %v6012_v50  ;;  %v3169_v60 = vsel %vm333_vm4, %v3109_v51, %v3127_v17  ;;  %vm9141_vm14 = vmmov %vm9137_vm11 }
 0x3ad   : > { %v8127_v47 = vsel %vm2962_vm10, %v3157_v63, %v3109_v51  ;;  %v2861_v42 = vsel %vm2856_vm9, %v6016_v45, %v6017_v19  ;;  %v8149_v29 = vsel %vm360_vm8, %v3169_v60, %v3145_v46 }
 0x3ae   : > { %v8064_v21 = vpop.permute.xlu0 %6024  ;;  %v8066_v16 = vpop.permute.xlu1 %6029  ;;  %5314 = vmatmul.mubr.msk.f32.vlgmr.msra.gmra.mrb[4].mxu0 %vm3179_vm15, %v6433_v8 }
 0x3af   : > { %3408 = vmatprep.mubr.f32.mxu0 %v9129_v58  ;;  %v9083_v53 = vunpack.i.l.bf16 %v8064_v21  ;;  %v9084_v41 = vunpack.i.l.bf16 %v8066_v16 }
 0x3b1   : > { %v8135_v39 = vsel %vm9139_vm3, %v9083_v53, %v6011_v18  ;;  %v2862_v49 = vsel %vm2856_vm9, %v9084_v41, %v6016_v45  ;;  %v2909_v18 = vrot.slane %v2840_v27, 2  ;;  %v8155_v53 = vsel %vm9137_vm11, %v6007_v26, %v9088_v56 }
 0x3b2   : > { %v8096_v22 = vpop.permute.xlu0 %6034  ;;  %v8098_v24 = vpop.permute.xlu1 %6039  ;;  %v2957_v45 = vsel %vm351_vm7, %v7840_v28, %v2891_v54  ;;  %v2927_v41 = vrot.slane %v2861_v42, 7  ;;  %v2926_v4 = vrot.slane %v2862_v49, 7  ;;  %vm9150_vm11 = vcmp.lt.s32.totalorder %v6428_v7, 64 }
 0x3b3   : > { %v9085_v61 = vunpack.i.h.bf16 %v8096_v22  ;;  %v6036_v1 = vunpack.i.l.bf16 %v8096_v22  ;;  %v9142_v56 = vunpack.i.l.bf16 %v8098_v24  ;;  %v8178_v49 = vsel %vm2962_vm10, %v2957_v45, %v2909_v18 }
 0x3b5   : > { %v2882_v51 = vsel %vm2877_vm12, %v6036_v1, %v9085_v61  ;;  %v9140_v61 = vunpack.i.l.bf16 %v8053_v31  ;;  %v8172_v28 = vsel %vm2877_vm12, %v9142_v56, %v6036_v1  ;;  %v9144_v1 = vunpack.i.h.bf16 %v8066_v16 }
 0x3b6   : > { %v6045_v14 = vpop.permute.xlu0 %6044  ;;  %v8118_v2 = vpop.permute.xlu1 %3013  ;;  %v2945_v5 = vrot.slane %v2882_v51, 4  ;;  %v9143_v51 = vunpack.i.h.bf16 %v8064_v21  ;;  %v2944_v46 = vrot.slane %v8172_v28, 4 }
 0x3b7   : > { %v8163_v17 = vsel %vm9141_vm14, %v9140_v61, %v6006_v52  ;;  %v6046_v26 = vunpack.i.l.bf16 %v6045_v14  ;;  %v6047_v42 = vunpack.i.h.bf16 %v6045_v14  ;;  %v8190_v14 = vsel %vm2856_vm9, %v6017_v19, %v9144_v1  ;;  %vm9152_vm14 = vmmov %vm9150_vm11 }
 0x3b8   : > { %v8184_v60 = vsel %vm9139_vm3, %v6012_v50, %v9143_v51  ;;  %v9147_v1 = vunpack.i.h.bf16 %v7988_v40  ;;  %vm9153_vm3 = vmmov %vm9150_vm11 }
 0x3b9   : > { %v3017_v50 = vsel %vm1312_vm5, %v9146_v33, %v6046_v26  ;;  %v3016_v19 = vsel %vm1312_vm5, %v6046_v26, %v6047_v42 }
 0x3ba   : > { %v6050_v63 = vpop.permute.xlu0 %6049  ;;  %v8146_v25 = vpop.permute.xlu1 %3033  ;;  %v3092_v32 = vrot.slane %v3017_v50, 5 }
 0x3bb   : > { %v6052_v54 = vunpack.i.h.bf16 %v6050_v63  ;;  %v6051_v13 = vunpack.i.l.bf16 %v6050_v63  ;;  %v2970_v63 = vsel %vm333_vm4, %v2909_v18, %v2927_v41 }
 0x3bc   : > { %v2976_v44 = vsel %vm360_vm8, %v2970_v63, %v2945_v5 }
 0x3bd   : > { %v3036_v41 = vsel %vm1362_vm13, %v6051_v13, %v6052_v54  ;;  %v3035_v33 = vsel %vm1362_vm13, %v6052_v54, %v8146_v25  ;;  %v3037_v5 = vsel %vm1362_vm13, %v9148_v35, %v6051_v13  ;;  %v9149_v54 = vunpack.i.h.bf16 %v8023_v43 }
 0x3be   : > { %v6055_v52 = vpop.permute.xlu0 %6054  ;;  %v8174_v61 = vpop.permute.xlu1 %3053  ;;  %v3112_v20 = vrot.slane %v3035_v33, 2  ;;  %v3110_v43 = vrot.slane %v3037_v5, 2 }
 0x3bf   : > { %v6057_v27 = vunpack.i.h.bf16 %v6055_v52  ;;  %v6056_v30 = vunpack.i.l.bf16 %v6055_v52  ;;  %v9145_v52 = vrot.slane %v8135_v39, 2 }
 0x3c1   : > { %v2969_v45 = vsel %vm333_vm4, %v9145_v52, %v2926_v4  ;;  %v3057_v51 = vsel %vm3055_vm0, %v6056_v30, %v6057_v27  ;;  %v3056_v4 = vsel %vm3055_vm0, %v6057_v27, %v8174_v61  ;;  %v3058_v26 = vsel %vm3055_vm0, %v9147_v1, %v6056_v30 }
 0x3c2   : > { %v6060_v18 = vpop.permute.xlu0 %6059  ;;  %v8211_v28 = vpop.permute.xlu1 %3074  ;;  %v3015_v27 = vsel %vm1312_vm5, %v6047_v42, %v8118_v2  ;;  %v3129_v63 = vrot.slane %v3057_v51, 7  ;;  %v3130_v34 = vrot.slane %v3056_v4, 7  ;;  %v3093_v42 = vrot.slane %v3016_v19, 5 }
 0x3c3   : > { %v6062_v52 = vunpack.i.h.bf16 %v6060_v18  ;;  %v6061_v56 = vunpack.i.l.bf16 %v6060_v18  ;;  %v3111_v18 = vrot.slane %v3036_v41, 2  ;;  %v3128_v1 = vrot.slane %v3058_v26, 7 }
 0x3c4   : > { %v3094_v38 = vrot.slane %v3015_v27, 5  ;;  %v9151_v41 = vunpack.i.h.bf16 %v8025_v59 }
 0x3c5   : > { %v3078_v40 = vsel %vm3076_vm1, %v6061_v56, %v6062_v52  ;;  %v3079_v30 = vsel %vm3076_vm1, %v9149_v54, %v6061_v56  ;;  %v3077_v50 = vsel %vm3076_vm1, %v6062_v52, %v8211_v28  ;;  %v3171_v11 = vsel %vm333_vm4, %v3111_v18, %v3129_v63 }
 0x3c6   : > { %v6065_v37 = vpop.permute.xlu0 %6064  ;;  %v8237_v13 = vpop.permute.xlu1 %2993  ;;  %v3147_v35 = vrot.slane %v3078_v40, 4  ;;  %v3148_v51 = vrot.slane %v3077_v50, 4  ;;  %v3146_v56 = vrot.slane %v3079_v30, 4  ;;  %v3172_v54 = vsel %vm333_vm4, %v3112_v20, %v3130_v34 }
 0x3c7   : > { %v6067_v4 = vunpack.i.h.bf16 %v6065_v37  ;;  %v6066_v36 = vunpack.i.l.bf16 %v6065_v37  ;;  %v3170_v63 = vsel %vm333_vm4, %v3110_v43, %v3128_v1 }
 0x3c8   : > { %v3177_v59 = vsel %vm360_vm8, %v3171_v11, %v3147_v35  ;;  %v3178_v40 = vsel %vm360_vm8, %v3172_v54, %v3148_v51  ;;  %v9154_v11 = vrot.slane %v8163_v17, 5  ;;  %v8280_v51 = vpack.c.bf16 %v8149_v29, %v8127_v47 }
 0x3c9   : > { %v2996_v19 = vsel %vm9150_vm11, %v6066_v36, %v6067_v4  ;;  %v2997_v33 = vsel %vm9152_vm14, %v9151_v41, %v6066_v36  ;;  %v2995_v26 = vsel %vm9153_vm3, %v6067_v4, %v8237_v13  ;;  %v2975_v4 = vsel %vm360_vm8, %v2969_v45, %v2944_v46 }
 0x3ca   : > { %v3158_v37 = vsel %vm351_vm7, %v2997_v33, %v3092_v32  ;;  %v3159_v52 = vsel %vm351_vm7, %v2996_v19, %v3093_v42  ;;  %v3160_v27 = vsel %vm351_vm7, %v2995_v26, %v3094_v38  ;;  %v6070_v5 = vpop.permute.xlu0 %6069  ;;  %v8253_v34 = vpop.permute.xlu1 %2814  ;;  %v3176_v38 = vsel %vm360_vm8, %v3170_v63, %v3146_v56 }
 0x3cb   : > { %v3165_v36 = vsel %vm2962_vm10, %v3159_v52, %v3111_v18  ;;  %v3166_v30 = vsel %vm2962_vm10, %v3160_v27, %v3112_v20  ;;  %v3164_v42 = vsel %vm2962_vm10, %v3158_v37, %v3110_v43  ;;  %v6072_v19 = vunpack.i.h.bf16 %v6070_v5 }
 0x3cc   : > { %v8260_v50 = vpack.c.bf16 %v3177_v59, %v3165_v36  ;;  %v8262_v32 = vpack.c.bf16 %v3178_v40, %v3166_v30  ;;  %v6071_v1 = vunpack.i.l.bf16 %v6070_v5  ;;  %v8267_v41 = vpack.c.bf16 %v3176_v38, %v3164_v42 }
 0x3cd   : > { %v2956_v18 = vsel %vm351_vm7, %v7855_v55, %v9154_v11  ;;  %v8283_v46 = vpack.c.bf16 %v2976_v44, %v8178_v49  ;;  %v2892_v45 = vrot.slane %v8155_v53, 5  ;;  %v9155_v17 = vrot.slane %v8135_v39, 2 }
 0x3ce   : > { %v6075_v20 = vpop.permute.xlu0 %6074  ;;  %5451 = vmatprep.subr.msk.bf16.mxu0 %vm8045_vm2, %v8262_v32  ;;  %v8276_v35 = vpop.permute.xlu1 %2834  ;;  %v9156_v43 = vunpack.i.h.bf16 %v8098_v24  ;;  %v9157_v56 = vunpack.i.h.bf16 %v8096_v22  ;;  %5445 = vmatprep.subr.msk.bf16.mxu1 %vm8045_vm2, %v8267_v41  ;;  %v2910_v47 = vrot.slane %v8184_v60, 2  ;;  %v2928_v53 = vrot.slane %v8190_v14, 7 }
 0x3cf   : > { %v2963_v55 = vsel %vm2962_vm10, %v2956_v18, %v9155_v17  ;;  %v6077_v33 = vunpack.i.h.bf16 %v6075_v20  ;;  %5454 = vmatpush1.bf16.msk.msra.mxu0 %vm8045_vm2, %v8260_v50  ;;  %5448 = vmatpush1.bf16.msk.msra.mxu1 %vm8045_vm2, %v8280_v51  ;;  %vm9158_vm11 = vcmp.lt.s32.totalorder %v6428_v7, 126  ;;  %v9159_v39 = vunpack.i.h.bf16 %v8053_v31 }
 0x3d0   : > { %v2881_v54 = vsel %vm2877_vm12, %v9157_v56, %v9156_v43  ;;  %5457 = vmatprep.subr.msk.bf16.mxu0 %vm8045_vm2, %v8283_v46  ;;  %v5458_v22 = vpack.c.bf16 %v2975_v4, %v2963_v55  ;;  %v2817_v29 = vsel %vm9158_vm11, %v6071_v1, %v6072_v19  ;;  %vm9160_vm14 = vmmov %vm9158_vm11  ;;  %v6076_v44 = vunpack.i.l.bf16 %v6075_v20 }
 0x3d1   : > { %v2818_v49 = vsel %vm9160_vm14, %v9159_v39, %v6071_v1  ;;  %vm9161_vm3 = vmmov %vm9158_vm11  ;;  %v2946_v26 = vrot.slane %v2881_v54, 4  ;;  %v2958_v27 = vsel %vm351_vm7, %v7842_v15, %v2892_v45  ;;  %vm9162_vm11 = vcmp.lt.s32.totalorder %v6428_v7, 124 }
 0x3d2   : > { %v2816_v14 = vsel %vm9161_vm3, %v6072_v19, %v8253_v34  ;;  %v6080_v37 = vpop.permute.xlu0 %6079  ;;  %v8318_v52 = vpop.permute.xlu1 %2854  ;;  %5320 = vmatmul.mubr.msk.f32.vlgmr.msra.gmra.mrb[6].mxu0 %vm3179_vm15, %v6433_v8  ;;  %v2836_v5 = vsel %vm9162_vm11, %v6077_v33, %v8276_v35  ;;  %5317 = vmatmul.mubr.msk.f32.vlgmr.msra.gmra.mrb[8].mxu1 %vm3179_vm15, %v6433_v8  ;;  %v2971_v40 = vsel %vm333_vm4, %v2910_v47, %v2928_v53  ;;  %v2893_v36 = vrot.slane %v2818_v49, 5  ;;  %vm9164_vm14 = vmmov %vm9162_vm11 }
 0x3d3   : > { %v6082_v63 = vunpack.i.h.bf16 %v6080_v37  ;;  %v6081_v59 = vunpack.i.l.bf16 %v6080_v37  ;;  %5460 = vmatpush1.bf16.msk.msra.mxu0 %vm8045_vm2, %v5458_v22  ;;  %v2894_v30 = vrot.slane %v2817_v29, 5  ;;  %v2895_v42 = vrot.slane %v2816_v14, 5  ;;  %3500 = vmatprep.mubr.f32.mxu0 %v9129_v58  ;;  %vm9166_vm3 = vmmov %vm9162_vm11 }
 0x3d4   : > { %3571 = vmatprep.mubr.f32.mxu1 %v9129_v58  ;;  %v9163_v15 = vunpack.i.h.bf16 %v8064_v21  ;;  %v9165_v19 = vunpack.i.h.bf16 %v8066_v16  ;;  %v2977_v18 = vsel %vm360_vm8, %v2971_v40, %v2946_v26  ;;  %v2837_v20 = vsel %vm9166_vm3, %v6076_v44, %v6077_v33 }
 0x3d5   : > { %v2858_v4 = vsel %vm2856_vm9, %v6081_v59, %v6082_v63  ;;  %v2857_v11 = vsel %vm2856_vm9, %v6082_v63, %v8318_v52  ;;  %v2913_v45 = vrot.slane %v2836_v5, 2  ;;  %v2960_v29 = vsel %vm351_vm7, %v7918_v3, %v2894_v30 }
 0x3d6   : > { %v2838_v38 = vsel %vm9164_vm14, %v9163_v15, %v6076_v44  ;;  %v2859_v1 = vsel %vm2856_vm9, %v9165_v19, %v6081_v59  ;;  %v6085_v55 = vpop.permute.xlu0 %6084  ;;  %v2876_v43 = vpop.permute.xlu1 %2875  ;;  %5323 = vmatmul.mubr.msk.f32.vlgmr.msra.gmra.mrb[4].mxu0 %vm3179_vm15, %v6425_v6  ;;  %v2930_v56 = vrot.slane %v2858_v4, 7  ;;  %v2931_v54 = vrot.slane %v2857_v11, 7  ;;  %vm9169_vm14 = vmmov %vm9166_vm3 }
 0x3d7   : > { %v2929_v17 = vrot.slane %v2859_v1, 7  ;;  %v6087_v53 = vunpack.i.h.bf16 %v6085_v55  ;;  %v6086_v22 = vunpack.i.l.bf16 %v6085_v55  ;;  %3642 = vmatprep.mubr.f32.mxu0 %v9129_v58  ;;  %v2961_v39 = vsel %vm351_vm7, %v7914_v12, %v2895_v42 }
 0x3d8   : > { %v2911_v33 = vrot.slane %v2838_v38, 2  ;;  %v2959_v49 = vsel %vm351_vm7, %v7857_v23, %v2893_v36  ;;  %v2912_v14 = vrot.slane %v2837_v20, 2  ;;  %v9167_v26 = vunpack.i.h.bf16 %v8098_v24 }
 0x3d9   : > { %v2879_v44 = vsel %vm2877_vm12, %v6086_v22, %v6087_v53  ;;  %v2878_v5 = vsel %vm2877_vm12, %v6087_v53, %v2876_v43  ;;  %v2968_v3 = vsel %vm2962_vm10, %v2961_v39, %v2913_v45  ;;  %v2974_v36 = vsel %vm333_vm4, %v2913_v45, %v2931_v54 }
 0x3da   : > { %v2880_v37 = vsel %vm2877_vm12, %v9167_v26, %v6086_v22  ;;  %v2948_v12 = vrot.slane %v2879_v44, 4  ;;  %v2949_v59 = vrot.slane %v2878_v5, 4  ;;  %v3650_v40 = vpop.permute.xlu0 %3649  ;;  %v3653_v30 = vpop.permute.xlu1 %3652  ;;  %v2973_v23 = vsel %vm333_vm4, %v2912_v14, %v2930_v56 }
 0x3db   : > { %v2947_v63 = vrot.slane %v2880_v37, 4  ;;  %vm9168_vm11 = vcmp.lt.s32.totalorder %v6428_v7, 126  ;;  %v2972_v15 = vsel %vm333_vm4, %v2911_v33, %v2929_v17  ;;  %v3654_v1 = vsel %vm9169_vm14, %v8276_v35, %v3653_v30 }
 0x3dc   : > { %v3651_v42 = vsel %vm9168_vm11, %v8253_v34, %v3650_v40  ;;  %v2979_v38 = vsel %vm360_vm8, %v2973_v23, %v2948_v12  ;;  %v2980_v4 = vsel %vm360_vm8, %v2974_v36, %v2949_v59  ;;  %v2967_v11 = vsel %vm2962_vm10, %v2960_v29, %v2912_v14 }
 0x3dd   : > { %v3662_v19 = vrot.slane %v3651_v42, 5  ;;  %v2966_v20 = vsel %vm2962_vm10, %v2959_v49, %v2911_v33  ;;  %v2978_v45 = vsel %vm360_vm8, %v2972_v15, %v2947_v63  ;;  %v8384_v55 = vpack.c.bf16 %v2980_v4, %v2968_v3 }
 0x3de   : > { %v2965_v34 = vsel %vm2962_vm10, %v2958_v27, %v2910_v47  ;;  %v3656_v17 = vpop.permute.xlu0 %3655  ;;  %v3659_v56 = vpop.permute.xlu1 %3658  ;;  %v8389_v54 = vpack.c.bf16 %v2978_v45, %v2966_v20  ;;  %v8391_v53 = vpack.c.bf16 %v2979_v38, %v2967_v11  ;;  %v3665_v22 = vrot.slane %v3654_v1, 2 }
 0x3df   : > { %v3657_v35 = vsel %vm2856_vm9, %v8318_v52, %v3656_v17  ;;  %5469 = vmatprep.subr.msk.bf16.mxu0 %vm8045_vm2, %v8384_v55  ;;  %v8399_v29 = vpack.c.bf16 %v2977_v18, %v2965_v34  ;;  %v3673_v60 = vsel %vm351_vm7, %v7922_v0, %v3662_v19  ;;  %v3660_v27 = vsel %vm2877_vm12, %v2876_v43, %v3659_v56 }
 0x3e0   : > { %v3668_v47 = vrot.slane %v3657_v35, 7  ;;  %5463 = vmatprep.subr.msk.bf16.mxu1 %vm8045_vm2, %v8389_v54  ;;  %5472 = vmatpush1.bf16.msk.msra.mxu0 %vm8045_vm2, %v8391_v53  ;;  %v3671_v52 = vrot.slane %v3660_v27, 4  ;;  %v3674_v39 = vsel %vm2962_vm10, %v3673_v60, %v3665_v22  ;;  %v9170_v44 = vunpack.i.l.bf16 %v8066_v16 }
 0x3e1   : > { %5466 = vmatpush1.bf16.msk.msra.mxu1 %vm8045_vm2, %v8399_v29  ;;  %5475 = vmatprep.subr.msk.bf16.mxu0 %vm8045_vm2, %v8399_v29  ;;  %v9175_v23 = vunpack.i.l.bf16 %v8098_v24 }
 0x3e2   : > { %v3675_v0 = vsel %vm333_vm4, %v3665_v22, %v3668_v47  ;;  %5481 = vmatprep.subr.msk.bf16.mxu1 %vm8045_vm2, %v8391_v53  ;;  %v3906_v18 = vpop.permute.xlu0 %3905  ;;  %v3909_v43 = vpop.permute.xlu1 %3908  ;;  %v4160_v26 = vsel %vm2856_vm9, %v3656_v17, %v9170_v44 }
 0x3e3   : > { %v3676_v33 = vsel %vm360_vm8, %v3675_v0, %v3671_v52  ;;  %5329 = vmatmul.mubr.msk.f32.vlgmr.msra.gmra.mrb[6].mxu0 %vm3179_vm15, %v6425_v6  ;;  %v3910_v14 = vsel %vm1362_vm13, %v8146_v25, %v3909_v43  ;;  %v3907_v37 = vsel %vm1312_vm5, %v8118_v2, %v3906_v18  ;;  %v9171_v2 = vunpack.i.l.bf16 %v8053_v31  ;;  %vm9172_vm13 = vmmov %vm9168_vm11 }
 0x3e4   : > { %5326 = vmatmul.mubr.msk.f32.vlgmr.msra.gmra.mrb[8].mxu1 %vm3179_vm15, %v6425_v6  ;;  %5478 = vmatpush1.bf16.msk.msra.mxu0 %vm8045_vm2, %v8283_v46  ;;  %v5485_v49 = vpack.c.bf16 %v3676_v33, %v3674_v39  ;;  %v4169_v59 = vrot.slane %v4160_v26, 7  ;;  %v4161_v36 = vsel %vm2877_vm12, %v3659_v56, %v9175_v23  ;;  %v3918_v31 = vrot.slane %v3907_v37, 5 }
 0x3e5   : > { %5484 = vmatpush1.bf16.msk.msra.mxu1 %vm8045_vm2, %v8389_v54  ;;  %3747 = vmatprep.mubr.f32.mxu0 %v9129_v58  ;;  %v4172_v24 = vrot.slane %v4161_v36, 4 }
 0x3e6   : > { %5499 = vmatprep.subr.msk.bf16.mxu1 %vm8045_vm2, %v8260_v50  ;;  %v3912_v46 = vpop.permute.xlu0 %3911  ;;  %5487 = vmatprep.subr.msk.bf16.mxu0 %vm8045_vm2, %v5485_v49  ;;  %v3915_v25 = vpop.permute.xlu1 %3914  ;;  %v3921_v50 = vrot.slane %v3910_v14, 2 }
 0x3e7   : > { %v3913_v16 = vsel %vm3055_vm0, %v8174_v61, %v3912_v46  ;;  %v3916_v5 = vsel %vm3076_vm1, %v8211_v28, %v3915_v25  ;;  %5332 = vmatmul.mubr.msk.f32.vlgmr.msra.gmra.mrb[4].mxu0 %vm3179_vm15, %v6438_v9  ;;  %3818 = vmatprep.mubr.f32.mxu1 %v9129_v58  ;;  %v4158_v61 = vsel %vm9172_vm13, %v3650_v40, %v9171_v2  ;;  %v9173_v28 = vunpack.i.l.bf16 %v8064_v21  ;;  %vm9174_vm0 = vmmov %vm9166_vm3 }
 0x3e8   : > { %v3924_v3 = vrot.slane %v3913_v16, 7  ;;  %5490 = vmatpush1.bf16.msk.msra.mxu0 %vm8045_vm2, %v8384_v55  ;;  %3889 = vmatprep.mubr.f32.mxu0 %v9129_v58  ;;  %v3927_v12 = vrot.slane %v3916_v5, 4  ;;  %vm9176_vm1 = vcmp.lt.s32.totalorder %v6428_v7, 64 }
 0x3e9   : > { %v4159_v63 = vsel %vm9174_vm0, %v3653_v30, %v9173_v28  ;;  %5493 = vmatprep.subr.msk.bf16.mxu0 %vm8045_vm2, %v8280_v51  ;;  %v4163_v30 = vrot.slane %v4158_v61, 5  ;;  %vm9184_vm9 = vmmov %vm9176_vm1 }
 0x3ea   : > { %v3931_v42 = vsel %vm333_vm4, %v3921_v50, %v3924_v3  ;;  %v3903_v40 = vpop.permute.xlu0 %3902  ;;  %v4166_v15 = vrot.slane %v4159_v63, 2  ;;  %vm9186_vm3 = vmmov %vm9176_vm1 }
 0x3eb   : > { %v3904_v21 = vsel %vm9176_vm1, %v8237_v13, %v3903_v40  ;;  %5338 = vmatmul.mubr.msk.f32.vlgmr.msra.gmra.mrb[6].mxu0 %vm3179_vm15, %v6438_v9  ;;  %v3932_v38 = vsel %vm360_vm8, %v3931_v42, %v3927_v12  ;;  %vm9188_vm14 = vmmov %vm9176_vm1 }
 0x3ec   : > { %v3929_v51 = vsel %vm351_vm7, %v3904_v21, %v3918_v31  ;;  %5335 = vmatmul.mubr.msk.f32.vlgmr.msra.gmra.mrb[8].mxu1 %vm3179_vm15, %v6438_v9  ;;  %5496 = vmatpush1.bf16.msk.msra.mxu0 %vm8045_vm2, %v8049_v48  ;;  %v4176_v13 = vsel %vm333_vm4, %v4166_v15, %v4169_v59  ;;  %v4174_v48 = vsel %vm351_vm7, %v7873_v62, %v4163_v30  ;;  %vm9179_vm4 = vmmov %vm9168_vm11 }
 0x3ed   : > { %v3930_v4 = vsel %vm2962_vm10, %v3929_v51, %v3921_v50  ;;  %5502 = vmatpush1.bf16.msk.msra.mxu1 %vm8045_vm2, %v8267_v41  ;;  %4003 = vmatprep.mubr.f32.mxu0 %v9129_v58  ;;  %v4177_v41 = vsel %vm360_vm8, %v4176_v13, %v4172_v24  ;;  %v4175_v1 = vsel %vm2962_vm10, %v4174_v48, %v4166_v15  ;;  %vm9180_vm7 = vmmov %vm9176_vm1 }
 0x3ee   : > { %v5503_v19 = vpack.c.bf16 %v3932_v38, %v3930_v4  ;;  %5517 = vmatprep.subr.msk.bf16.mxu1 %vm8045_vm2, %v8384_v55  ;;  %4074 = vmatprep.mubr.f32.mxu1 %v9129_v58  ;;  %v5521_v62 = vpack.c.bf16 %v4177_v41, %v4175_v1  ;;  %vm9181_vm10 = vmmov %vm9179_vm4 }
 0x3ef   : > { %5341 = vmatmul.mubr.msk.f32.vlgmr.msra.gmra.mrb[4].mxu0 %vm3179_vm15, %v6443_v10  ;;  %vm9185_vm12 = vmmov %vm9179_vm4 }
 0x3f0   : > { %5505 = vmatprep.subr.msk.bf16.mxu0 %vm8045_vm2, %v5503_v19  ;;  %4145 = vmatprep.mubr.f32.mxu0 %v9129_v58  ;;  %vm9187_vm11 = vmmov %vm9179_vm4 }
 0x3f1   : > { %5508 = vmatpush1.bf16.msk.msra.mxu0 %vm8045_vm2, %v8262_v32  ;;  %v9177_v32 = vld [vmem:[#allocation7_spill] sm:$0xff] }
 0x3f2   : > { %5511 = vmatprep.subr.msk.bf16.mxu0 %vm8045_vm2, %v8389_v54  ;;  %v9178_v11 = vmov %v9177_v32 }
 0x3f4   : > { %5344 = vmatmul.mubr.msk.f32.vlgmr.msra.gmra.mrb[8].mxu1 %vm3179_vm15, %v6443_v10  ;;  %5347 = vmatmul.mubr.msk.f32.vlgmr.msra.gmra.mrb[6].mxu0 %vm3179_vm15, %v6443_v10 }
 0x3f5   : > { %5520 = vmatpush1.bf16.msk.msra.mxu1 %vm8045_vm2, %v8391_v53  ;;  %5514 = vmatpush1.bf16.msk.msra.mxu0 %vm8045_vm2, %v8399_v29 }
 0x3f6   : > { %5523 = vmatprep.subr.msk.bf16.mxu0 %vm8045_vm2, %v5521_v62  ;;  %4248 = vmatprep.mubr.f32.mxu0 %v9129_v58 }
 0x3f7   : > { %4319 = vmatprep.mubr.f32.mxu1 %v9129_v58  ;;  %v4406_v55 = vpop.permute.xlu1 %4405 }
 0x3f8   : > { %5350 = vmatmul.mubr.msk.f32.vlgmr.msra.gmra.mrb[4].mxu0 %vm3179_vm15, %v9177_v32 }
 0x3f9   : > { %5526 = vmatpush1.bf16.msk.msra.mxu0 %vm8045_vm2, %v5485_v49  ;;  %4390 = vmatprep.mubr.f32.mxu0 %v9129_v58  ;;  %vm9182_vm2 = vmmov %vm9176_vm1 }
 0x3fc   : > { %5353 = vmatmul.mubr.msk.f32.vlgmr.msra.gmra.mrb[8].mxu1 %vm3179_vm15, %v9178_v11  ;;  %5356 = vmatmul.mubr.msk.f32.vlgmr.msra.gmra.mrb[6].mxu0 %vm3179_vm15, %v9178_v11  ;;  %vm9183_vm15 = vmmov %vm9179_vm4 }
 0x4cb   : > { %v4250_v20 = vpop.f32.mrb[4].mxu0 }
 0x4cc   : > { %v4252_v45 = vpop.f32.mrb[5].mxu0  ;;  %v4408_v60 = vadd.f32 %v4406_v55, %v4250_v20 }
 0x4cd   : > { %v4409_v47 = vadd.f32 %v4406_v55, %v4252_v45 }
 0x4ce   : > { %v4414_v52 = vmax.f32 %v4408_v60, 0.0 }
 0x4cf   : > { %v4321_v34 = vpop.f32.mrb[8].mxu1  ;;  %v4392_v17 = vpop.f32.mrb[6].mxu0  ;;  %v8548_v0 = vmax.f32 %v4409_v47, 0.0 }
 0x4d0   : > { %v4323_v56 = vpop.f32.mrb[9].mxu1  ;;  %v4394_v54 = vpop.f32.mrb[7].mxu0  ;;  %v4412_v35 = vadd.f32 %v4406_v55, %v4392_v17  ;;  %v4410_v27 = vadd.f32 %v4406_v55, %v4321_v34 }
 0x4d1   : > { %v4411_v53 = vadd.f32 %v4406_v55, %v4323_v56  ;;  %v4413_v57 = vadd.f32 %v4406_v55, %v4394_v54 }
 0x4d2   : > { %v4418_v58 = vmax.f32 %v4412_v35, 0.0  ;;  %v8550_v18 = vmax.f32 %v4410_v27, 0.0 }
 0x4d3   : > { %v4417_v22 = vmax.f32 %v4411_v53, 0.0  ;;  %v4419_v29 = vmax.f32 %v4413_v57, 0.0 }
 0x4d5   : > { %4448 = vrot.lane.b32.xlu1 %v4417_v22, %s6311_s20  ;;  %4426 = vrot.lane.b32.xlu0 %v4417_v22, %s6306_s16 }
 0x4d9   : > { %4428 = vrot.lane.b32.xlu1 %v4418_v58, %s6306_s16  ;;  %4465 = vrot.lane.b32.xlu0 %v4417_v22, %s6310_s19 }
 0x4dd   : > { %4452 = vrot.lane.b32.xlu1 %v4419_v29, %s6311_s20  ;;  %4450 = vrot.lane.b32.xlu0 %v4418_v58, %s6311_s20 }
 0x4e1   : > { %4467 = vrot.lane.b32.xlu1 %v4418_v58, %s6310_s19  ;;  %4430 = vrot.lane.b32.xlu0 %v4419_v29, %s6306_s16 }
 0x4e5   : > { %4469 = vrot.lane.b32.xlu0 %v4419_v29, %s6310_s19  ;;  %4420 = vrot.lane.b32.xlu1 %v4414_v52, %s6306_s16 }
 0x4e9   : > { %4422 = vrot.lane.b32.xlu0 %v8548_v0, %s6306_s16  ;;  %4424 = vrot.lane.b32.xlu1 %v8550_v18, %s6306_s16 }
 0x4ed   : > { %4442 = vrot.lane.b32.xlu0 %v4414_v52, %s6311_s20  ;;  %4444 = vrot.lane.b32.xlu1 %v8548_v0, %s6311_s20 }
 0x4f1   : > { %4446 = vrot.lane.b32.xlu0 %v8550_v18, %s6311_s20  ;;  %4459 = vrot.lane.b32.xlu1 %v4414_v52, %s6310_s19 }
 0x4f5   : > { %4461 = vrot.lane.b32.xlu0 %v8548_v0, %s6310_s19  ;;  %4463 = vrot.lane.b32.xlu1 %v8550_v18, %s6310_s19 }
 0x547   : > { %v4449_v43 = vpop.permute.xlu1 %4448  ;;  %v4427_v39 = vpop.permute.xlu0 %4426 }
 0x54b   : > { %v4429_v33 = vpop.permute.xlu1 %4428  ;;  %v4466_v49 = vpop.permute.xlu0 %4465 }
 0x54c   : > { %v4433_v26 = vsel %vm9179_vm4, %v4427_v39, %v4429_v33 }
 0x54d   : > { %v4440_v5 = vmax.f32 %v4417_v22, %v4433_v26 }
 0x54f   : > { %v4453_v14 = vpop.permute.xlu1 %4452  ;;  %v4451_v44 = vpop.permute.xlu0 %4450 }
 0x550   : > { %v4455_v37 = vsel %vm9180_vm7, %v4449_v43, %v4451_v44  ;;  %v4454_v63 = vsel %vm9182_vm2, %v4451_v44, %v4453_v14 }
 0x553   : > { %v4468_v46 = vpop.permute.xlu1 %4467  ;;  %v4431_v25 = vpop.permute.xlu0 %4430 }
 0x554   : > { %v4472_v16 = vsel %vm1312_vm5, %v4466_v49, %v4468_v46  ;;  %v4432_v3 = vsel %vm9181_vm10, %v4429_v33, %v4431_v25 }
 0x555   : > { %v4479_v50 = vmax.f32 %v4455_v37, %v4472_v16  ;;  %v4441_v59 = vmax.f32 %v4418_v58, %v4432_v3 }
 0x557   : > { %v8574_v2 = vmax.f32 %v4440_v5, %v4479_v50  ;;  %v4470_v61 = vpop.permute.xlu0 %4469  ;;  %v4421_v28 = vpop.permute.xlu1 %4420 }
 0x558   : > { %v4471_v12 = vsel %vm1312_vm5, %v4468_v46, %v4470_v61 }
 0x559   : > { %v4480_v23 = vmax.f32 %v4454_v63, %v4471_v12  ;;  %4514 = vrot.lane.b32.xlu0 %v8574_v2, %s6308_s18  ;;  %4516 = vrot.lane.b32.xlu1 %v8574_v2, %s6323_s29  ;;  %v4543_v63 = vstv %s6297_s2  ;;  %s67_s2 = sadd.s32 1, %s6297_s2  }
 0x55a   : > { %p8758_p0 = scmp.ge.s32.totalorder %s67_s2, 8  }
 0x55b   : > { %v4485_v36 = vmax.f32 %v4441_v59, %v4480_v23  ;;  %v4423_v31 = vpop.permute.xlu0 %4422  ;;  %v4425_v42 = vpop.permute.xlu1 %4424  ;;  %v9191_v59 = vld [vmem:[#allocation34_spill] sm:$0xff]  ;;  %vm4736_vm13 = vcmask (%p8758_p0), 588800   ;;  %v4689_v9 = vld [vmem:[%s9060_s6 + $0x8] sm:$0xff] (%p8758_p0)  ;;  %v4691_v10 = vld [vmem:[%s9060_s6 + $0x18] sm:$0xff] (%p8758_p0)  ;;  %vm4916_vm0 = vcmask (%p8758_p0), 490496   ;;  %vm5140_vm1 = vcmask (%p8758_p0), 64512  }
 0x55c   : > { %v4436_v51 = vsel %vm9183_vm15, %v4421_v28, %v4423_v31  ;;  %v4435_v62 = vsel %vm9185_vm12, %v4423_v31, %v4425_v42  ;;  %v4434_v17 = vsel %vm9187_vm11, %v4425_v42, %v4427_v39  ;;  %v9193_v31 = vld [vmem:[#allocation32_spill] sm:$0xff]  ;;  %v4688_v6 = vld [vmem:[%s9060_s6] sm:$0xff] (%p8758_p0)  ;;  %vm5151_vm4 = vcmask (%p8758_p0), 60416  }
 0x55d   : > { %4518 = vrot.lane.b32.xlu0 %v8574_v2, %s6325_s30  ;;  %4521 = vrot.lane.b32.xlu1 %v4485_v36, %s6326_s13  ;;  %v4437_v13 = vmax.f32 %v4414_v52, %v4436_v51  ;;  %v4438_v45 = vmax.f32 %v8548_v0, %v4435_v62  ;;  %v4439_v53 = vmax.f32 %v8550_v18, %v4434_v17  ;;  %v9202_v62 = vld [vmem:[#allocation29_spill] sm:$0xff]  ;;  %v9206_v17 = vld [vmem:[#allocation27_spill] sm:$0xff]  ;;  %vm6331_vm7 = vmmov (%p8758_p0), 1  }
 0x55e   :  { %vm5576_vm10 = vmpackc.low (%p8758_p0), %vm360_vm8, %vm6331_vm7  ;;  %vm5054_vm8 = vcmask (%p8758_p0), 343040   ;;  %vm5142_vm15 = vcmask (%p8758_p0), 58368  }
 0x55f   : > { %v4443_v40 = vpop.permute.xlu0 %4442  ;;  %v4445_v21 = vpop.permute.xlu1 %4444  ;;  %vm5590_vm2 = vmpackc.low (%p8758_p0), %vm342_vm6, %vm6331_vm7 }
 0x560   : > { %v4458_v38 = vsel %vm9184_vm9, %v4443_v40, %v4445_v21 }
 0x561   : > { %4523 = vrot.lane.b32.xlu0 %v4485_v36, %s6308_s18  ;;  %4525 = vrot.lane.b32.xlu1 %v4485_v36, %s6323_s29 }
 0x563   : > { %v4447_v30 = vpop.permute.xlu0 %4446  ;;  %v4460_v15 = vpop.permute.xlu1 %4459 }
 0x564   : > { %v4457_v32 = vsel %vm9186_vm3, %v4445_v21, %v4447_v30  ;;  %v4456_v56 = vsel %vm9188_vm14, %v4447_v30, %v4449_v43  ;;  %v9194_v21 = vld [vmem:[#allocation33_spill] sm:$0xff] }
 0x565   : > { %4527 = vrot.lane.b32.xlu0 %v4485_v36, %s6325_s30 }
 0x567   : > { %v4462_v24 = vpop.permute.xlu0 %4461  ;;  %v4464_v48 = vpop.permute.xlu1 %4463 }
 0x568   : > { %v4475_v4 = vsel %vm1312_vm5, %v4460_v15, %v4462_v24  ;;  %v4474_v1 = vsel %vm1312_vm5, %v4462_v24, %v4464_v48  ;;  %v4473_v34 = vsel %vm1312_vm5, %v4464_v48, %v4466_v49  ;;  %vm8628_vm5 = vcmp.eq.s32.totalorder %v6428_v7, %v4543_v63  ;;  %v9196_v24 = vld [vmem:[#allocation30_spill] sm:$0xff]  ;;  %v9226_v63 = vld [vmem:[#allocation16_spill] sm:$0xff] }
 0x569   : > { %v4476_v19 = vmax.f32 %v4458_v38, %v4475_v4  ;;  %v4477_v20 = vmax.f32 %v4457_v32, %v4474_v1  ;;  %v4478_v54 = vmax.f32 %v4456_v56, %v4473_v34  ;;  %v4690_v7 = vld [vmem:[%s9060_s6 + $0x10] sm:$0xff] (%p8758_p0) }
 0x56b   : > { %v4481_v41 = vmax.f32 %v4437_v13, %v4476_v19  ;;  %v4482_v55 = vmax.f32 %v4438_v45, %v4477_v20  ;;  %v4483_v22 = vmax.f32 %v4439_v53, %v4478_v54 }
 0x56d   : > { %4489 = vrot.lane.b32.xlu0 %v4481_v41, %s6323_s29  ;;  %4487 = vrot.lane.b32.xlu1 %v4481_v41, %s6308_s18 }
 0x571   : > { %4493 = vrot.lane.b32.xlu0 %v4481_v41, %s6327_s14  ;;  %4491 = vrot.lane.b32.xlu1 %v4481_v41, %s6325_s30 }
 0x575   : > { %4498 = vrot.lane.b32.xlu0 %v4482_v55, %s6323_s29  ;;  %4496 = vrot.lane.b32.xlu1 %v4482_v55, %s6308_s18 }
 0x579   : > { %4502 = vrot.lane.b32.xlu0 %v4482_v55, %s6327_s14  ;;  %4500 = vrot.lane.b32.xlu1 %v4482_v55, %s6325_s30 }
 0x57d   : > { %4507 = vrot.lane.b32.xlu0 %v4483_v22, %s6323_s29  ;;  %4505 = vrot.lane.b32.xlu1 %v4483_v22, %s6308_s18 }
 0x581   : > { %4511 = vrot.lane.b32.xlu0 %v4483_v22, %s6327_s14  ;;  %4509 = vrot.lane.b32.xlu1 %v4483_v22, %s6325_s30 }
 0x5cb   : > { %v4515_v35 = vpop.permute.xlu0 %4514  ;;  %v4517_v58 = vpop.permute.xlu1 %4516 }
 0x5cc   : > { %4529 = vrot.lane.b32.xlu1 %v4515_v35, %s6308_s18  ;;  %4531 = vrot.lane.b32.xlu0 %v4517_v58, %s6308_s18 }
 0x5cf   : > { %v4519_v57 = vpop.permute.xlu0 %4518  ;;  %v4522_v29 = vpop.permute.xlu1 %4521 }
 0x5d0   : > { %4533 = vrot.lane.b32.xlu1 %v4519_v57, %s6308_s18  ;;  %4535 = vrot.lane.b32.xlu0 %v4522_v29, %s6308_s18 }
 0x5d3   : > { %v4524_v60 = vpop.permute.xlu0 %4523  ;;  %v4526_v47 = vpop.permute.xlu1 %4525 }
 0x5d4   : > { %4537 = vrot.lane.b32.xlu1 %v4524_v60, %s6308_s18  ;;  %4539 = vrot.lane.b32.xlu0 %v4526_v47, %s6308_s18 }
 0x5d7   : > { %v4528_v27 = vpop.permute.xlu0 %4527 }
 0x5d8   : > { %4541 = vrot.lane.b32.xlu1 %v4528_v27, %s6308_s18  ;;  %4548 = vperm.xlu0 %5892, %v4481_v41   ;;  %v9200_v41 = vld [vmem:[#allocation28_spill] sm:$0xff]  ;;  %v9212_v27 = vld [vmem:[#allocation22_spill] sm:$0xff] }
 0x5df   : > { %v4490_v52 = vpop.permute.xlu0 %4489  ;;  %v4488_v0 = vpop.permute.xlu1 %4487 }
 0x5e0   : > { %4556 = vperm.xlu0 %5892, %v4490_v52   ;;  %4552 = vperm.xlu1 %6088, %v4488_v0   ;;  %v9214_v0 = vld [vmem:[#allocation23_spill] sm:$0xff] }
 0x5e3   : > { %v4494_v18 = vpop.permute.xlu0 %4493  ;;  %v4492_v43 = vpop.permute.xlu1 %4491 }
 0x5e4   : > { %4564 = vperm.xlu0 %5892, %v4494_v18   ;;  %4560 = vperm.xlu1 %6088, %v4492_v43  }
 0x5e7   : > { %v4499_v39 = vpop.permute.xlu0 %4498  ;;  %v4497_v33 = vpop.permute.xlu1 %4496 }
 0x5e8   : > { %4568 = vperm.xlu1 %6088, %v4482_v55   ;;  %4572 = vperm.xlu0 %5892, %v4497_v33  }
 0x5eb   : > { %v4503_v49 = vpop.permute.xlu0 %4502  ;;  %v4501_v14 = vpop.permute.xlu1 %4500 }
 0x5ec   : > { %4576 = vperm.xlu1 %6088, %v4499_v39   ;;  %4580 = vperm.xlu0 %5892, %v4501_v14  }
 0x5ef   : > { %v4508_v44 = vpop.permute.xlu0 %4507  ;;  %v4506_v26 = vpop.permute.xlu1 %4505 }
 0x5f0   : > { %4584 = vperm.xlu1 %6088, %v4503_v49   ;;  %4588 = vperm.xlu0 %5892, %v4483_v22  }
 0x5f3   : > { %v4512_v46 = vpop.permute.xlu0 %4511  ;;  %v4510_v25 = vpop.permute.xlu1 %4509 }
 0x5f4   : > { %4596 = vperm.xlu0 %5892, %v4508_v44   ;;  %4592 = vperm.xlu1 %6088, %v4506_v26  }
 0x5f8   : > { %4604 = vperm.xlu0 %5892, %v4512_v46   ;;  %4600 = vperm.xlu1 %6088, %v4510_v25  }
 0x5fc   : > { %4612 = vperm.xlu0 %5892, %v4515_v35   ;;  %4608 = vperm.xlu1 %6088, %v8574_v2  }
 0x600   : > { %4632 = vperm.xlu1 %6088, %v4524_v60  }
 0x63e   : > { %v4532_v37 = vpop.permute.xlu0 %4531  ;;  %v4530_v16 = vpop.permute.xlu1 %4529 }
 0x63f   : > { %4620 = vperm.xlu0 %5892, %v4532_v37   ;;  %4616 = vperm.xlu1 %6088, %v4530_v16  }
 0x642   : > { %v4536_v5 = vpop.permute.xlu0 %4535  ;;  %v4534_v50 = vpop.permute.xlu1 %4533 }
 0x643   : > { %4628 = vperm.xlu0 %5892, %v4536_v5   ;;  %4624 = vperm.xlu1 %6088, %v4534_v50  }
 0x646   : > { %v4540_v3 = vpop.permute.xlu0 %4539  ;;  %v4538_v61 = vpop.permute.xlu1 %4537 }
 0x647   : > { %4640 = vperm.xlu1 %6088, %v4540_v3   ;;  %4636 = vperm.xlu0 %5892, %v4538_v61   ;;  %v9224_v3 = vld [vmem:[#allocation13_spill] sm:$0xff] }
 0x64a   : > { %v4542_v28 = vpop.permute.xlu1 %4541 }
 0x64b   : > { %4644 = vperm.xlu0 %5892, %v4542_v28  }
 0x657   : > { %v4549_v12 = vpop.permute.xlu0 %4548 }
 0x658   : > { %v8635_v38 = vsel %vm8628_vm5, %v4549_v12, %v9191_v59   ;;  %v9228_v59 = vld [vmem:[#allocation17_spill] sm:$0xff] }
 0x659   : > { %v9192_v42 = vmov %v8635_v38  ;;  %v9198_v38 = vld [vmem:[#allocation31_spill] sm:$0xff] }
 0x65f   : > { %v4557_v23 = vpop.permute.xlu0 %4556  ;;  %v4553_v36 = vpop.permute.xlu1 %4552 }
 0x660   : > { %v8640_v40 = vsel %vm8628_vm5, %v4557_v23, %v9193_v31   ;;  %v8645_v37 = vsel %vm8628_vm5, %v4553_v36, %v9194_v21  }
 0x661   : > { %v9195_v51 = vmov %v8645_v37  ;;  %v9222_v37 = vld [vmem:[#allocation19_spill] sm:$0xff] }
 0x662   :  { %v5528_v2 = vpack.c.bf16 (%p8758_p0), %v9195_v51, %v9192_v42 }
 0x663   : > { %v4565_v30 = vpop.permute.xlu0 %4564  ;;  %v4561_v15 = vpop.permute.xlu1 %4560 }
 0x664   : > { %v8650_v34 = vsel %vm8628_vm5, %v4565_v30, %v9196_v24   ;;  %v8655_v35 = vsel %vm8628_vm5, %v4561_v15, %v9198_v38   ;;  %v9234_v38 = vld [vmem:[#allocation12_spill] sm:$0xff] }
 0x665   : > { %v9197_v4 = vmov %v8650_v34  ;;  %v9199_v13 = vmov %v8655_v35  ;;  %v9204_v34 = vld [vmem:[#allocation26_spill] sm:$0xff]  ;;  %v9210_v35 = vld [vmem:[#allocation25_spill] sm:$0xff] }
 0x667   : > { %v4573_v19 = vpop.permute.xlu0 %4572  ;;  %v4569_v48 = vpop.permute.xlu1 %4568 }
 0x668   : > { %v8660_v32 = vsel %vm8628_vm5, %v4573_v19, %v9200_v41   ;;  %v8665_v33 = vsel %vm8628_vm5, %v4569_v48, %v9202_v62  }
 0x669   : > { %v9201_v1 = vmov %v8660_v32  ;;  %v9203_v45 = vmov %v8665_v33  ;;  %v9208_v32 = vld [vmem:[#allocation24_spill] sm:$0xff] }
 0x66a   : > { %v9216_v33 = vld [vmem:[#allocation20_spill] sm:$0xff]  ;;  %v5534_v8 = vpack.c.bf16 (%p8758_p0), %v9203_v45, %v9197_v4 }
 0x66b   : > { %v4581_v20 = vpop.permute.xlu0 %4580  ;;  %v4577_v55 = vpop.permute.xlu1 %4576 }
 0x66c   : > { %v8670_v30 = vsel %vm8628_vm5, %v4581_v20, %v9204_v34   ;;  %v8675_v31 = vsel %vm8628_vm5, %v4577_v55, %v9206_v17   ;;  %v9238_v34 = vld [vmem:[#allocation10_spill] sm:$0xff] }
 0x66d   : > { %v9205_v56 = vmov %v8670_v30  ;;  %v9207_v54 = vmov %v8675_v31  ;;  %v9230_v31 = vld [vmem:[#allocation14_spill] sm:$0xff]  ;;  %v9232_v30 = vld [vmem:[#allocation15_spill] sm:$0xff] }
 0x66e   :  { %v5537_v11 = vpack.c.bf16 (%p8758_p0), %v9207_v54, %v9201_v1 }
 0x66f   : > { %v4589_v53 = vpop.permute.xlu0 %4588  ;;  %v4585_v22 = vpop.permute.xlu1 %4584 }
 0x670   : > { %v8680_v28 = vsel %vm8628_vm5, %v4589_v53, %v9208_v32   ;;  %v8685_v29 = vsel %vm8628_vm5, %v4585_v22, %v9210_v35   ;;  %v9259_v32 = vmov %v9201_v1  ;;  %v9262_v35 = vmov %v9199_v13  ;;  %v4880_v1 = vld [vmem:[%s9062_s8] sm:$0xff] (%p8758_p0) }
 0x671   : > { %v9209_v58 = vmov %v8680_v28  ;;  %v9211_v57 = vmov %v8685_v29  ;;  %v9218_v29 = vld [vmem:[#allocation21_spill] sm:$0xff]  ;;  %v4884_v32 = vld [vmem:[%s9062_s8 + $0x20] sm:$0xff] (%p8758_p0) }
 0x673   : > { %v4597_v60 = vpop.permute.xlu0 %4596  ;;  %v4593_v47 = vpop.permute.xlu1 %4592 }
 0x674   : > { %v8690_v26 = vsel %vm8628_vm5, %v4597_v60, %v9212_v27   ;;  %v8695_v27 = vsel %vm8628_vm5, %v4593_v47, %v9214_v0   ;;  %v6328_v47 = vmov (%p8758_p0), 0.0|0.0   ;;  %v4673_v0 = vld [vmem:[%s9059_s5 + $0x8] sm:$0xff] (%p8758_p0) }
 0x675   : > { %v9213_v52 = vmov %v8690_v26  ;;  %v9215_v43 = vmov %v8695_v27  ;;  %v9220_v26 = vld [vmem:[#allocation18_spill] sm:$0xff]  ;;  %5527 = vmatprep.subr.bf16.mxu0 (%p8758_p0), %v6328_v47  ;;  %5357 = vmatprep.mubr.msk.f32.mxu0 (%p8758_p0), %vm4736_vm13, %v4673_v0 }
 0x676   : > { %v9254_v27 = vmov %v9215_v43  ;;  %5529 = vmatpush1.bf16.msra.mxu0 (%p8758_p0), %v5528_v2 }
 0x677   : > { %v4605_v18 = vpop.permute.xlu0 %4604  ;;  %v4601_v39 = vpop.permute.xlu1 %4600  ;;  %5530 = vmatprep.subr.bf16.mxu0 (%p8758_p0), %v6328_v47  ;;  %v5043_v27 = vld [vmem:[%s9064_s10 + $0x8] sm:$0x3] (%p8758_p0) }
 0x678   : > { %v8700_v24 = vsel %vm8628_vm5, %v4605_v18, %v9216_v33   ;;  %v8705_v25 = vsel %vm8628_vm5, %v4601_v39, %v9218_v29   ;;  %v9256_v29 = vmov %v9211_v57  ;;  %v9260_v33 = vmov %v9203_v45  ;;  %v4881_v45 = vld [vmem:[%s9062_s8 + $0x8] sm:$0xff] (%p8758_p0) }
 0x679   : > { %v9217_v49 = vmov %v8700_v24  ;;  %v9219_v44 = vmov %v8705_v25  ;;  %v5531_v39 = vpack.c.bf16 (%p8758_p0), %v9199_v13, %v8640_v40  ;;  %v4695_v13 = vld [vmem:[%s9060_s6 + $0x38] sm:$0xf] (%p8758_p0)  ;;  %v6330_v33 = vmov (%p8758_p0), 0.0  }
 0x67a   :  { %v4675_v29 = vld [vmem:[%s9059_s5 + $0x18] sm:$0xff] (%p8758_p0) }
 0x67b   : > { %v4613_v14 = vpop.permute.xlu0 %4612  ;;  %v4609_v46 = vpop.permute.xlu1 %4608  ;;  %5532 = vmatpush1.bf16.msra.mxu0 (%p8758_p0), %v5531_v39 }
 0x67c   : > { %v8710_v22 = vsel %vm8628_vm5, %v4613_v14, %v9220_v26   ;;  %v8715_v23 = vsel %vm8628_vm5, %v4609_v46, %v9222_v37   ;;  %v9253_v26 = vmov %v9213_v52  ;;  %v9264_v37 = vmov %v9195_v51  ;;  %5533 = vmatprep.subr.bf16.mxu0 (%p8758_p0), %v6328_v47 }
 0x67d   : > { %v9221_v5 = vmov %v8710_v22  ;;  %v9223_v50 = vmov %v8715_v23  ;;  %v6329_v46 = vmov (%p8758_p0), 0   ;;  %v5540_v51 = vpack.c.bf16 (%p8758_p0), %v9211_v57, %v9205_v56  ;;  %v5042_v57 = vld [vmem:[%s9064_s10] sm:$0xff] (%p8758_p0)  ;;  %v4678_v37 = vld [vmem:[%s9059_s5 + $0x30] sm:$0xff] (%p8758_p0) }
 0x67e   : > { %v9249_v22 = vmov %v9221_v5  ;;  %6089 = vset.pattern.permute.xlu0 (%p8758_p0), %v6329_v46  ;;  %6090 = vset.pattern.permute.xlu1 (%p8758_p0), %v6329_v46  ;;  %v4676_v26 = vld [vmem:[%s9059_s5 + $0x20] sm:$0xff] (%p8758_p0) }
 0x67f   : > { %v4633_v16 = vpop.permute.xlu1 %4632  ;;  %4698 = vperm.xlu0 (%p8758_p0), %6089, %v4688_v6   ;;  %4708 = vperm.xlu1 (%p8758_p0), %6090, %v4690_v7   ;;  %v5549_v22 = vpack.c.bf16 (%p8758_p0), %v9223_v50, %v9217_v49 }
 0x680   : > { %v8720_v17 = vsel %vm8628_vm5, %v4633_v16, %v9224_v3   ;;  %5535 = vmatpush1.bf16.msra.mxu0 (%p8758_p0), %v5534_v8  ;;  %v4683_v3 = vld [vmem:[%s9059_s5 + $0x58] sm:$0xff] (%p8758_p0) }
 0x681   : > { %v9225_v61 = vmov %v8720_v17  ;;  %5536 = vmatprep.subr.bf16.mxu0 (%p8758_p0), %v6328_v47 }
 0x682   : > { %v9244_v17 = vmov %v9225_v61 }
 0x683   :  { %4703 = vperm.xlu0 (%p8758_p0), %6089, %v4689_v9   ;;  %4713 = vperm.xlu1 (%p8758_p0), %6090, %v4691_v10   ;;  %v4882_v17 = vld [vmem:[%s9062_s8 + $0x10] sm:$0xff] (%p8758_p0) }
 0x684   :  { %5538 = vmatpush1.bf16.msra.mxu0 (%p8758_p0), %v5537_v11 }
 0x685   :  { %5539 = vmatprep.subr.bf16.mxu0 (%p8758_p0), %v6328_v47 }
 0x688   :  { %5541 = vmatpush1.bf16.msra.mxu0 (%p8758_p0), %v5540_v51 }
 0x689   :  { %5542 = vmatprep.subr.bf16.mxu0 (%p8758_p0), %v6328_v47 }
 0x6be   : > { %v4621_v28 = vpop.permute.xlu0 %4620  ;;  %v4617_v25 = vpop.permute.xlu1 %4616 }
 0x6bf   : > { %v8725_v20 = vsel %vm8628_vm5, %v4621_v28, %v9226_v63   ;;  %v8730_v21 = vsel %vm8628_vm5, %v4617_v25, %v9228_v59   ;;  %v9252_v25 = vmov %v9219_v44  ;;  %v9255_v28 = vmov %v9209_v58  ;;  %v4687_v63 = vld [vmem:[%s9059_s5 + $0x78] sm:$0xf] (%p8758_p0)  ;;  %v4874_v59 = vld [vmem:[%s9061_s7] sm:$0xff] (%p8758_p0) }
 0x6c0   : > { %v9227_v12 = vmov %v8725_v20  ;;  %v9229_v48 = vmov %v8730_v21  ;;  %v9236_v21 = vld [vmem:[#allocation11_spill] sm:$0xff]  ;;  %v4684_v25 = vld [vmem:[%s9059_s5 + $0x60] sm:$0xff] (%p8758_p0)  ;;  %5413 = vmatprep.mubr.msk.f32.mxu1 (%p8758_p0), %vm4916_vm0, %v4874_v59 }
 0x6c1   :  { %v5552_v35 = vpack.c.bf16 (%p8758_p0), %v9229_v48, %v9221_v5  ;;  %v4679_v5 = vld [vmem:[%s9059_s5 + $0x38] sm:$0xff] (%p8758_p0)  ;;  %v4685_v28 = vld [vmem:[%s9059_s5 + $0x68] sm:$0xff] (%p8758_p0) }
 0x6c2   : > { %v4629_v36 = vpop.permute.xlu0 %4628  ;;  %v4625_v23 = vpop.permute.xlu1 %4624 }
 0x6c3   : > { %v8735_v18 = vsel %vm8628_vm5, %v4629_v36, %v9230_v31   ;;  %v8740_v19 = vsel %vm8628_vm5, %v4625_v23, %v9232_v30   ;;  %v9250_v23 = vmov %v9223_v50  ;;  %v9257_v30 = vmov %v9205_v56  ;;  %v4681_v50 = vld [vmem:[%s9059_s5 + $0x48] sm:$0xff] (%p8758_p0) }
 0x6c4   : > { %v9231_v41 = vmov %v8735_v18  ;;  %v9233_v62 = vmov %v8740_v19  ;;  %v9258_v31 = vmov %v9207_v54  ;;  %v9263_v36 = vmov %v8640_v40  ;;  %v4693_v40 = vld [vmem:[%s9060_s6 + $0x28] sm:$0xff] (%p8758_p0)  ;;  %v4883_v54 = vld [vmem:[%s9062_s8 + $0x18] sm:$0xff] (%p8758_p0) }
 0x6c5   : > { %v9245_v18 = vmov %v9231_v41  ;;  %v9246_v19 = vmov %v9233_v62  ;;  %4723 = vperm.xlu1 (%p8758_p0), %6090, %v4693_v40   ;;  %v5546_v56 = vpack.c.bf16 (%p8758_p0), %v9219_v44, %v9213_v52  ;;  %v5555_v52 = vpack.c.bf16 (%p8758_p0), %v9233_v62, %v9227_v12  ;;  %v4674_v44 = vld [vmem:[%s9059_s5 + $0x10] sm:$0xff] (%p8758_p0) }
 0x6c6   : > { %v4637_v15 = vpop.permute.xlu0 %4636  ;;  %v4641_v24 = vpop.permute.xlu1 %4640  ;;  %v5543_v19 = vpack.c.bf16 (%p8758_p0), %v9215_v43, %v9209_v58  ;;  %v4885_v58 = vld [vmem:[%s9062_s8 + $0x28] sm:$0x3] (%p8758_p0)  ;;  %v5558_v43 = vpack.c.bf16 (%p8758_p0), %v9225_v61, %v9231_v41  ;;  %v4682_v61 = vld [vmem:[%s9059_s5 + $0x50] sm:$0xff] (%p8758_p0) }
 0x6c7   : > { %v8745_v16 = vsel %vm8628_vm5, %v4637_v15, %v9234_v38   ;;  %v8750_v15 = vsel %vm8628_vm5, %v4641_v24, %v9236_v21   ;;  %v9248_v21 = vmov %v9229_v48  ;;  %v9251_v24 = vmov %v9217_v49  ;;  %66 = sbr.rel (!%p8758_p0) target bundleno = 10 (0xa), region = 88  ;;  %v4672_v49 = vld [vmem:[%s9059_s5] sm:$0xff] (%p8758_p0) }
 0x6c8   : > { %v9235_v55 = vmov %v8745_v16  ;;  %v9237_v53 = vmov %v8750_v15  ;;  %v9265_v38 = vmov %v9192_v42  ;;  %v4692_v42 = vld [vmem:[%s9060_s6 + $0x20] sm:$0xff] (%p8758_p0)  ;;  %5544 = vmatpush1.bf16.msra.mxu0 (%p8758_p0), %v5543_v19 }
 0x6c9   : > { %v9242_v15 = vmov %v9237_v53  ;;  %v9243_v16 = vmov %v9235_v55  ;;  %4718 = vperm.xlu0 (%p8758_p0), %6089, %v4692_v42   ;;  %4733 = vperm.xlu1 (%p8758_p0), %6090, %v4695_v13   ;;  %v5561_v18 = vpack.c.bf16 (%p8758_p0), %v9237_v53, %v9235_v55 }
 0x6ca   : > { %v4645_v20 = vpop.permute.xlu0 %4644  ;;  %5545 = vmatprep.subr.bf16.mxu0 (%p8758_p0), %v6328_v47  ;;  %v4680_v16 = vld [vmem:[%s9059_s5 + $0x40] sm:$0xff] (%p8758_p0) }
 0x6cb   : > { %v8755_v14 = vsel %vm8628_vm5, %v4645_v20, %v9238_v34   ;;  %v9247_v20 = vmov %v9227_v12  ;;  %v9261_v34 = vmov %v9197_v4  ;;  %v4694_v4 = vld [vmem:[%s9060_s6 + $0x30] sm:$0xff] (%p8758_p0) }
 0x6cc   : > { %v9239_v60 = vmov %v8755_v14  ;;  %5547 = vmatpush1.bf16.msra.mxu0 (%p8758_p0), %v5546_v56  ;;  %v4686_v12 = vld [vmem:[%s9059_s5 + $0x70] sm:$0xf] (%p8758_p0) }
 0x6cd   : > { %v9241_v14 = vmov %v9239_v60  ;;  %4728 = vperm.xlu0 (%p8758_p0), %6089, %v4694_v4   ;;  %4893 = vperm.xlu1 (%p8758_p0), %6090, %v4881_v45  }
 0x6ce   :  { %5548 = vmatprep.subr.bf16.mxu0 %v6328_v47  ;;  %v4677_v14 = vld [vmem:[%s9059_s5 + $0x28] sm:$0xff] }
 0x6d0   :  { %5550 = vmatpush1.bf16.msra.mxu0 %v5549_v22 }
 0x6d1   :  { %4888 = vperm.xlu0 %6089, %v4880_v1   ;;  %4903 = vperm.xlu1 %6090, %v4883_v54  }
 0x6d2   :  { %5551 = vmatprep.subr.bf16.mxu0 %v6328_v47 }
 0x6d4   :  { %5553 = vmatpush1.bf16.msra.mxu0 %v5552_v35 }
 0x6d5   :  { %4898 = vperm.xlu0 %6089, %v4882_v17   ;;  %4913 = vperm.xlu1 %6090, %v4885_v58  }
 0x6d6   :  { %5554 = vmatprep.subr.bf16.mxu0 %v6328_v47 }
 0x6d8   :  { %5556 = vmatpush1.bf16.msra.mxu0 %v5555_v52  ;;  %v4875_v52 = vld [vmem:[%s9061_s7 + $0x8] sm:$0xff] }
 0x6d9   :  { %4908 = vperm.xlu0 %6089, %v4884_v32   ;;  %5051 = vperm.xlu1 %6090, %v5043_v27  }
 0x6da   :  { %5557 = vmatprep.subr.bf16.mxu0 %v6328_v47 }
 0x6dc   :  { %5559 = vmatpush1.bf16.msra.mxu0 %v5558_v43  ;;  %v4876_v43 = vld [vmem:[%s9061_s7 + $0x10] sm:$0xff] }
 0x6dd   :  { %5046 = vperm.xlu0 %6089, %v5042_v57   ;;  %5560 = vmatprep.subr.bf16.mxu0 %v6328_v47 }
 0x6e0   :  { %5562 = vmatpush1.bf16.msra.mxu0 %v5561_v18  ;;  %v4877_v18 = vld [vmem:[%s9061_s7 + $0x18] sm:$0xff] }
 0x6e1   :  { %4809 = vmatprep.subr.mxu0 %v6330_v33  ;;  %v4878_v33 = vld [vmem:[%s9061_s7 + $0x20] sm:$0xff] }
 0x6e4   :  { %4810 = vmatpush1.msra.mxu0 %v9239_v60 }
 0x6e5   :  { %4826 = vmatmul.mubr.f32.vlgmr.msra.gmra.mrb[0].mxu0 %v4672_v49  ;;  %v4879_v49 = vld [vmem:[%s9061_s7 + $0x28] sm:$0x3] }
 0x6e6   :  { %5358 = vmatprep.mubr.msk.f32.mxu0 %vm4736_vm13, %v4675_v29  ;;  %v5040_v29 = vld [vmem:[%s9063_s9] sm:$0xff] }
 0x6e9   :  { %4831 = vmatmul.mubr.f32.gmra.mrb[2].mxu0 %v4674_v44 }
 0x6ea   :  { %5359 = vmatprep.mubr.msk.f32.mxu0 %vm4736_vm13, %v4677_v14 }
 0x6ed   :  { %4836 = vmatmul.mubr.f32.gmra.mrb[4].mxu0 %v4676_v26 }
 0x6ee   :  { %5360 = vmatprep.mubr.msk.f32.mxu0 %vm4736_vm13, %v4679_v5 }
 0x6f1   :  { %4841 = vmatmul.mubr.f32.gmra.mrb[6].mxu0 %v4678_v37 }
 0x6f2   :  { %5361 = vmatprep.mubr.msk.f32.mxu0 %vm4736_vm13, %v4681_v50 }
 0x6f5   :  { %4846 = vmatmul.mubr.f32.gmra.mrb[8].mxu0 %v4680_v16 }
 0x6f6   :  { %5362 = vmatprep.mubr.msk.f32.mxu0 %vm4736_vm13, %v4683_v3 }
 0x6f9   :  { %4851 = vmatmul.mubr.f32.gmra.mrb[10].mxu0 %v4682_v61 }
 0x6fa   :  { %5363 = vmatprep.mubr.msk.f32.mxu0 %vm4736_vm13, %v4685_v28 }
 0x6fd   :  { %4856 = vmatmul.mubr.f32.gmra.mrb[12].mxu0 %v4684_v25 }
 0x6fe   :  { %5364 = vmatprep.mubr.msk.f32.mxu0 %vm4736_vm13, %v4687_v63  ;;  %v4699_v48 = vpop.permute.xlu0 %4698  ;;  %v4709_v38 = vpop.permute.xlu1 %4708 }
 0x701   :  { %4861 = vmatmul.mubr.f32.gmra.mrb[14].mxu0 %v4686_v12 }
 0x702   :  { %v4704_v30 = vpop.permute.xlu0 %4703  ;;  %v4714_v2 = vpop.permute.xlu1 %4713 }
 0x744   :  { %v4724_v42 = vpop.permute.xlu1 %4723 }
 0x748   :  { %v4719_v6 = vpop.permute.xlu0 %4718  ;;  %v4734_v22 = vpop.permute.xlu1 %4733 }
 0x74c   :  { %v4729_v19 = vpop.permute.xlu0 %4728  ;;  %v4894_v44 = vpop.permute.xlu1 %4893 }
 0x750   :  { %v4889_v14 = vpop.permute.xlu0 %4888  ;;  %v4904_v50 = vpop.permute.xlu1 %4903 }
 0x754   :  { %v4899_v3 = vpop.permute.xlu0 %4898 }
 0x7b8   :  { %v4827_v36 = vpop.f32.mrb[0].mxu0 }
 0x7b9   :  { %v4828_v23 = vadd.f32 %v4827_v36, %v4699_v48  ;;  %v4829_v31 = vpop.f32.mrb[1].mxu0 }
 0x7bb   :  { %v4866_v41 = vmax.f32 %v4828_v23, 0.0  ;;  %v4914_v23 = vpop.permute.xlu1 %4913 }
 0x7bc   :  { %v4832_v62 = vpop.f32.mrb[2].mxu0 }
 0x7bd   :  { %5144 = vst.msk [vmem:[%s9066_s12] sm:$0xff] %vm5140_vm1, %v4866_v41  ;;  %v4833_v15 = vadd.f32 %v4832_v62, %v4704_v30  ;;  %v4834_v24 = vpop.f32.mrb[3].mxu0  ;;  %v4909_v30 = vpop.permute.xlu0 %4908 }
 0x7bf   :  { %v4867_v55 = vmax.f32 %v4833_v15, 0.0 }
 0x7c0   :  { %v4837_v21 = vpop.f32.mrb[4].mxu0 }
 0x7c1   :  { %5145 = vst.msk [vmem:[%s9066_s12 + $0x8] sm:$0xff] %vm5140_vm1, %v4867_v55  ;;  %v4838_v53 = vadd.f32 %v4837_v21, %v4709_v38  ;;  %v4839_v20 = vpop.f32.mrb[5].mxu0  ;;  %v5563_v34 = vpack.c.bf16 %v4867_v55, %v4866_v41 }
 0x7c2   :  { %v5041_v20 = vld [vmem:[%s9063_s9 + $0x8] sm:$0x3] }
 0x7c3   :  { %v4868_v60 = vmax.f32 %v4838_v53, 0.0  ;;  %5564 = vmatprep.subr.bf16.mxu1 %v5563_v34 }
 0x7c4   :  { %v4842_v47 = vpop.f32.mrb[6].mxu0  ;;  %5566 = vmatpush3.bf16.msra.mxu1 %v5563_v34  ;;  %v5052_v34 = vpop.permute.xlu1 %5051 }
 0x7c5   :  { %5146 = vst.msk [vmem:[%s9066_s12 + $0x10] sm:$0xff] %vm5140_vm1, %v4868_v60  ;;  %v4843_v0 = vadd.f32 %v4842_v47, %v4714_v2  ;;  %v4844_v39 = vpop.f32.mrb[7].mxu0  ;;  %v5047_v2 = vpop.permute.xlu0 %5046 }
 0x7c7   :  { %v4869_v46 = vmax.f32 %v4843_v0, 0.0 }
 0x7c8   :  { %v4847_v7 = vpop.f32.mrb[8].mxu0 }
 0x7c9   :  { %v5567_v8 = vpack.c.bf16 %v4869_v46, %v4868_v60  ;;  %5147 = vst.msk [vmem:[%s9066_s12 + $0x18] sm:$0xff] %vm5140_vm1, %v4869_v46  ;;  %v4848_v9 = vadd.f32 %v4847_v7, %v4719_v6  ;;  %v4849_v10 = vpop.f32.mrb[9].mxu0 }
 0x7cb   :  { %v4870_v11 = vmax.f32 %v4848_v9, 0.0  ;;  %5568 = vmatprep.subr.bf16.mxu1 %v5567_v8 }
 0x7cc   :  { %v4852_v40 = vpop.f32.mrb[10].mxu0  ;;  %5570 = vmatpush3.bf16.msra.mxu1 %v5567_v8 }
 0x7cd   :  { %5148 = vst.msk [vmem:[%s9066_s12 + $0x20] sm:$0xff] %vm5140_vm1, %v4870_v11  ;;  %v4853_v51 = vadd.f32 %v4852_v40, %v4724_v42  ;;  %v4854_v4 = vpop.f32.mrb[11].mxu0 }
 0x7cf   :  { %v4871_v13 = vmax.f32 %v4853_v51, 0.0 }
 0x7d0   :  { %v4857_v1 = vpop.f32.mrb[12].mxu0 }
 0x7d1   :  { %v5571_v45 = vpack.c.bf16 %v4871_v13, %v4870_v11  ;;  %5149 = vst.msk [vmem:[%s9066_s12 + $0x28] sm:$0xff] %vm5140_vm1, %v4871_v13  ;;  %v4858_v56 = vadd.f32 %v4857_v1, %v4729_v19  ;;  %v4859_v17 = vpop.f32.mrb[13].mxu0 }
 0x7d3   :  { %v4872_v54 = vmax.f32 %v4858_v56, 0.0  ;;  %5572 = vmatprep.subr.bf16.mxu1 %v5571_v45 }
 0x7d4   :  { %v4862_v32 = vpop.f32.mrb[14].mxu0  ;;  %5574 = vmatpush3.bf16.msra.mxu1 %v5571_v45 }
 0x7d5   :  { %5150 = vst.msk [vmem:[%s9066_s12 + $0x30] sm:$0xff] %vm5140_vm1, %v4872_v54  ;;  %v4863_v58 = vadd.f32 %v4862_v32, %v4734_v22  ;;  %v4864_v35 = vpop.f32.mrb[15].mxu0 }
 0x7d7   :  { %v4873_v57 = vmax.f32 %v4863_v58, 0.0 }
 0x7d9   :  { %v5575_v27 = vpack.c.bf16 %v4873_v57, %v4872_v54  ;;  %5152 = vst.msk [vmem:[%s9066_s12 + $0x38] sm:$0xf] %vm5151_vm4, %v4873_v57 }
 0x7db   :  { %5577 = vmatprep.subr.msk.bf16.mxu1 %vm5576_vm10, %v5575_v27 }
 0x7dc   :  { %5580 = vmatpush3.bf16.msk.msra.mxu1 %vm5576_vm10, %v5575_v27 }
 0x7df   :  { %5414 = vmatmul.mubr.msk.f32.vlgmr.msra.gmra.mrb[0].mxu1 %vm4916_vm0, %v4875_v52 }
 0x7e0   :  { %5416 = vmatprep.mubr.msk.f32.mxu1 %vm4916_vm0, %v4876_v43 }
 0x7e3   :  { %5417 = vmatmul.mubr.msk.f32.gmra.mrb[2].mxu1 %vm4916_vm0, %v4877_v18 }
 0x7e4   :  { %5419 = vmatprep.mubr.msk.f32.mxu1 %vm4916_vm0, %v4878_v33 }
 0x7e7   :  { %5420 = vmatmul.mubr.msk.f32.gmra.mrb[4].mxu1 %vm4916_vm0, %v4879_v49 }
 0x7e8   :  { %5434 = vmatprep.mubr.msk.f32.mxu1 %vm5054_vm8, %v5040_v29 }
 0x8b2   :  { %v5415_v26 = vpop.f32.mrb[0].mxu1 }
 0x8b3   :  { %v5011_v5 = vadd.f32 %v5415_v26, %v4894_v44  ;;  %v5005_v37 = vpop.f32.mrb[1].mxu1 }
 0x8b4   :  { %v5006_v16 = vadd.f32 %v5005_v37, %v4889_v14 }
 0x8b5   :  { %v5035_v61 = vmax.f32 %v5011_v5, 0.0 }
 0x8b6   :  { %v5034_v28 = vmax.f32 %v5006_v16, 0.0  ;;  %v5418_v25 = vpop.f32.mrb[2].mxu1 }
 0x8b7   :  { %v5021_v63 = vadd.f32 %v5418_v25, %v4904_v50  ;;  %v5015_v12 = vpop.f32.mrb[3].mxu1 }
 0x8b8   :  { %v5581_v59 = vpack.c.bf16 %v5035_v61, %v5034_v28  ;;  %v5016_v48 = vadd.f32 %v5015_v12, %v4899_v3 }
 0x8b9   :  { %v5037_v36 = vmax.f32 %v5021_v63, 0.0 }
 0x8ba   :  { %v5036_v31 = vmax.f32 %v5016_v48, 0.0  ;;  %v5421_v41 = vpop.f32.mrb[4].mxu1  ;;  %5582 = vmatprep.subr.bf16.mxu1 %v5581_v59 }
 0x8bb   :  { %v5031_v62 = vadd.f32 %v5421_v41, %v4914_v23  ;;  %v5025_v15 = vpop.f32.mrb[5].mxu1  ;;  %5584 = vmatpush3.bf16.msra.mxu1 %v5581_v59 }
 0x8bc   :  { %v5585_v24 = vpack.c.bf16 %v5037_v36, %v5036_v31  ;;  %v5026_v38 = vadd.f32 %v5025_v15, %v4909_v30 }
 0x8bd   :  { %v5039_v55 = vmax.f32 %v5031_v62, 0.0 }
 0x8be   :  { %v5038_v21 = vmax.f32 %v5026_v38, 0.0  ;;  %5586 = vmatprep.subr.bf16.mxu1 %v5585_v24 }
 0x8bf   :  { %5588 = vmatpush3.bf16.msra.mxu1 %v5585_v24 }
 0x8c0   :  { %v5589_v53 = vpack.c.bf16 %v5039_v55, %v5038_v21 }
 0x8c2   :  { %5591 = vmatprep.subr.msk.bf16.mxu1 %vm5590_vm2, %v5589_v53 }
 0x8c3   :  { %5594 = vmatpush3.bf16.msk.msra.mxu1 %vm5590_vm2, %v5589_v53 }
 0x8c6   :  { %5435 = vmatmul.mubr.msk.f32.vlgmr.msra.gmra.mrb[6].mxu1 %vm5054_vm8, %v5041_v20 }
 0x999   :  { %v5436_v60 = vpop.f32.mrb[6].mxu1 }
 0x99a   :  { %v5137_v47 = vadd.f32 %v5436_v60, %v5052_v34  ;;  %v5131_v0 = vpop.f32.mrb[7].mxu1 }
 0x99b   :  { %v5132_v39 = vadd.f32 %v5131_v0, %v5047_v2 }
 0x99c   :  { %5143 = vst.msk [vmem:[%s9065_s11 + $0x8] sm:$0x3] %vm5142_vm15, %v5137_v47 }
 0x99d   :  { %5141 = vst.msk [vmem:[%s9065_s11] sm:$0xff] %vm5140_vm1, %v5132_v39 }

</bundles_post_ra>
